<compile_context>
chip_gen: v7x
topology: tpu7x:2x2x1
jax: 0.10.0
libtpu: 0.0.40
codegen_flags: <defaults>
</compile_context>

<pallas_src>
import math

import jax
import jax.numpy as jnp
from jax.experimental import pallas as pl
from jax.experimental.pallas import tpu as pltpu

# ----------------------------- configuration --------------------------------
B = 2            # batch
L_SRC = 8        # source length
L_TGT = 8        # target length
D_MODEL = 32     # model width
N_HEADS = 4      # attention heads
D_HEAD = D_MODEL // N_HEADS
D_FF = 64        # feed-forward hidden
N_LAYERS = 2     # encoder / decoder depth
VOCAB = 16       # shared toy vocab
EPS = 1e-6
NEG_INF = -1e9

# At real model sizes set this to jnp.bfloat16 (MXU operands only; accumulation stays f32
# via preferred_element_type and LayerNorm/softmax stay f32). At 32-wide toy dims f32 keeps
# exact parity with the reference and avoids extra casts on v5e (no bf16 VPU).
MXU_INPUT_DTYPE = jnp.float32


# --------------------------- fused forward kernel ---------------------------
def _fused_encdec_kernel(
    # per-batch activations / additive attention biases (leading batch dim squeezed)
    x_src_ref, x_tgt_ref, bias_enc_ref, bias_self_ref, bias_cross_ref,
    # encoder layer stacks (leading dim = N_LAYERS)
    e_wqkv_ref, e_bqkv_ref, e_wo_ref, e_bo_ref,
    e_w1_ref, e_b1_ref, e_w2_ref, e_b2_ref, e_ln_ref,
    # decoder layer stacks (leading dim = N_LAYERS)
    d_wqkv_s_ref, d_bqkv_s_ref, d_wo_s_ref, d_bo_s_ref,
    d_wqkv_c_ref, d_bqkv_c_ref, d_wo_c_ref, d_bo_c_ref,
    d_w1_ref, d_b1_ref, d_w2_ref, d_b2_ref, d_ln_ref,
    # final LayerNorms: (2, 2, D) = [[enc_g, enc_b], [dec_g, dec_b]]
    final_ln_ref,
    # output (per-batch block)
    out_ref,
    # VMEM scratch used to pack per-head contexts at lane offsets h*D_HEAD
    ctx_scr,
):
    def _mm(a, b):
        return jnp.dot(a.astype(MXU_INPUT_DTYPE), b.astype(MXU_INPUT_DTYPE),
                       preferred_element_type=jnp.float32)

    def layer_norm(x, g, b):
        mean = jnp.mean(x, axis=-1, keepdims=True)
        var = jnp.mean((x - mean) ** 2, axis=-1, keepdims=True)
        return (x - mean) * jax.lax.rsqrt(var + EPS) * g + b

    def mha(xq, xkv, wqkv, bqkv, wo, bo, bias, *, is_self):
        # xq: (Rq, D), xkv: (Rk, D); bias: (Rq, Rk) additive (0 / -1e9).
        if is_self:        # self-attention: single fused QKV matmul (D -> 3D)
            qkv = _mm(xq, wqkv) + bqkv
            q = qkv[:, :D_MODEL]
            k = qkv[:, D_MODEL:2 * D_MODEL]
            v = qkv[:, 2 * D_MODEL:]
        else:              # cross-attention: Q from decoder stream, K/V from memory
            q = _mm(xq, wqkv[:, :D_MODEL]) + bqkv[:, :D_MODEL]
            kv = _mm(xkv, wqkv[:, D_MODEL:]) + bqkv[:, D_MODEL:]
            k = kv[:, :D_MODEL]
            v = kv[:, D_MODEL:]
        # NOTE: 1/sqrt(D_HEAD) is pre-folded into the Q projection weights/bias (host side),
        # so no per-site activation scaling is needed here.

        kT = k.T                                   # ONE transpose per site (hoisted)
        rq = xq.shape[0]
        for h in range(N_HEADS):
            sl = slice(h * D_HEAD, (h + 1) * D_HEAD)
            s = _mm(q[:, sl], kT[sl, :]) + bias    # kT[sl] is a cheap sublane slice
            s = s - jnp.max(s, axis=-1, keepdims=True)
            p = jnp.exp(s)
            # NOTE: a fully-masked row would become a uniform average of V (latent trap if
            # masks change); current padding/causal masks never produce one.
            p = p * pl.reciprocal(jnp.sum(p, axis=-1, keepdims=True), approx=True)
            # pack this head's context at lane offset h*D_HEAD — no per-head head@Wo matmul
            ctx_scr[0:rq, sl] = _mm(p, v[:, sl])
        ctx = ctx_scr[0:rq, :]                     # (Rq, D) with all heads packed
        return _mm(ctx, wo) + bo                   # SINGLE output projection, depth D_MODEL

    def ffn(x, w1, b1, w2, b2):
        h = jnp.maximum(_mm(x, w1) + b1, 0.0)
        return _mm(h, w2) + b2

    bias_enc = bias_enc_ref[...]
    bias_self = bias_self_ref[...]
    bias_cross = bias_cross_ref[...]
    fl = final_ln_ref[...]  # (2, 2, D)

    # ------------------------------ encoder --------------------------------
    x = x_src_ref[...]
    for l in range(N_LAYERS):
        lnp = e_ln_ref[l]  # (4, D): ln1_g, ln1_b, ln2_g, ln2_b
        y = layer_norm(x, lnp[0:1], lnp[1:2])
        x = x + mha(y, y, e_wqkv_ref[l], e_bqkv_ref[l], e_wo_ref[l], e_bo_ref[l],
                    bias_enc, is_self=True)
        y = layer_norm(x, lnp[2:3], lnp[3:4])
        x = x + ffn(y, e_w1_ref[l], e_b1_ref[l], e_w2_ref[l], e_b2_ref[l])
    memory = layer_norm(x, fl[0, 0:1], fl[0, 1:2])

    # ------------------------------ decoder --------------------------------
    x = x_tgt_ref[...]
    for l in range(N_LAYERS):
        lnp = d_ln_ref[l]  # (6, D): ln1_g, ln1_b, ln2_g, ln2_b, ln3_g, ln3_b
        y = layer_norm(x, lnp[0:1], lnp[1:2])
        x = x + mha(y, y, d_wqkv_s_ref[l], d_bqkv_s_ref[l], d_wo_s_ref[l], d_bo_s_ref[l],
                    bias_self, is_self=True)
        y = layer_norm(x, lnp[2:3], lnp[3:4])
        x = x + mha(y, memory, d_wqkv_c_ref[l], d_bqkv_c_ref[l], d_wo_c_ref[l],
                    d_bo_c_ref[l], bias_cross, is_self=False)
        y = layer_norm(x, lnp[4:5], lnp[5:6])
        x = x + ffn(y, d_w1_ref[l], d_b1_ref[l], d_w2_ref[l], d_b2_ref[l])

    out_ref[...] = layer_norm(x, fl[1, 0:1], fl[1, 1:2]).astype(out_ref.dtype)


# ------------------------------- host-side glue ------------------------------
def _const_spec(shape):
    """Full-array block, same block for every batch grid point (fetched once)."""
    zeros = (0,) * len(shape)
    return pl.BlockSpec(tuple(shape), lambda b, _z=zeros: _z)


def _batch_spec(shape):
    """Per-batch block: leading batch dim squeezed out of the kernel Ref."""
    return pl.BlockSpec((None,) + tuple(shape[1:]), lambda b: (b,) + (0,) * (len(shape) - 1))


def _positional_encoding(length, d_model):
    pos = jnp.arange(length)[:, None].astype(jnp.float32)
    div = jnp.exp(jnp.arange(0, d_model, 2).astype(jnp.float32)
                  * (-math.log(10000.0) / d_model))
    pe = jnp.zeros((length, d_model), jnp.float32)
    pe = pe.at[:, 0::2].set(jnp.sin(pos * div))
    pe = pe.at[:, 1::2].set(jnp.cos(pos * div))
    return pe


def _embed(tokens, table):
    # Embeddings(d_model, vocab): lut(x) * sqrt(d_model), then add PE (dropout = identity).
    e = jnp.take(table, tokens, axis=0) * math.sqrt(D_MODEL)
    return e + _positional_encoding(tokens.shape[1], D_MODEL)[None, :, :]


def _mask_to_bias(mask_bqk):
    """(B, Lq, Lk) {0,1} mask -> (B, Lq, Lk) additive bias (0 / -1e9), per batch."""
    return jnp.where(mask_bqk > 0, 0.0, NEG_INF).astype(jnp.float32)


@jax.jit
def encoder_decoder_forward(params, src, tgt, src_mask, tgt_mask):
    """Mirrors EncoderDecoder.forward: decode(encode(src, src_mask), src_mask, tgt, tgt_mask).

    NOTE: `generator` is constructed in __init__ but NOT called in forward(), so the
    output is the decoder hidden state (B, L_TGT, D_MODEL).
    """
    x_src = _embed(src, params["src_emb"])                 # (B, L_SRC, D)
    x_tgt = _embed(tgt, params["tgt_emb"])                 # (B, L_TGT, D)

    src_row = src_mask.astype(jnp.float32)                 # (B, 1, L_SRC)
    bias_enc = _mask_to_bias(jnp.broadcast_to(src_row, (B, L_SRC, L_SRC)))
    bias_self = _mask_to_bias(tgt_mask.astype(jnp.float32))
    bias_cross = _mask_to_bias(jnp.broadcast_to(src_row, (B, L_TGT, L_SRC)))

    inputs = [
        x_src, x_tgt, bias_enc, bias_self, bias_cross,
        params["e_wqkv"], params["e_bqkv"], params["e_wo"], params["e_bo"],
        params["e_w1"], params["e_b1"], params["e_w2"], params["e_b2"], params["e_ln"],
        params["d_wqkv_s"], params["d_bqkv_s"], params["d_wo_s"], params["d_bo_s"],
        params["d_wqkv_c"], params["d_bqkv_c"], params["d_wo_c"], params["d_bo_c"],
        params["d_w1"], params["d_b1"], params["d_w2"], params["d_b2"], params["d_ln"],
        params["final_ln"],
    ]

    n_batched = 5
    in_specs = ([_batch_spec(a.shape) for a in inputs[:n_batched]]
                + [_const_spec(a.shape) for a in inputs[n_batched:]])

    out = pl.pallas_call(
        _fused_encdec_kernel,
        out_shape=jax.ShapeDtypeStruct((B, L_TGT, D_MODEL), jnp.float32),
        grid=(B,),
        in_specs=in_specs,
        out_specs=pl.BlockSpec((None, L_TGT, D_MODEL), lambda b: (b, 0, 0)),
        scratch_shapes=[pltpu.VMEM((max(L_SRC, L_TGT), D_MODEL), jnp.float32)],
        compiler_params=pltpu.CompilerParams(
            dimension_semantics=("parallel",)),   # megacore: batches across v7x's 2 TCs
    )(*inputs)
    return out


# ---------------------------- parameter creation ----------------------------
def make_params(key):
    keys = iter(jax.random.split(key, 128))

    def nk():
        return next(keys)

    def w(d_in, d_out):
        return jax.random.normal(nk(), (d_in, d_out), jnp.float32) * 0.02

    attn_scale = 1.0 / math.sqrt(D_HEAD)

    def stack_attn(n):
        wqkv, wo = [], []
        for _ in range(n):
            wq, wk, wv = w(D_MODEL, D_MODEL), w(D_MODEL, D_MODEL), w(D_MODEL, D_MODEL)
            # Fold the 1/sqrt(d_head) attention scale into the Q projection weights here
            # (one-time host op) so the kernel never scales activations.
            wqkv.append(jnp.concatenate([wq * attn_scale, wk, wv], axis=1))  # (D, 3D)
            wo.append(w(D_MODEL, D_MODEL))
        # Q-projection biases are zero; if nonzero they would be scaled by attn_scale too.
        return (jnp.stack(wqkv), jnp.zeros((n, 1, 3 * D_MODEL), jnp.float32),
                jnp.stack(wo), jnp.zeros((n, 1, D_MODEL), jnp.float32))

    def stack_ffn(n):
        w1s = [w(D_MODEL, D_FF) for _ in range(n)]
        w2s = [w(D_FF, D_MODEL) for _ in range(n)]
        return (jnp.stack(w1s), jnp.zeros((n, 1, D_FF), jnp.float32),
                jnp.stack(w2s), jnp.zeros((n, 1, D_MODEL), jnp.float32))

    def ln_stack(n_layers, n_ln):
        gb = jnp.stack([jnp.ones((D_MODEL,), jnp.float32),
                        jnp.zeros((D_MODEL,), jnp.float32)])       # (2, D) = [gamma, beta]
        row = jnp.tile(gb, (n_ln, 1))                              # (2*n_ln, D)
        return jnp.broadcast_to(row[None], (n_layers, 2 * n_ln, D_MODEL))

    p = {
        "src_emb": jax.random.normal(nk(), (VOCAB, D_MODEL), jnp.float32) * 0.02,
        "tgt_emb": jax.random.normal(nk(), (VOCAB, D_MODEL), jnp.float32) * 0.02,
    }
    p["e_wqkv"], p["e_bqkv"], p["e_wo"], p["e_bo"] = stack_attn(N_LAYERS)
    p["e_w1"], p["e_b1"], p["e_w2"], p["e_b2"] = stack_ffn(N_LAYERS)
    p["e_ln"] = ln_stack(N_LAYERS, 2)

    p["d_wqkv_s"], p["d_bqkv_s"], p["d_wo_s"], p["d_bo_s"] = stack_attn(N_LAYERS)
    p["d_wqkv_c"], p["d_bqkv_c"], p["d_wo_c"], p["d_bo_c"] = stack_attn(N_LAYERS)
    p["d_w1"], p["d_b1"], p["d_w2"], p["d_b2"] = stack_ffn(N_LAYERS)
    p["d_ln"] = ln_stack(N_LAYERS, 3)

    p["final_ln"] = jnp.broadcast_to(
        jnp.stack([jnp.ones((D_MODEL,), jnp.float32),
                   jnp.zeros((D_MODEL,), jnp.float32)])[None], (2, 2, D_MODEL))
    # TODO(synk): `generator` (Linear + log_softmax) is unused in forward(); not materialized.
    return p


# ---------------------------------- main -------------------------------------
if __name__ == "__main__":
    key = jax.random.PRNGKey(0)
    pkey, skey, tkey = jax.random.split(key, 3)
    params = make_params(pkey)

    src = jax.random.randint(skey, (B, L_SRC), 0, VOCAB)
    tgt = jax.random.randint(tkey, (B, L_TGT), 0, VOCAB)

    # src_mask: (B, 1, L_SRC) padding mask (last position of batch 1 is padding)
    src_mask = jnp.ones((B, 1, L_SRC), jnp.float32).at[1, 0, L_SRC - 1].set(0.0)
    # tgt_mask: (B, L_TGT, L_TGT) causal (subsequent) mask
    causal = jnp.tril(jnp.ones((L_TGT, L_TGT), jnp.float32))
    tgt_mask = jnp.broadcast_to(causal[None, :, :], (B, L_TGT, L_TGT))

    out = encoder_decoder_forward(params, src, tgt, src_mask, tgt_mask)
    out = jax.block_until_ready(out)

    assert out.shape == (B, L_TGT, D_MODEL)
    assert bool(jnp.all(jnp.isfinite(out)))
    print("KERNEL_OK")
</pallas_src>

<mosaic_0001>
module attributes {stable_mosaic.version = 11 : i64} {
  func.func @_fused_encdec_kernel(%arg0: i32, %arg1: memref<1x8x32xf32, #tpu.memory_space<vmem>>, %arg2: memref<1x8x32xf32, #tpu.memory_space<vmem>>, %arg3: memref<1x8x8xf32, #tpu.memory_space<vmem>>, %arg4: memref<1x8x8xf32, #tpu.memory_space<vmem>>, %arg5: memref<1x8x8xf32, #tpu.memory_space<vmem>>, %arg6: memref<2x32x96xf32, #tpu.memory_space<vmem>>, %arg7: memref<2x1x96xf32, #tpu.memory_space<vmem>>, %arg8: memref<2x32x32xf32, #tpu.memory_space<vmem>>, %arg9: memref<2x1x32xf32, #tpu.memory_space<vmem>>, %arg10: memref<2x32x64xf32, #tpu.memory_space<vmem>>, %arg11: memref<2x1x64xf32, #tpu.memory_space<vmem>>, %arg12: memref<2x64x32xf32, #tpu.memory_space<vmem>>, %arg13: memref<2x1x32xf32, #tpu.memory_space<vmem>>, %arg14: memref<2x4x32xf32, #tpu.memory_space<vmem>>, %arg15: memref<2x32x96xf32, #tpu.memory_space<vmem>>, %arg16: memref<2x1x96xf32, #tpu.memory_space<vmem>>, %arg17: memref<2x32x32xf32, #tpu.memory_space<vmem>>, %arg18: memref<2x1x32xf32, #tpu.memory_space<vmem>>, %arg19: memref<2x32x96xf32, #tpu.memory_space<vmem>>, %arg20: memref<2x1x96xf32, #tpu.memory_space<vmem>>, %arg21: memref<2x32x32xf32, #tpu.memory_space<vmem>>, %arg22: memref<2x1x32xf32, #tpu.memory_space<vmem>>, %arg23: memref<2x32x64xf32, #tpu.memory_space<vmem>>, %arg24: memref<2x1x64xf32, #tpu.memory_space<vmem>>, %arg25: memref<2x64x32xf32, #tpu.memory_space<vmem>>, %arg26: memref<2x1x32xf32, #tpu.memory_space<vmem>>, %arg27: memref<2x6x32xf32, #tpu.memory_space<vmem>>, %arg28: memref<2x2x32xf32, #tpu.memory_space<vmem>>, %arg29: memref<1x8x32xf32, #tpu.memory_space<vmem>>, %arg30: memref<8x32xf32, #tpu.memory_space<vmem>>) attributes {dimension_semantics = [#tpu.dimension_semantics<parallel>], iteration_bounds = array<i64: 2>, scalar_prefetch = 0 : i64, scratch_operands = 1 : i64, tpu.core_type = #tpu.core_type<tc>, window_params = [{transform_indices = @transform_0, window_bounds = array<i64: 1, 8, 32>}, {transform_indices = @transform_1, window_bounds = array<i64: 1, 8, 32>}, {transform_indices = @transform_2, window_bounds = array<i64: 1, 8, 8>}, {transform_indices = @transform_3, window_bounds = array<i64: 1, 8, 8>}, {transform_indices = @transform_4, window_bounds = array<i64: 1, 8, 8>}, {pipeline_mode = #tpu.pipeline_mode<synchronous>, transform_indices = @transform_5, window_bounds = array<i64: 2, 32, 96>}, {pipeline_mode = #tpu.pipeline_mode<synchronous>, transform_indices = @transform_6, window_bounds = array<i64: 2, 1, 96>}, {pipeline_mode = #tpu.pipeline_mode<synchronous>, transform_indices = @transform_7, window_bounds = array<i64: 2, 32, 32>}, {pipeline_mode = #tpu.pipeline_mode<synchronous>, transform_indices = @transform_8, window_bounds = array<i64: 2, 1, 32>}, {pipeline_mode = #tpu.pipeline_mode<synchronous>, transform_indices = @transform_9, window_bounds = array<i64: 2, 32, 64>}, {pipeline_mode = #tpu.pipeline_mode<synchronous>, transform_indices = @transform_10, window_bounds = array<i64: 2, 1, 64>}, {pipeline_mode = #tpu.pipeline_mode<synchronous>, transform_indices = @transform_11, window_bounds = array<i64: 2, 64, 32>}, {pipeline_mode = #tpu.pipeline_mode<synchronous>, transform_indices = @transform_12, window_bounds = array<i64: 2, 1, 32>}, {pipeline_mode = #tpu.pipeline_mode<synchronous>, transform_indices = @transform_13, window_bounds = array<i64: 2, 4, 32>}, {pipeline_mode = #tpu.pipeline_mode<synchronous>, transform_indices = @transform_14, window_bounds = array<i64: 2, 32, 96>}, {pipeline_mode = #tpu.pipeline_mode<synchronous>, transform_indices = @transform_15, window_bounds = array<i64: 2, 1, 96>}, {pipeline_mode = #tpu.pipeline_mode<synchronous>, transform_indices = @transform_16, window_bounds = array<i64: 2, 32, 32>}, {pipeline_mode = #tpu.pipeline_mode<synchronous>, transform_indices = @transform_17, window_bounds = array<i64: 2, 1, 32>}, {pipeline_mode = #tpu.pipeline_mode<synchronous>, transform_indices = @transform_18, window_bounds = array<i64: 2, 32, 96>}, {pipeline_mode = #tpu.pipeline_mode<synchronous>, transform_indices = @transform_19, window_bounds = array<i64: 2, 1, 96>}, {pipeline_mode = #tpu.pipeline_mode<synchronous>, transform_indices = @transform_20, window_bounds = array<i64: 2, 32, 32>}, {pipeline_mode = #tpu.pipeline_mode<synchronous>, transform_indices = @transform_21, window_bounds = array<i64: 2, 1, 32>}, {pipeline_mode = #tpu.pipeline_mode<synchronous>, transform_indices = @transform_22, window_bounds = array<i64: 2, 32, 64>}, {pipeline_mode = #tpu.pipeline_mode<synchronous>, transform_indices = @transform_23, window_bounds = array<i64: 2, 1, 64>}, {pipeline_mode = #tpu.pipeline_mode<synchronous>, transform_indices = @transform_24, window_bounds = array<i64: 2, 64, 32>}, {pipeline_mode = #tpu.pipeline_mode<synchronous>, transform_indices = @transform_25, window_bounds = array<i64: 2, 1, 32>}, {pipeline_mode = #tpu.pipeline_mode<synchronous>, transform_indices = @transform_26, window_bounds = array<i64: 2, 6, 32>}, {pipeline_mode = #tpu.pipeline_mode<synchronous>, transform_indices = @transform_27, window_bounds = array<i64: 2, 2, 32>}, {transform_indices = @transform_28, window_bounds = array<i64: 1, 8, 32>}]} {
    %c0 = arith.constant 0 : index
    %c0_0 = arith.constant 0 : index
    %c0_1 = arith.constant 0 : index
    %0 = vector.load %arg3[%c0, %c0_0, %c0_1] : memref<1x8x8xf32, #tpu.memory_space<vmem>>, vector<1x8x8xf32>
    %1 = vector.shape_cast %0 : vector<1x8x8xf32> to vector<8x8xf32>
    %c0_2 = arith.constant 0 : index
    %c0_3 = arith.constant 0 : index
    %c0_4 = arith.constant 0 : index
    %2 = vector.load %arg4[%c0_2, %c0_3, %c0_4] : memref<1x8x8xf32, #tpu.memory_space<vmem>>, vector<1x8x8xf32>
    %3 = vector.shape_cast %2 : vector<1x8x8xf32> to vector<8x8xf32>
    %c0_5 = arith.constant 0 : index
    %c0_6 = arith.constant 0 : index
    %c0_7 = arith.constant 0 : index
    %4 = vector.load %arg5[%c0_5, %c0_6, %c0_7] : memref<1x8x8xf32, #tpu.memory_space<vmem>>, vector<1x8x8xf32>
    %5 = vector.shape_cast %4 : vector<1x8x8xf32> to vector<8x8xf32>
    %c0_8 = arith.constant 0 : index
    %c0_9 = arith.constant 0 : index
    %c0_10 = arith.constant 0 : index
    %6 = vector.load %arg28[%c0_8, %c0_9, %c0_10] : memref<2x2x32xf32, #tpu.memory_space<vmem>>, vector<2x2x32xf32>
    %c0_11 = arith.constant 0 : index
    %c0_12 = arith.constant 0 : index
    %c0_13 = arith.constant 0 : index
    %7 = vector.load %arg1[%c0_11, %c0_12, %c0_13] : memref<1x8x32xf32, #tpu.memory_space<vmem>>, vector<1x8x32xf32>
    %8 = vector.shape_cast %7 : vector<1x8x32xf32> to vector<8x32xf32>
    %c0_14 = arith.constant 0 : index
    %c0_15 = arith.constant 0 : index
    %c0_16 = arith.constant 0 : index
    %9 = vector.load %arg14[%c0_14, %c0_15, %c0_16] : memref<2x4x32xf32, #tpu.memory_space<vmem>>, vector<1x4x32xf32>
    %10 = vector.shape_cast %9 : vector<1x4x32xf32> to vector<4x32xf32>
    %11 = vector.extract_strided_slice %10 {offsets = [0, 0], sizes = [1, 32], strides = [1, 1]} : vector<4x32xf32> to vector<1x32xf32>
    %12 = vector.extract_strided_slice %10 {offsets = [1, 0], sizes = [1, 32], strides = [1, 1]} : vector<4x32xf32> to vector<1x32xf32>
    %cst = arith.constant dense<0.000000e+00> : vector<8xf32>
    %13 = vector.multi_reduction <add>, %8, %cst [1] : vector<8x32xf32> to vector<8xf32>
    %14 = vector.shape_cast %13 : vector<8xf32> to vector<8x1xf32>
    %cst_17 = arith.constant 3.200000e+01 : f32
    %15 = vector.broadcast %cst_17 : f32 to vector<8x1xf32>
    %16 = arith.divf %14, %15 : vector<8x1xf32>
    %17 = vector.broadcast %16 : vector<8x1xf32> to vector<8x32xf32>
    %18 = arith.subf %8, %17 : vector<8x32xf32>
    %19 = arith.mulf %18, %18 : vector<8x32xf32>
    %cst_18 = arith.constant dense<0.000000e+00> : vector<8xf32>
    %20 = vector.multi_reduction <add>, %19, %cst_18 [1] : vector<8x32xf32> to vector<8xf32>
    %21 = vector.shape_cast %20 : vector<8xf32> to vector<8x1xf32>
    %cst_19 = arith.constant 3.200000e+01 : f32
    %22 = vector.broadcast %cst_19 : f32 to vector<8x1xf32>
    %23 = arith.divf %21, %22 : vector<8x1xf32>
    %24 = vector.broadcast %16 : vector<8x1xf32> to vector<8x32xf32>
    %25 = arith.subf %8, %24 : vector<8x32xf32>
    %cst_20 = arith.constant 9.99999997E-7 : f32
    %26 = vector.broadcast %cst_20 : f32 to vector<8x1xf32>
    %27 = arith.addf %23, %26 : vector<8x1xf32>
    %28 = math.rsqrt %27 : vector<8x1xf32>
    %29 = vector.broadcast %28 : vector<8x1xf32> to vector<8x32xf32>
    %30 = arith.mulf %25, %29 : vector<8x32xf32>
    %31 = vector.broadcast %11 : vector<1x32xf32> to vector<8x32xf32>
    %32 = arith.mulf %30, %31 : vector<8x32xf32>
    %33 = vector.broadcast %12 : vector<1x32xf32> to vector<8x32xf32>
    %34 = arith.addf %32, %33 : vector<8x32xf32>
    %c0_21 = arith.constant 0 : index
    %c0_22 = arith.constant 0 : index
    %c0_23 = arith.constant 0 : index
    %35 = vector.load %arg6[%c0_21, %c0_22, %c0_23] : memref<2x32x96xf32, #tpu.memory_space<vmem>>, vector<1x32x96xf32>
    %36 = vector.shape_cast %35 : vector<1x32x96xf32> to vector<32x96xf32>
    %c0_24 = arith.constant 0 : index
    %c0_25 = arith.constant 0 : index
    %c0_26 = arith.constant 0 : index
    %37 = vector.load %arg7[%c0_24, %c0_25, %c0_26] : memref<2x1x96xf32, #tpu.memory_space<vmem>>, vector<1x1x96xf32>
    %38 = vector.shape_cast %37 : vector<1x1x96xf32> to vector<1x96xf32>
    %c0_27 = arith.constant 0 : index
    %c0_28 = arith.constant 0 : index
    %c0_29 = arith.constant 0 : index
    %39 = vector.load %arg8[%c0_27, %c0_28, %c0_29] : memref<2x32x32xf32, #tpu.memory_space<vmem>>, vector<1x32x32xf32>
    %40 = vector.shape_cast %39 : vector<1x32x32xf32> to vector<32x32xf32>
    %c0_30 = arith.constant 0 : index
    %c0_31 = arith.constant 0 : index
    %c0_32 = arith.constant 0 : index
    %41 = vector.load %arg9[%c0_30, %c0_31, %c0_32] : memref<2x1x32xf32, #tpu.memory_space<vmem>>, vector<1x1x32xf32>
    %42 = vector.shape_cast %41 : vector<1x1x32xf32> to vector<1x32xf32>
    %cst_33 = arith.constant dense<0.000000e+00> : vector<8x96xf32>
    %43 = tpu.matmul %34, %36, %cst_33 {dimension_numbers = #tpu.dot_dimension_numbers<[1], [0], [0], [1], [0, 0, 1, 1], [], []>} : vector<8x32xf32>, vector<32x96xf32>, vector<8x96xf32> -> vector<8x96xf32>
    %44 = vector.broadcast %38 : vector<1x96xf32> to vector<8x96xf32>
    %45 = arith.addf %43, %44 : vector<8x96xf32>
    %46 = vector.extract_strided_slice %45 {offsets = [0, 0], sizes = [8, 32], strides = [1, 1]} : vector<8x96xf32> to vector<8x32xf32>
    %47 = vector.extract_strided_slice %45 {offsets = [0, 32], sizes = [8, 32], strides = [1, 1]} : vector<8x96xf32> to vector<8x32xf32>
    %48 = vector.extract_strided_slice %45 {offsets = [0, 64], sizes = [8, 32], strides = [1, 1]} : vector<8x96xf32> to vector<8x32xf32>
    %49 = tpu.transpose %47, [1, 0] : vector<8x32xf32> -> vector<32x8xf32>
    %50 = vector.extract_strided_slice %46 {offsets = [0, 0], sizes = [8, 8], strides = [1, 1]} : vector<8x32xf32> to vector<8x8xf32>
    %51 = vector.extract_strided_slice %49 {offsets = [0, 0], sizes = [8, 8], strides = [1, 1]} : vector<32x8xf32> to vector<8x8xf32>
    %cst_34 = arith.constant dense<0.000000e+00> : vector<8x8xf32>
    %52 = tpu.matmul %50, %51, %cst_34 {dimension_numbers = #tpu.dot_dimension_numbers<[1], [0], [0], [1], [0, 0, 1, 1], [], []>} : vector<8x8xf32>, vector<8x8xf32>, vector<8x8xf32> -> vector<8x8xf32>
    %53 = arith.addf %52, %1 : vector<8x8xf32>
    %cst_35 = arith.constant dense<0xFF800000> : vector<8xf32>
    %54 = vector.multi_reduction <maximumf>, %53, %cst_35 [1] : vector<8x8xf32> to vector<8xf32>
    %55 = vector.shape_cast %54 : vector<8xf32> to vector<8x1xf32>
    %56 = vector.broadcast %55 : vector<8x1xf32> to vector<8x8xf32>
    %57 = arith.subf %53, %56 : vector<8x8xf32>
    %58 = math.exp %57 : vector<8x8xf32>
    %cst_36 = arith.constant dense<0.000000e+00> : vector<8xf32>
    %59 = vector.multi_reduction <add>, %58, %cst_36 [1] : vector<8x8xf32> to vector<8xf32>
    %60 = vector.shape_cast %59 : vector<8xf32> to vector<8x1xf32>
    %61 = tpu.reciprocal %60 {approx = true} : vector<8x1xf32> -> vector<8x1xf32>
    %62 = vector.broadcast %61 : vector<8x1xf32> to vector<8x8xf32>
    %63 = arith.mulf %58, %62 : vector<8x8xf32>
    %64 = vector.extract_strided_slice %48 {offsets = [0, 0], sizes = [8, 8], strides = [1, 1]} : vector<8x32xf32> to vector<8x8xf32>
    %cst_37 = arith.constant dense<0.000000e+00> : vector<8x8xf32>
    %65 = tpu.matmul %63, %64, %cst_37 {dimension_numbers = #tpu.dot_dimension_numbers<[1], [0], [0], [1], [0, 0, 1, 1], [], []>} : vector<8x8xf32>, vector<8x8xf32>, vector<8x8xf32> -> vector<8x8xf32>
    %c0_38 = arith.constant 0 : index
    %c0_39 = arith.constant 0 : index
    %66 = vector.load %arg30[%c0_38, %c0_39] : memref<8x32xf32, #tpu.memory_space<vmem>>, vector<8x8xf32>
    tpu.vector_store %arg30[%c0_38, %c0_39], %65 {strides = array<i32>} : memref<8x32xf32, #tpu.memory_space<vmem>>, vector<8x8xf32>,
    %67 = vector.extract_strided_slice %46 {offsets = [0, 8], sizes = [8, 8], strides = [1, 1]} : vector<8x32xf32> to vector<8x8xf32>
    %68 = vector.extract_strided_slice %49 {offsets = [8, 0], sizes = [8, 8], strides = [1, 1]} : vector<32x8xf32> to vector<8x8xf32>
    %cst_40 = arith.constant dense<0.000000e+00> : vector<8x8xf32>
    %69 = tpu.matmul %67, %68, %cst_40 {dimension_numbers = #tpu.dot_dimension_numbers<[1], [0], [0], [1], [0, 0, 1, 1], [], []>} : vector<8x8xf32>, vector<8x8xf32>, vector<8x8xf32> -> vector<8x8xf32>
    %70 = arith.addf %69, %1 : vector<8x8xf32>
    %cst_41 = arith.constant dense<0xFF800000> : vector<8xf32>
    %71 = vector.multi_reduction <maximumf>, %70, %cst_41 [1] : vector<8x8xf32> to vector<8xf32>
    %72 = vector.shape_cast %71 : vector<8xf32> to vector<8x1xf32>
    %73 = vector.broadcast %72 : vector<8x1xf32> to vector<8x8xf32>
    %74 = arith.subf %70, %73 : vector<8x8xf32>
    %75 = math.exp %74 : vector<8x8xf32>
    %cst_42 = arith.constant dense<0.000000e+00> : vector<8xf32>
    %76 = vector.multi_reduction <add>, %75, %cst_42 [1] : vector<8x8xf32> to vector<8xf32>
    %77 = vector.shape_cast %76 : vector<8xf32> to vector<8x1xf32>
    %78 = tpu.reciprocal %77 {approx = true} : vector<8x1xf32> -> vector<8x1xf32>
    %79 = vector.broadcast %78 : vector<8x1xf32> to vector<8x8xf32>
    %80 = arith.mulf %75, %79 : vector<8x8xf32>
    %81 = vector.extract_strided_slice %48 {offsets = [0, 8], sizes = [8, 8], strides = [1, 1]} : vector<8x32xf32> to vector<8x8xf32>
    %cst_43 = arith.constant dense<0.000000e+00> : vector<8x8xf32>
    %82 = tpu.matmul %80, %81, %cst_43 {dimension_numbers = #tpu.dot_dimension_numbers<[1], [0], [0], [1], [0, 0, 1, 1], [], []>} : vector<8x8xf32>, vector<8x8xf32>, vector<8x8xf32> -> vector<8x8xf32>
    %c0_44 = arith.constant 0 : index
    %c8 = arith.constant 8 : index
    %83 = vector.load %arg30[%c0_44, %c8] : memref<8x32xf32, #tpu.memory_space<vmem>>, vector<8x8xf32>
    tpu.vector_store %arg30[%c0_44, %c8], %82 {strides = array<i32>} : memref<8x32xf32, #tpu.memory_space<vmem>>, vector<8x8xf32>,
    %84 = vector.extract_strided_slice %46 {offsets = [0, 16], sizes = [8, 8], strides = [1, 1]} : vector<8x32xf32> to vector<8x8xf32>
    %85 = vector.extract_strided_slice %49 {offsets = [16, 0], sizes = [8, 8], strides = [1, 1]} : vector<32x8xf32> to vector<8x8xf32>
    %cst_45 = arith.constant dense<0.000000e+00> : vector<8x8xf32>
    %86 = tpu.matmul %84, %85, %cst_45 {dimension_numbers = #tpu.dot_dimension_numbers<[1], [0], [0], [1], [0, 0, 1, 1], [], []>} : vector<8x8xf32>, vector<8x8xf32>, vector<8x8xf32> -> vector<8x8xf32>
    %87 = arith.addf %86, %1 : vector<8x8xf32>
    %cst_46 = arith.constant dense<0xFF800000> : vector<8xf32>
    %88 = vector.multi_reduction <maximumf>, %87, %cst_46 [1] : vector<8x8xf32> to vector<8xf32>
    %89 = vector.shape_cast %88 : vector<8xf32> to vector<8x1xf32>
    %90 = vector.broadcast %89 : vector<8x1xf32> to vector<8x8xf32>
    %91 = arith.subf %87, %90 : vector<8x8xf32>
    %92 = math.exp %91 : vector<8x8xf32>
    %cst_47 = arith.constant dense<0.000000e+00> : vector<8xf32>
    %93 = vector.multi_reduction <add>, %92, %cst_47 [1] : vector<8x8xf32> to vector<8xf32>
    %94 = vector.shape_cast %93 : vector<8xf32> to vector<8x1xf32>
    %95 = tpu.reciprocal %94 {approx = true} : vector<8x1xf32> -> vector<8x1xf32>
    %96 = vector.broadcast %95 : vector<8x1xf32> to vector<8x8xf32>
    %97 = arith.mulf %92, %96 : vector<8x8xf32>
    %98 = vector.extract_strided_slice %48 {offsets = [0, 16], sizes = [8, 8], strides = [1, 1]} : vector<8x32xf32> to vector<8x8xf32>
    %cst_48 = arith.constant dense<0.000000e+00> : vector<8x8xf32>
    %99 = tpu.matmul %97, %98, %cst_48 {dimension_numbers = #tpu.dot_dimension_numbers<[1], [0], [0], [1], [0, 0, 1, 1], [], []>} : vector<8x8xf32>, vector<8x8xf32>, vector<8x8xf32> -> vector<8x8xf32>
    %c0_49 = arith.constant 0 : index
    %c16 = arith.constant 16 : index
    %100 = vector.load %arg30[%c0_49, %c16] : memref<8x32xf32, #tpu.memory_space<vmem>>, vector<8x8xf32>
    tpu.vector_store %arg30[%c0_49, %c16], %99 {strides = array<i32>} : memref<8x32xf32, #tpu.memory_space<vmem>>, vector<8x8xf32>,
    %101 = vector.extract_strided_slice %46 {offsets = [0, 24], sizes = [8, 8], strides = [1, 1]} : vector<8x32xf32> to vector<8x8xf32>
    %102 = vector.extract_strided_slice %49 {offsets = [24, 0], sizes = [8, 8], strides = [1, 1]} : vector<32x8xf32> to vector<8x8xf32>
    %cst_50 = arith.constant dense<0.000000e+00> : vector<8x8xf32>
    %103 = tpu.matmul %101, %102, %cst_50 {dimension_numbers = #tpu.dot_dimension_numbers<[1], [0], [0], [1], [0, 0, 1, 1], [], []>} : vector<8x8xf32>, vector<8x8xf32>, vector<8x8xf32> -> vector<8x8xf32>
    %104 = arith.addf %103, %1 : vector<8x8xf32>
    %cst_51 = arith.constant dense<0xFF800000> : vector<8xf32>
    %105 = vector.multi_reduction <maximumf>, %104, %cst_51 [1] : vector<8x8xf32> to vector<8xf32>
    %106 = vector.shape_cast %105 : vector<8xf32> to vector<8x1xf32>
    %107 = vector.broadcast %106 : vector<8x1xf32> to vector<8x8xf32>
    %108 = arith.subf %104, %107 : vector<8x8xf32>
    %109 = math.exp %108 : vector<8x8xf32>
    %cst_52 = arith.constant dense<0.000000e+00> : vector<8xf32>
    %110 = vector.multi_reduction <add>, %109, %cst_52 [1] : vector<8x8xf32> to vector<8xf32>
    %111 = vector.shape_cast %110 : vector<8xf32> to vector<8x1xf32>
    %112 = tpu.reciprocal %111 {approx = true} : vector<8x1xf32> -> vector<8x1xf32>
    %113 = vector.broadcast %112 : vector<8x1xf32> to vector<8x8xf32>
    %114 = arith.mulf %109, %113 : vector<8x8xf32>
    %115 = vector.extract_strided_slice %48 {offsets = [0, 24], sizes = [8, 8], strides = [1, 1]} : vector<8x32xf32> to vector<8x8xf32>
    %cst_53 = arith.constant dense<0.000000e+00> : vector<8x8xf32>
    %116 = tpu.matmul %114, %115, %cst_53 {dimension_numbers = #tpu.dot_dimension_numbers<[1], [0], [0], [1], [0, 0, 1, 1], [], []>} : vector<8x8xf32>, vector<8x8xf32>, vector<8x8xf32> -> vector<8x8xf32>
    %c0_54 = arith.constant 0 : index
    %c24 = arith.constant 24 : index
    %117 = vector.load %arg30[%c0_54, %c24] : memref<8x32xf32, #tpu.memory_space<vmem>>, vector<8x8xf32>
    tpu.vector_store %arg30[%c0_54, %c24], %116 {strides = array<i32>} : memref<8x32xf32, #tpu.memory_space<vmem>>, vector<8x8xf32>,
    %c0_55 = arith.constant 0 : index
    %c0_56 = arith.constant 0 : index
    %118 = vector.load %arg30[%c0_55, %c0_56] : memref<8x32xf32, #tpu.memory_space<vmem>>, vector<8x32xf32>
    %cst_57 = arith.constant dense<0.000000e+00> : vector<8x32xf32>
    %119 = tpu.matmul %118, %40, %cst_57 {dimension_numbers = #tpu.dot_dimension_numbers<[1], [0], [0], [1], [0, 0, 1, 1], [], []>} : vector<8x32xf32>, vector<32x32xf32>, vector<8x32xf32> -> vector<8x32xf32>
    %120 = vector.broadcast %42 : vector<1x32xf32> to vector<8x32xf32>
    %121 = arith.addf %119, %120 : vector<8x32xf32>
    %122 = arith.addf %8, %121 : vector<8x32xf32>
    %123 = vector.extract_strided_slice %10 {offsets = [2, 0], sizes = [1, 32], strides = [1, 1]} : vector<4x32xf32> to vector<1x32xf32>
    %124 = vector.extract_strided_slice %10 {offsets = [3, 0], sizes = [1, 32], strides = [1, 1]} : vector<4x32xf32> to vector<1x32xf32>
    %cst_58 = arith.constant dense<0.000000e+00> : vector<8xf32>
    %125 = vector.multi_reduction <add>, %122, %cst_58 [1] : vector<8x32xf32> to vector<8xf32>
    %126 = vector.shape_cast %125 : vector<8xf32> to vector<8x1xf32>
    %cst_59 = arith.constant 3.200000e+01 : f32
    %127 = vector.broadcast %cst_59 : f32 to vector<8x1xf32>
    %128 = arith.divf %126, %127 : vector<8x1xf32>
    %129 = vector.broadcast %128 : vector<8x1xf32> to vector<8x32xf32>
    %130 = arith.subf %122, %129 : vector<8x32xf32>
    %131 = arith.mulf %130, %130 : vector<8x32xf32>
    %cst_60 = arith.constant dense<0.000000e+00> : vector<8xf32>
    %132 = vector.multi_reduction <add>, %131, %cst_60 [1] : vector<8x32xf32> to vector<8xf32>
    %133 = vector.shape_cast %132 : vector<8xf32> to vector<8x1xf32>
    %cst_61 = arith.constant 3.200000e+01 : f32
    %134 = vector.broadcast %cst_61 : f32 to vector<8x1xf32>
    %135 = arith.divf %133, %134 : vector<8x1xf32>
    %136 = vector.broadcast %128 : vector<8x1xf32> to vector<8x32xf32>
    %137 = arith.subf %122, %136 : vector<8x32xf32>
    %cst_62 = arith.constant 9.99999997E-7 : f32
    %138 = vector.broadcast %cst_62 : f32 to vector<8x1xf32>
    %139 = arith.addf %135, %138 : vector<8x1xf32>
    %140 = math.rsqrt %139 : vector<8x1xf32>
    %141 = vector.broadcast %140 : vector<8x1xf32> to vector<8x32xf32>
    %142 = arith.mulf %137, %141 : vector<8x32xf32>
    %143 = vector.broadcast %123 : vector<1x32xf32> to vector<8x32xf32>
    %144 = arith.mulf %142, %143 : vector<8x32xf32>
    %145 = vector.broadcast %124 : vector<1x32xf32> to vector<8x32xf32>
    %146 = arith.addf %144, %145 : vector<8x32xf32>
    %c0_63 = arith.constant 0 : index
    %c0_64 = arith.constant 0 : index
    %c0_65 = arith.constant 0 : index
    %147 = vector.load %arg10[%c0_63, %c0_64, %c0_65] : memref<2x32x64xf32, #tpu.memory_space<vmem>>, vector<1x32x64xf32>
    %148 = vector.shape_cast %147 : vector<1x32x64xf32> to vector<32x64xf32>
    %c0_66 = arith.constant 0 : index
    %c0_67 = arith.constant 0 : index
    %c0_68 = arith.constant 0 : index
    %149 = vector.load %arg11[%c0_66, %c0_67, %c0_68] : memref<2x1x64xf32, #tpu.memory_space<vmem>>, vector<1x1x64xf32>
    %150 = vector.shape_cast %149 : vector<1x1x64xf32> to vector<1x64xf32>
    %c0_69 = arith.constant 0 : index
    %c0_70 = arith.constant 0 : index
    %c0_71 = arith.constant 0 : index
    %151 = vector.load %arg12[%c0_69, %c0_70, %c0_71] : memref<2x64x32xf32, #tpu.memory_space<vmem>>, vector<1x64x32xf32>
    %152 = vector.shape_cast %151 : vector<1x64x32xf32> to vector<64x32xf32>
    %c0_72 = arith.constant 0 : index
    %c0_73 = arith.constant 0 : index
    %c0_74 = arith.constant 0 : index
    %153 = vector.load %arg13[%c0_72, %c0_73, %c0_74] : memref<2x1x32xf32, #tpu.memory_space<vmem>>, vector<1x1x32xf32>
    %154 = vector.shape_cast %153 : vector<1x1x32xf32> to vector<1x32xf32>
    %cst_75 = arith.constant dense<0.000000e+00> : vector<8x64xf32>
    %155 = tpu.matmul %146, %148, %cst_75 {dimension_numbers = #tpu.dot_dimension_numbers<[1], [0], [0], [1], [0, 0, 1, 1], [], []>} : vector<8x32xf32>, vector<32x64xf32>, vector<8x64xf32> -> vector<8x64xf32>
    %156 = vector.broadcast %150 : vector<1x64xf32> to vector<8x64xf32>
    %157 = arith.addf %155, %156 : vector<8x64xf32>
    %cst_76 = arith.constant 0.000000e+00 : f32
    %158 = vector.broadcast %cst_76 : f32 to vector<8x64xf32>
    %159 = arith.maximumf %157, %158 : vector<8x64xf32>
    %cst_77 = arith.constant dense<0.000000e+00> : vector<8x32xf32>
    %160 = tpu.matmul %159, %152, %cst_77 {dimension_numbers = #tpu.dot_dimension_numbers<[1], [0], [0], [1], [0, 0, 1, 1], [], []>} : vector<8x64xf32>, vector<64x32xf32>, vector<8x32xf32> -> vector<8x32xf32>
    %161 = vector.broadcast %154 : vector<1x32xf32> to vector<8x32xf32>
    %162 = arith.addf %160, %161 : vector<8x32xf32>
    %163 = arith.addf %122, %162 : vector<8x32xf32>
    %c1 = arith.constant 1 : index
    %c0_78 = arith.constant 0 : index
    %c0_79 = arith.constant 0 : index
    %164 = vector.load %arg14[%c1, %c0_78, %c0_79] : memref<2x4x32xf32, #tpu.memory_space<vmem>>, vector<1x4x32xf32>
    %165 = vector.shape_cast %164 : vector<1x4x32xf32> to vector<4x32xf32>
    %166 = vector.extract_strided_slice %165 {offsets = [0, 0], sizes = [1, 32], strides = [1, 1]} : vector<4x32xf32> to vector<1x32xf32>
    %167 = vector.extract_strided_slice %165 {offsets = [1, 0], sizes = [1, 32], strides = [1, 1]} : vector<4x32xf32> to vector<1x32xf32>
    %cst_80 = arith.constant dense<0.000000e+00> : vector<8xf32>
    %168 = vector.multi_reduction <add>, %163, %cst_80 [1] : vector<8x32xf32> to vector<8xf32>
    %169 = vector.shape_cast %168 : vector<8xf32> to vector<8x1xf32>
    %cst_81 = arith.constant 3.200000e+01 : f32
    %170 = vector.broadcast %cst_81 : f32 to vector<8x1xf32>
    %171 = arith.divf %169, %170 : vector<8x1xf32>
    %172 = vector.broadcast %171 : vector<8x1xf32> to vector<8x32xf32>
    %173 = arith.subf %163, %172 : vector<8x32xf32>
    %174 = arith.mulf %173, %173 : vector<8x32xf32>
    %cst_82 = arith.constant dense<0.000000e+00> : vector<8xf32>
    %175 = vector.multi_reduction <add>, %174, %cst_82 [1] : vector<8x32xf32> to vector<8xf32>
    %176 = vector.shape_cast %175 : vector<8xf32> to vector<8x1xf32>
    %cst_83 = arith.constant 3.200000e+01 : f32
    %177 = vector.broadcast %cst_83 : f32 to vector<8x1xf32>
    %178 = arith.divf %176, %177 : vector<8x1xf32>
    %179 = vector.broadcast %171 : vector<8x1xf32> to vector<8x32xf32>
    %180 = arith.subf %163, %179 : vector<8x32xf32>
    %cst_84 = arith.constant 9.99999997E-7 : f32
    %181 = vector.broadcast %cst_84 : f32 to vector<8x1xf32>
    %182 = arith.addf %178, %181 : vector<8x1xf32>
    %183 = math.rsqrt %182 : vector<8x1xf32>
    %184 = vector.broadcast %183 : vector<8x1xf32> to vector<8x32xf32>
    %185 = arith.mulf %180, %184 : vector<8x32xf32>
    %186 = vector.broadcast %166 : vector<1x32xf32> to vector<8x32xf32>
    %187 = arith.mulf %185, %186 : vector<8x32xf32>
    %188 = vector.broadcast %167 : vector<1x32xf32> to vector<8x32xf32>
    %189 = arith.addf %187, %188 : vector<8x32xf32>
    %c1_85 = arith.constant 1 : index
    %c0_86 = arith.constant 0 : index
    %c0_87 = arith.constant 0 : index
    %190 = vector.load %arg6[%c1_85, %c0_86, %c0_87] : memref<2x32x96xf32, #tpu.memory_space<vmem>>, vector<1x32x96xf32>
    %191 = vector.shape_cast %190 : vector<1x32x96xf32> to vector<32x96xf32>
    %c1_88 = arith.constant 1 : index
    %c0_89 = arith.constant 0 : index
    %c0_90 = arith.constant 0 : index
    %192 = vector.load %arg7[%c1_88, %c0_89, %c0_90] : memref<2x1x96xf32, #tpu.memory_space<vmem>>, vector<1x1x96xf32>
    %193 = vector.shape_cast %192 : vector<1x1x96xf32> to vector<1x96xf32>
    %c1_91 = arith.constant 1 : index
    %c0_92 = arith.constant 0 : index
    %c0_93 = arith.constant 0 : index
    %194 = vector.load %arg8[%c1_91, %c0_92, %c0_93] : memref<2x32x32xf32, #tpu.memory_space<vmem>>, vector<1x32x32xf32>
    %195 = vector.shape_cast %194 : vector<1x32x32xf32> to vector<32x32xf32>
    %c1_94 = arith.constant 1 : index
    %c0_95 = arith.constant 0 : index
    %c0_96 = arith.constant 0 : index
    %196 = vector.load %arg9[%c1_94, %c0_95, %c0_96] : memref<2x1x32xf32, #tpu.memory_space<vmem>>, vector<1x1x32xf32>
    %197 = vector.shape_cast %196 : vector<1x1x32xf32> to vector<1x32xf32>
    %cst_97 = arith.constant dense<0.000000e+00> : vector<8x96xf32>
    %198 = tpu.matmul %189, %191, %cst_97 {dimension_numbers = #tpu.dot_dimension_numbers<[1], [0], [0], [1], [0, 0, 1, 1], [], []>} : vector<8x32xf32>, vector<32x96xf32>, vector<8x96xf32> -> vector<8x96xf32>
    %199 = vector.broadcast %193 : vector<1x96xf32> to vector<8x96xf32>
    %200 = arith.addf %198, %199 : vector<8x96xf32>
    %201 = vector.extract_strided_slice %200 {offsets = [0, 0], sizes = [8, 32], strides = [1, 1]} : vector<8x96xf32> to vector<8x32xf32>
    %202 = vector.extract_strided_slice %200 {offsets = [0, 32], sizes = [8, 32], strides = [1, 1]} : vector<8x96xf32> to vector<8x32xf32>
    %203 = vector.extract_strided_slice %200 {offsets = [0, 64], sizes = [8, 32], strides = [1, 1]} : vector<8x96xf32> to vector<8x32xf32>
    %204 = tpu.transpose %202, [1, 0] : vector<8x32xf32> -> vector<32x8xf32>
    %205 = vector.extract_strided_slice %201 {offsets = [0, 0], sizes = [8, 8], strides = [1, 1]} : vector<8x32xf32> to vector<8x8xf32>
    %206 = vector.extract_strided_slice %204 {offsets = [0, 0], sizes = [8, 8], strides = [1, 1]} : vector<32x8xf32> to vector<8x8xf32>
    %cst_98 = arith.constant dense<0.000000e+00> : vector<8x8xf32>
    %207 = tpu.matmul %205, %206, %cst_98 {dimension_numbers = #tpu.dot_dimension_numbers<[1], [0], [0], [1], [0, 0, 1, 1], [], []>} : vector<8x8xf32>, vector<8x8xf32>, vector<8x8xf32> -> vector<8x8xf32>
    %208 = arith.addf %207, %1 : vector<8x8xf32>
    %cst_99 = arith.constant dense<0xFF800000> : vector<8xf32>
    %209 = vector.multi_reduction <maximumf>, %208, %cst_99 [1] : vector<8x8xf32> to vector<8xf32>
    %210 = vector.shape_cast %209 : vector<8xf32> to vector<8x1xf32>
    %211 = vector.broadcast %210 : vector<8x1xf32> to vector<8x8xf32>
    %212 = arith.subf %208, %211 : vector<8x8xf32>
    %213 = math.exp %212 : vector<8x8xf32>
    %cst_100 = arith.constant dense<0.000000e+00> : vector<8xf32>
    %214 = vector.multi_reduction <add>, %213, %cst_100 [1] : vector<8x8xf32> to vector<8xf32>
    %215 = vector.shape_cast %214 : vector<8xf32> to vector<8x1xf32>
    %216 = tpu.reciprocal %215 {approx = true} : vector<8x1xf32> -> vector<8x1xf32>
    %217 = vector.broadcast %216 : vector<8x1xf32> to vector<8x8xf32>
    %218 = arith.mulf %213, %217 : vector<8x8xf32>
    %219 = vector.extract_strided_slice %203 {offsets = [0, 0], sizes = [8, 8], strides = [1, 1]} : vector<8x32xf32> to vector<8x8xf32>
    %cst_101 = arith.constant dense<0.000000e+00> : vector<8x8xf32>
    %220 = tpu.matmul %218, %219, %cst_101 {dimension_numbers = #tpu.dot_dimension_numbers<[1], [0], [0], [1], [0, 0, 1, 1], [], []>} : vector<8x8xf32>, vector<8x8xf32>, vector<8x8xf32> -> vector<8x8xf32>
    %c0_102 = arith.constant 0 : index
    %c0_103 = arith.constant 0 : index
    %221 = vector.load %arg30[%c0_102, %c0_103] : memref<8x32xf32, #tpu.memory_space<vmem>>, vector<8x8xf32>
    tpu.vector_store %arg30[%c0_102, %c0_103], %220 {strides = array<i32>} : memref<8x32xf32, #tpu.memory_space<vmem>>, vector<8x8xf32>,
    %222 = vector.extract_strided_slice %201 {offsets = [0, 8], sizes = [8, 8], strides = [1, 1]} : vector<8x32xf32> to vector<8x8xf32>
    %223 = vector.extract_strided_slice %204 {offsets = [8, 0], sizes = [8, 8], strides = [1, 1]} : vector<32x8xf32> to vector<8x8xf32>
    %cst_104 = arith.constant dense<0.000000e+00> : vector<8x8xf32>
    %224 = tpu.matmul %222, %223, %cst_104 {dimension_numbers = #tpu.dot_dimension_numbers<[1], [0], [0], [1], [0, 0, 1, 1], [], []>} : vector<8x8xf32>, vector<8x8xf32>, vector<8x8xf32> -> vector<8x8xf32>
    %225 = arith.addf %224, %1 : vector<8x8xf32>
    %cst_105 = arith.constant dense<0xFF800000> : vector<8xf32>
    %226 = vector.multi_reduction <maximumf>, %225, %cst_105 [1] : vector<8x8xf32> to vector<8xf32>
    %227 = vector.shape_cast %226 : vector<8xf32> to vector<8x1xf32>
    %228 = vector.broadcast %227 : vector<8x1xf32> to vector<8x8xf32>
    %229 = arith.subf %225, %228 : vector<8x8xf32>
    %230 = math.exp %229 : vector<8x8xf32>
    %cst_106 = arith.constant dense<0.000000e+00> : vector<8xf32>
    %231 = vector.multi_reduction <add>, %230, %cst_106 [1] : vector<8x8xf32> to vector<8xf32>
    %232 = vector.shape_cast %231 : vector<8xf32> to vector<8x1xf32>
    %233 = tpu.reciprocal %232 {approx = true} : vector<8x1xf32> -> vector<8x1xf32>
    %234 = vector.broadcast %233 : vector<8x1xf32> to vector<8x8xf32>
    %235 = arith.mulf %230, %234 : vector<8x8xf32>
    %236 = vector.extract_strided_slice %203 {offsets = [0, 8], sizes = [8, 8], strides = [1, 1]} : vector<8x32xf32> to vector<8x8xf32>
    %cst_107 = arith.constant dense<0.000000e+00> : vector<8x8xf32>
    %237 = tpu.matmul %235, %236, %cst_107 {dimension_numbers = #tpu.dot_dimension_numbers<[1], [0], [0], [1], [0, 0, 1, 1], [], []>} : vector<8x8xf32>, vector<8x8xf32>, vector<8x8xf32> -> vector<8x8xf32>
    %c0_108 = arith.constant 0 : index
    %c8_109 = arith.constant 8 : index
    %238 = vector.load %arg30[%c0_108, %c8_109] : memref<8x32xf32, #tpu.memory_space<vmem>>, vector<8x8xf32>
    tpu.vector_store %arg30[%c0_108, %c8_109], %237 {strides = array<i32>} : memref<8x32xf32, #tpu.memory_space<vmem>>, vector<8x8xf32>,
    %239 = vector.extract_strided_slice %201 {offsets = [0, 16], sizes = [8, 8], strides = [1, 1]} : vector<8x32xf32> to vector<8x8xf32>
    %240 = vector.extract_strided_slice %204 {offsets = [16, 0], sizes = [8, 8], strides = [1, 1]} : vector<32x8xf32> to vector<8x8xf32>
    %cst_110 = arith.constant dense<0.000000e+00> : vector<8x8xf32>
    %241 = tpu.matmul %239, %240, %cst_110 {dimension_numbers = #tpu.dot_dimension_numbers<[1], [0], [0], [1], [0, 0, 1, 1], [], []>} : vector<8x8xf32>, vector<8x8xf32>, vector<8x8xf32> -> vector<8x8xf32>
    %242 = arith.addf %241, %1 : vector<8x8xf32>
    %cst_111 = arith.constant dense<0xFF800000> : vector<8xf32>
    %243 = vector.multi_reduction <maximumf>, %242, %cst_111 [1] : vector<8x8xf32> to vector<8xf32>
    %244 = vector.shape_cast %243 : vector<8xf32> to vector<8x1xf32>
    %245 = vector.broadcast %244 : vector<8x1xf32> to vector<8x8xf32>
    %246 = arith.subf %242, %245 : vector<8x8xf32>
    %247 = math.exp %246 : vector<8x8xf32>
    %cst_112 = arith.constant dense<0.000000e+00> : vector<8xf32>
    %248 = vector.multi_reduction <add>, %247, %cst_112 [1] : vector<8x8xf32> to vector<8xf32>
    %249 = vector.shape_cast %248 : vector<8xf32> to vector<8x1xf32>
    %250 = tpu.reciprocal %249 {approx = true} : vector<8x1xf32> -> vector<8x1xf32>
    %251 = vector.broadcast %250 : vector<8x1xf32> to vector<8x8xf32>
    %252 = arith.mulf %247, %251 : vector<8x8xf32>
    %253 = vector.extract_strided_slice %203 {offsets = [0, 16], sizes = [8, 8], strides = [1, 1]} : vector<8x32xf32> to vector<8x8xf32>
    %cst_113 = arith.constant dense<0.000000e+00> : vector<8x8xf32>
    %254 = tpu.matmul %252, %253, %cst_113 {dimension_numbers = #tpu.dot_dimension_numbers<[1], [0], [0], [1], [0, 0, 1, 1], [], []>} : vector<8x8xf32>, vector<8x8xf32>, vector<8x8xf32> -> vector<8x8xf32>
    %c0_114 = arith.constant 0 : index
    %c16_115 = arith.constant 16 : index
    %255 = vector.load %arg30[%c0_114, %c16_115] : memref<8x32xf32, #tpu.memory_space<vmem>>, vector<8x8xf32>
    tpu.vector_store %arg30[%c0_114, %c16_115], %254 {strides = array<i32>} : memref<8x32xf32, #tpu.memory_space<vmem>>, vector<8x8xf32>,
    %256 = vector.extract_strided_slice %201 {offsets = [0, 24], sizes = [8, 8], strides = [1, 1]} : vector<8x32xf32> to vector<8x8xf32>
    %257 = vector.extract_strided_slice %204 {offsets = [24, 0], sizes = [8, 8], strides = [1, 1]} : vector<32x8xf32> to vector<8x8xf32>
    %cst_116 = arith.constant dense<0.000000e+00> : vector<8x8xf32>
    %258 = tpu.matmul %256, %257, %cst_116 {dimension_numbers = #tpu.dot_dimension_numbers<[1], [0], [0], [1], [0, 0, 1, 1], [], []>} : vector<8x8xf32>, vector<8x8xf32>, vector<8x8xf32> -> vector<8x8xf32>
    %259 = arith.addf %258, %1 : vector<8x8xf32>
    %cst_117 = arith.constant dense<0xFF800000> : vector<8xf32>
    %260 = vector.multi_reduction <maximumf>, %259, %cst_117 [1] : vector<8x8xf32> to vector<8xf32>
    %261 = vector.shape_cast %260 : vector<8xf32> to vector<8x1xf32>
    %262 = vector.broadcast %261 : vector<8x1xf32> to vector<8x8xf32>
    %263 = arith.subf %259, %262 : vector<8x8xf32>
    %264 = math.exp %263 : vector<8x8xf32>
    %cst_118 = arith.constant dense<0.000000e+00> : vector<8xf32>
    %265 = vector.multi_reduction <add>, %264, %cst_118 [1] : vector<8x8xf32> to vector<8xf32>
    %266 = vector.shape_cast %265 : vector<8xf32> to vector<8x1xf32>
    %267 = tpu.reciprocal %266 {approx = true} : vector<8x1xf32> -> vector<8x1xf32>
    %268 = vector.broadcast %267 : vector<8x1xf32> to vector<8x8xf32>
    %269 = arith.mulf %264, %268 : vector<8x8xf32>
    %270 = vector.extract_strided_slice %203 {offsets = [0, 24], sizes = [8, 8], strides = [1, 1]} : vector<8x32xf32> to vector<8x8xf32>
    %cst_119 = arith.constant dense<0.000000e+00> : vector<8x8xf32>
    %271 = tpu.matmul %269, %270, %cst_119 {dimension_numbers = #tpu.dot_dimension_numbers<[1], [0], [0], [1], [0, 0, 1, 1], [], []>} : vector<8x8xf32>, vector<8x8xf32>, vector<8x8xf32> -> vector<8x8xf32>
    %c0_120 = arith.constant 0 : index
    %c24_121 = arith.constant 24 : index
    %272 = vector.load %arg30[%c0_120, %c24_121] : memref<8x32xf32, #tpu.memory_space<vmem>>, vector<8x8xf32>
    tpu.vector_store %arg30[%c0_120, %c24_121], %271 {strides = array<i32>} : memref<8x32xf32, #tpu.memory_space<vmem>>, vector<8x8xf32>,
    %c0_122 = arith.constant 0 : index
    %c0_123 = arith.constant 0 : index
    %273 = vector.load %arg30[%c0_122, %c0_123] : memref<8x32xf32, #tpu.memory_space<vmem>>, vector<8x32xf32>
    %cst_124 = arith.constant dense<0.000000e+00> : vector<8x32xf32>
    %274 = tpu.matmul %273, %195, %cst_124 {dimension_numbers = #tpu.dot_dimension_numbers<[1], [0], [0], [1], [0, 0, 1, 1], [], []>} : vector<8x32xf32>, vector<32x32xf32>, vector<8x32xf32> -> vector<8x32xf32>
    %275 = vector.broadcast %197 : vector<1x32xf32> to vector<8x32xf32>
    %276 = arith.addf %274, %275 : vector<8x32xf32>
    %277 = arith.addf %163, %276 : vector<8x32xf32>
    %278 = vector.extract_strided_slice %165 {offsets = [2, 0], sizes = [1, 32], strides = [1, 1]} : vector<4x32xf32> to vector<1x32xf32>
    %279 = vector.extract_strided_slice %165 {offsets = [3, 0], sizes = [1, 32], strides = [1, 1]} : vector<4x32xf32> to vector<1x32xf32>
    %cst_125 = arith.constant dense<0.000000e+00> : vector<8xf32>
    %280 = vector.multi_reduction <add>, %277, %cst_125 [1] : vector<8x32xf32> to vector<8xf32>
    %281 = vector.shape_cast %280 : vector<8xf32> to vector<8x1xf32>
    %cst_126 = arith.constant 3.200000e+01 : f32
    %282 = vector.broadcast %cst_126 : f32 to vector<8x1xf32>
    %283 = arith.divf %281, %282 : vector<8x1xf32>
    %284 = vector.broadcast %283 : vector<8x1xf32> to vector<8x32xf32>
    %285 = arith.subf %277, %284 : vector<8x32xf32>
    %286 = arith.mulf %285, %285 : vector<8x32xf32>
    %cst_127 = arith.constant dense<0.000000e+00> : vector<8xf32>
    %287 = vector.multi_reduction <add>, %286, %cst_127 [1] : vector<8x32xf32> to vector<8xf32>
    %288 = vector.shape_cast %287 : vector<8xf32> to vector<8x1xf32>
    %cst_128 = arith.constant 3.200000e+01 : f32
    %289 = vector.broadcast %cst_128 : f32 to vector<8x1xf32>
    %290 = arith.divf %288, %289 : vector<8x1xf32>
    %291 = vector.broadcast %283 : vector<8x1xf32> to vector<8x32xf32>
    %292 = arith.subf %277, %291 : vector<8x32xf32>
    %cst_129 = arith.constant 9.99999997E-7 : f32
    %293 = vector.broadcast %cst_129 : f32 to vector<8x1xf32>
    %294 = arith.addf %290, %293 : vector<8x1xf32>
    %295 = math.rsqrt %294 : vector<8x1xf32>
    %296 = vector.broadcast %295 : vector<8x1xf32> to vector<8x32xf32>
    %297 = arith.mulf %292, %296 : vector<8x32xf32>
    %298 = vector.broadcast %278 : vector<1x32xf32> to vector<8x32xf32>
    %299 = arith.mulf %297, %298 : vector<8x32xf32>
    %300 = vector.broadcast %279 : vector<1x32xf32> to vector<8x32xf32>
    %301 = arith.addf %299, %300 : vector<8x32xf32>
    %c1_130 = arith.constant 1 : index
    %c0_131 = arith.constant 0 : index
    %c0_132 = arith.constant 0 : index
    %302 = vector.load %arg10[%c1_130, %c0_131, %c0_132] : memref<2x32x64xf32, #tpu.memory_space<vmem>>, vector<1x32x64xf32>
    %303 = vector.shape_cast %302 : vector<1x32x64xf32> to vector<32x64xf32>
    %c1_133 = arith.constant 1 : index
    %c0_134 = arith.constant 0 : index
    %c0_135 = arith.constant 0 : index
    %304 = vector.load %arg11[%c1_133, %c0_134, %c0_135] : memref<2x1x64xf32, #tpu.memory_space<vmem>>, vector<1x1x64xf32>
    %305 = vector.shape_cast %304 : vector<1x1x64xf32> to vector<1x64xf32>
    %c1_136 = arith.constant 1 : index
    %c0_137 = arith.constant 0 : index
    %c0_138 = arith.constant 0 : index
    %306 = vector.load %arg12[%c1_136, %c0_137, %c0_138] : memref<2x64x32xf32, #tpu.memory_space<vmem>>, vector<1x64x32xf32>
    %307 = vector.shape_cast %306 : vector<1x64x32xf32> to vector<64x32xf32>
    %c1_139 = arith.constant 1 : index
    %c0_140 = arith.constant 0 : index
    %c0_141 = arith.constant 0 : index
    %308 = vector.load %arg13[%c1_139, %c0_140, %c0_141] : memref<2x1x32xf32, #tpu.memory_space<vmem>>, vector<1x1x32xf32>
    %309 = vector.shape_cast %308 : vector<1x1x32xf32> to vector<1x32xf32>
    %cst_142 = arith.constant dense<0.000000e+00> : vector<8x64xf32>
    %310 = tpu.matmul %301, %303, %cst_142 {dimension_numbers = #tpu.dot_dimension_numbers<[1], [0], [0], [1], [0, 0, 1, 1], [], []>} : vector<8x32xf32>, vector<32x64xf32>, vector<8x64xf32> -> vector<8x64xf32>
    %311 = vector.broadcast %305 : vector<1x64xf32> to vector<8x64xf32>
    %312 = arith.addf %310, %311 : vector<8x64xf32>
    %cst_143 = arith.constant 0.000000e+00 : f32
    %313 = vector.broadcast %cst_143 : f32 to vector<8x64xf32>
    %314 = arith.maximumf %312, %313 : vector<8x64xf32>
    %cst_144 = arith.constant dense<0.000000e+00> : vector<8x32xf32>
    %315 = tpu.matmul %314, %307, %cst_144 {dimension_numbers = #tpu.dot_dimension_numbers<[1], [0], [0], [1], [0, 0, 1, 1], [], []>} : vector<8x64xf32>, vector<64x32xf32>, vector<8x32xf32> -> vector<8x32xf32>
    %316 = vector.broadcast %309 : vector<1x32xf32> to vector<8x32xf32>
    %317 = arith.addf %315, %316 : vector<8x32xf32>
    %318 = arith.addf %277, %317 : vector<8x32xf32>
    %319 = vector.extract_strided_slice %6 {offsets = [0, 0, 0], sizes = [1, 1, 32], strides = [1, 1, 1]} : vector<2x2x32xf32> to vector<1x1x32xf32>
    %320 = vector.shape_cast %319 : vector<1x1x32xf32> to vector<1x32xf32>
    %321 = vector.extract_strided_slice %6 {offsets = [0, 1, 0], sizes = [1, 1, 32], strides = [1, 1, 1]} : vector<2x2x32xf32> to vector<1x1x32xf32>
    %322 = vector.shape_cast %321 : vector<1x1x32xf32> to vector<1x32xf32>
    %cst_145 = arith.constant dense<0.000000e+00> : vector<8xf32>
    %323 = vector.multi_reduction <add>, %318, %cst_145 [1] : vector<8x32xf32> to vector<8xf32>
    %324 = vector.shape_cast %323 : vector<8xf32> to vector<8x1xf32>
    %cst_146 = arith.constant 3.200000e+01 : f32
    %325 = vector.broadcast %cst_146 : f32 to vector<8x1xf32>
    %326 = arith.divf %324, %325 : vector<8x1xf32>
    %327 = vector.broadcast %326 : vector<8x1xf32> to vector<8x32xf32>
    %328 = arith.subf %318, %327 : vector<8x32xf32>
    %329 = arith.mulf %328, %328 : vector<8x32xf32>
    %cst_147 = arith.constant dense<0.000000e+00> : vector<8xf32>
    %330 = vector.multi_reduction <add>, %329, %cst_147 [1] : vector<8x32xf32> to vector<8xf32>
    %331 = vector.shape_cast %330 : vector<8xf32> to vector<8x1xf32>
    %cst_148 = arith.constant 3.200000e+01 : f32
    %332 = vector.broadcast %cst_148 : f32 to vector<8x1xf32>
    %333 = arith.divf %331, %332 : vector<8x1xf32>
    %334 = vector.broadcast %326 : vector<8x1xf32> to vector<8x32xf32>
    %335 = arith.subf %318, %334 : vector<8x32xf32>
    %cst_149 = arith.constant 9.99999997E-7 : f32
    %336 = vector.broadcast %cst_149 : f32 to vector<8x1xf32>
    %337 = arith.addf %333, %336 : vector<8x1xf32>
    %338 = math.rsqrt %337 : vector<8x1xf32>
    %339 = vector.broadcast %338 : vector<8x1xf32> to vector<8x32xf32>
    %340 = arith.mulf %335, %339 : vector<8x32xf32>
    %341 = vector.broadcast %320 : vector<1x32xf32> to vector<8x32xf32>
    %342 = arith.mulf %340, %341 : vector<8x32xf32>
    %343 = vector.broadcast %322 : vector<1x32xf32> to vector<8x32xf32>
    %344 = arith.addf %342, %343 : vector<8x32xf32>
    %c0_150 = arith.constant 0 : index
    %c0_151 = arith.constant 0 : index
    %c0_152 = arith.constant 0 : index
    %345 = vector.load %arg2[%c0_150, %c0_151, %c0_152] : memref<1x8x32xf32, #tpu.memory_space<vmem>>, vector<1x8x32xf32>
    %346 = vector.shape_cast %345 : vector<1x8x32xf32> to vector<8x32xf32>
    %c0_153 = arith.constant 0 : index
    %c0_154 = arith.constant 0 : index
    %c0_155 = arith.constant 0 : index
    %347 = vector.load %arg27[%c0_153, %c0_154, %c0_155] : memref<2x6x32xf32, #tpu.memory_space<vmem>>, vector<1x6x32xf32>
    %348 = vector.shape_cast %347 : vector<1x6x32xf32> to vector<6x32xf32>
    %349 = vector.extract_strided_slice %348 {offsets = [0, 0], sizes = [1, 32], strides = [1, 1]} : vector<6x32xf32> to vector<1x32xf32>
    %350 = vector.extract_strided_slice %348 {offsets = [1, 0], sizes = [1, 32], strides = [1, 1]} : vector<6x32xf32> to vector<1x32xf32>
    %cst_156 = arith.constant dense<0.000000e+00> : vector<8xf32>
    %351 = vector.multi_reduction <add>, %346, %cst_156 [1] : vector<8x32xf32> to vector<8xf32>
    %352 = vector.shape_cast %351 : vector<8xf32> to vector<8x1xf32>
    %cst_157 = arith.constant 3.200000e+01 : f32
    %353 = vector.broadcast %cst_157 : f32 to vector<8x1xf32>
    %354 = arith.divf %352, %353 : vector<8x1xf32>
    %355 = vector.broadcast %354 : vector<8x1xf32> to vector<8x32xf32>
    %356 = arith.subf %346, %355 : vector<8x32xf32>
    %357 = arith.mulf %356, %356 : vector<8x32xf32>
    %cst_158 = arith.constant dense<0.000000e+00> : vector<8xf32>
    %358 = vector.multi_reduction <add>, %357, %cst_158 [1] : vector<8x32xf32> to vector<8xf32>
    %359 = vector.shape_cast %358 : vector<8xf32> to vector<8x1xf32>
    %cst_159 = arith.constant 3.200000e+01 : f32
    %360 = vector.broadcast %cst_159 : f32 to vector<8x1xf32>
    %361 = arith.divf %359, %360 : vector<8x1xf32>
    %362 = vector.broadcast %354 : vector<8x1xf32> to vector<8x32xf32>
    %363 = arith.subf %346, %362 : vector<8x32xf32>
    %cst_160 = arith.constant 9.99999997E-7 : f32
    %364 = vector.broadcast %cst_160 : f32 to vector<8x1xf32>
    %365 = arith.addf %361, %364 : vector<8x1xf32>
    %366 = math.rsqrt %365 : vector<8x1xf32>
    %367 = vector.broadcast %366 : vector<8x1xf32> to vector<8x32xf32>
    %368 = arith.mulf %363, %367 : vector<8x32xf32>
    %369 = vector.broadcast %349 : vector<1x32xf32> to vector<8x32xf32>
    %370 = arith.mulf %368, %369 : vector<8x32xf32>
    %371 = vector.broadcast %350 : vector<1x32xf32> to vector<8x32xf32>
    %372 = arith.addf %370, %371 : vector<8x32xf32>
    %c0_161 = arith.constant 0 : index
    %c0_162 = arith.constant 0 : index
    %c0_163 = arith.constant 0 : index
    %373 = vector.load %arg15[%c0_161, %c0_162, %c0_163] : memref<2x32x96xf32, #tpu.memory_space<vmem>>, vector<1x32x96xf32>
    %374 = vector.shape_cast %373 : vector<1x32x96xf32> to vector<32x96xf32>
    %c0_164 = arith.constant 0 : index
    %c0_165 = arith.constant 0 : index
    %c0_166 = arith.constant 0 : index
    %375 = vector.load %arg16[%c0_164, %c0_165, %c0_166] : memref<2x1x96xf32, #tpu.memory_space<vmem>>, vector<1x1x96xf32>
    %376 = vector.shape_cast %375 : vector<1x1x96xf32> to vector<1x96xf32>
    %c0_167 = arith.constant 0 : index
    %c0_168 = arith.constant 0 : index
    %c0_169 = arith.constant 0 : index
    %377 = vector.load %arg17[%c0_167, %c0_168, %c0_169] : memref<2x32x32xf32, #tpu.memory_space<vmem>>, vector<1x32x32xf32>
    %378 = vector.shape_cast %377 : vector<1x32x32xf32> to vector<32x32xf32>
    %c0_170 = arith.constant 0 : index
    %c0_171 = arith.constant 0 : index
    %c0_172 = arith.constant 0 : index
    %379 = vector.load %arg18[%c0_170, %c0_171, %c0_172] : memref<2x1x32xf32, #tpu.memory_space<vmem>>, vector<1x1x32xf32>
    %380 = vector.shape_cast %379 : vector<1x1x32xf32> to vector<1x32xf32>
    %cst_173 = arith.constant dense<0.000000e+00> : vector<8x96xf32>
    %381 = tpu.matmul %372, %374, %cst_173 {dimension_numbers = #tpu.dot_dimension_numbers<[1], [0], [0], [1], [0, 0, 1, 1], [], []>} : vector<8x32xf32>, vector<32x96xf32>, vector<8x96xf32> -> vector<8x96xf32>
    %382 = vector.broadcast %376 : vector<1x96xf32> to vector<8x96xf32>
    %383 = arith.addf %381, %382 : vector<8x96xf32>
    %384 = vector.extract_strided_slice %383 {offsets = [0, 0], sizes = [8, 32], strides = [1, 1]} : vector<8x96xf32> to vector<8x32xf32>
    %385 = vector.extract_strided_slice %383 {offsets = [0, 32], sizes = [8, 32], strides = [1, 1]} : vector<8x96xf32> to vector<8x32xf32>
    %386 = vector.extract_strided_slice %383 {offsets = [0, 64], sizes = [8, 32], strides = [1, 1]} : vector<8x96xf32> to vector<8x32xf32>
    %387 = tpu.transpose %385, [1, 0] : vector<8x32xf32> -> vector<32x8xf32>
    %388 = vector.extract_strided_slice %384 {offsets = [0, 0], sizes = [8, 8], strides = [1, 1]} : vector<8x32xf32> to vector<8x8xf32>
    %389 = vector.extract_strided_slice %387 {offsets = [0, 0], sizes = [8, 8], strides = [1, 1]} : vector<32x8xf32> to vector<8x8xf32>
    %cst_174 = arith.constant dense<0.000000e+00> : vector<8x8xf32>
    %390 = tpu.matmul %388, %389, %cst_174 {dimension_numbers = #tpu.dot_dimension_numbers<[1], [0], [0], [1], [0, 0, 1, 1], [], []>} : vector<8x8xf32>, vector<8x8xf32>, vector<8x8xf32> -> vector<8x8xf32>
    %391 = arith.addf %390, %3 : vector<8x8xf32>
    %cst_175 = arith.constant dense<0xFF800000> : vector<8xf32>
    %392 = vector.multi_reduction <maximumf>, %391, %cst_175 [1] : vector<8x8xf32> to vector<8xf32>
    %393 = vector.shape_cast %392 : vector<8xf32> to vector<8x1xf32>
    %394 = vector.broadcast %393 : vector<8x1xf32> to vector<8x8xf32>
    %395 = arith.subf %391, %394 : vector<8x8xf32>
    %396 = math.exp %395 : vector<8x8xf32>
    %cst_176 = arith.constant dense<0.000000e+00> : vector<8xf32>
    %397 = vector.multi_reduction <add>, %396, %cst_176 [1] : vector<8x8xf32> to vector<8xf32>
    %398 = vector.shape_cast %397 : vector<8xf32> to vector<8x1xf32>
    %399 = tpu.reciprocal %398 {approx = true} : vector<8x1xf32> -> vector<8x1xf32>
    %400 = vector.broadcast %399 : vector<8x1xf32> to vector<8x8xf32>
    %401 = arith.mulf %396, %400 : vector<8x8xf32>
    %402 = vector.extract_strided_slice %386 {offsets = [0, 0], sizes = [8, 8], strides = [1, 1]} : vector<8x32xf32> to vector<8x8xf32>
    %cst_177 = arith.constant dense<0.000000e+00> : vector<8x8xf32>
    %403 = tpu.matmul %401, %402, %cst_177 {dimension_numbers = #tpu.dot_dimension_numbers<[1], [0], [0], [1], [0, 0, 1, 1], [], []>} : vector<8x8xf32>, vector<8x8xf32>, vector<8x8xf32> -> vector<8x8xf32>
    %c0_178 = arith.constant 0 : index
    %c0_179 = arith.constant 0 : index
    %404 = vector.load %arg30[%c0_178, %c0_179] : memref<8x32xf32, #tpu.memory_space<vmem>>, vector<8x8xf32>
    tpu.vector_store %arg30[%c0_178, %c0_179], %403 {strides = array<i32>} : memref<8x32xf32, #tpu.memory_space<vmem>>, vector<8x8xf32>,
    %405 = vector.extract_strided_slice %384 {offsets = [0, 8], sizes = [8, 8], strides = [1, 1]} : vector<8x32xf32> to vector<8x8xf32>
    %406 = vector.extract_strided_slice %387 {offsets = [8, 0], sizes = [8, 8], strides = [1, 1]} : vector<32x8xf32> to vector<8x8xf32>
    %cst_180 = arith.constant dense<0.000000e+00> : vector<8x8xf32>
    %407 = tpu.matmul %405, %406, %cst_180 {dimension_numbers = #tpu.dot_dimension_numbers<[1], [0], [0], [1], [0, 0, 1, 1], [], []>} : vector<8x8xf32>, vector<8x8xf32>, vector<8x8xf32> -> vector<8x8xf32>
    %408 = arith.addf %407, %3 : vector<8x8xf32>
    %cst_181 = arith.constant dense<0xFF800000> : vector<8xf32>
    %409 = vector.multi_reduction <maximumf>, %408, %cst_181 [1] : vector<8x8xf32> to vector<8xf32>
    %410 = vector.shape_cast %409 : vector<8xf32> to vector<8x1xf32>
    %411 = vector.broadcast %410 : vector<8x1xf32> to vector<8x8xf32>
    %412 = arith.subf %408, %411 : vector<8x8xf32>
    %413 = math.exp %412 : vector<8x8xf32>
    %cst_182 = arith.constant dense<0.000000e+00> : vector<8xf32>
    %414 = vector.multi_reduction <add>, %413, %cst_182 [1] : vector<8x8xf32> to vector<8xf32>
    %415 = vector.shape_cast %414 : vector<8xf32> to vector<8x1xf32>
    %416 = tpu.reciprocal %415 {approx = true} : vector<8x1xf32> -> vector<8x1xf32>
    %417 = vector.broadcast %416 : vector<8x1xf32> to vector<8x8xf32>
    %418 = arith.mulf %413, %417 : vector<8x8xf32>
    %419 = vector.extract_strided_slice %386 {offsets = [0, 8], sizes = [8, 8], strides = [1, 1]} : vector<8x32xf32> to vector<8x8xf32>
    %cst_183 = arith.constant dense<0.000000e+00> : vector<8x8xf32>
    %420 = tpu.matmul %418, %419, %cst_183 {dimension_numbers = #tpu.dot_dimension_numbers<[1], [0], [0], [1], [0, 0, 1, 1], [], []>} : vector<8x8xf32>, vector<8x8xf32>, vector<8x8xf32> -> vector<8x8xf32>
    %c0_184 = arith.constant 0 : index
    %c8_185 = arith.constant 8 : index
    %421 = vector.load %arg30[%c0_184, %c8_185] : memref<8x32xf32, #tpu.memory_space<vmem>>, vector<8x8xf32>
    tpu.vector_store %arg30[%c0_184, %c8_185], %420 {strides = array<i32>} : memref<8x32xf32, #tpu.memory_space<vmem>>, vector<8x8xf32>,
    %422 = vector.extract_strided_slice %384 {offsets = [0, 16], sizes = [8, 8], strides = [1, 1]} : vector<8x32xf32> to vector<8x8xf32>
    %423 = vector.extract_strided_slice %387 {offsets = [16, 0], sizes = [8, 8], strides = [1, 1]} : vector<32x8xf32> to vector<8x8xf32>
    %cst_186 = arith.constant dense<0.000000e+00> : vector<8x8xf32>
    %424 = tpu.matmul %422, %423, %cst_186 {dimension_numbers = #tpu.dot_dimension_numbers<[1], [0], [0], [1], [0, 0, 1, 1], [], []>} : vector<8x8xf32>, vector<8x8xf32>, vector<8x8xf32> -> vector<8x8xf32>
    %425 = arith.addf %424, %3 : vector<8x8xf32>
    %cst_187 = arith.constant dense<0xFF800000> : vector<8xf32>
    %426 = vector.multi_reduction <maximumf>, %425, %cst_187 [1] : vector<8x8xf32> to vector<8xf32>
    %427 = vector.shape_cast %426 : vector<8xf32> to vector<8x1xf32>
    %428 = vector.broadcast %427 : vector<8x1xf32> to vector<8x8xf32>
    %429 = arith.subf %425, %428 : vector<8x8xf32>
    %430 = math.exp %429 : vector<8x8xf32>
    %cst_188 = arith.constant dense<0.000000e+00> : vector<8xf32>
    %431 = vector.multi_reduction <add>, %430, %cst_188 [1] : vector<8x8xf32> to vector<8xf32>
    %432 = vector.shape_cast %431 : vector<8xf32> to vector<8x1xf32>
    %433 = tpu.reciprocal %432 {approx = true} : vector<8x1xf32> -> vector<8x1xf32>
    %434 = vector.broadcast %433 : vector<8x1xf32> to vector<8x8xf32>
    %435 = arith.mulf %430, %434 : vector<8x8xf32>
    %436 = vector.extract_strided_slice %386 {offsets = [0, 16], sizes = [8, 8], strides = [1, 1]} : vector<8x32xf32> to vector<8x8xf32>
    %cst_189 = arith.constant dense<0.000000e+00> : vector<8x8xf32>
    %437 = tpu.matmul %435, %436, %cst_189 {dimension_numbers = #tpu.dot_dimension_numbers<[1], [0], [0], [1], [0, 0, 1, 1], [], []>} : vector<8x8xf32>, vector<8x8xf32>, vector<8x8xf32> -> vector<8x8xf32>
    %c0_190 = arith.constant 0 : index
    %c16_191 = arith.constant 16 : index
    %438 = vector.load %arg30[%c0_190, %c16_191] : memref<8x32xf32, #tpu.memory_space<vmem>>, vector<8x8xf32>
    tpu.vector_store %arg30[%c0_190, %c16_191], %437 {strides = array<i32>} : memref<8x32xf32, #tpu.memory_space<vmem>>, vector<8x8xf32>,
    %439 = vector.extract_strided_slice %384 {offsets = [0, 24], sizes = [8, 8], strides = [1, 1]} : vector<8x32xf32> to vector<8x8xf32>
    %440 = vector.extract_strided_slice %387 {offsets = [24, 0], sizes = [8, 8], strides = [1, 1]} : vector<32x8xf32> to vector<8x8xf32>
    %cst_192 = arith.constant dense<0.000000e+00> : vector<8x8xf32>
    %441 = tpu.matmul %439, %440, %cst_192 {dimension_numbers = #tpu.dot_dimension_numbers<[1], [0], [0], [1], [0, 0, 1, 1], [], []>} : vector<8x8xf32>, vector<8x8xf32>, vector<8x8xf32> -> vector<8x8xf32>
    %442 = arith.addf %441, %3 : vector<8x8xf32>
    %cst_193 = arith.constant dense<0xFF800000> : vector<8xf32>
    %443 = vector.multi_reduction <maximumf>, %442, %cst_193 [1] : vector<8x8xf32> to vector<8xf32>
    %444 = vector.shape_cast %443 : vector<8xf32> to vector<8x1xf32>
    %445 = vector.broadcast %444 : vector<8x1xf32> to vector<8x8xf32>
    %446 = arith.subf %442, %445 : vector<8x8xf32>
    %447 = math.exp %446 : vector<8x8xf32>
    %cst_194 = arith.constant dense<0.000000e+00> : vector<8xf32>
    %448 = vector.multi_reduction <add>, %447, %cst_194 [1] : vector<8x8xf32> to vector<8xf32>
    %449 = vector.shape_cast %448 : vector<8xf32> to vector<8x1xf32>
    %450 = tpu.reciprocal %449 {approx = true} : vector<8x1xf32> -> vector<8x1xf32>
    %451 = vector.broadcast %450 : vector<8x1xf32> to vector<8x8xf32>
    %452 = arith.mulf %447, %451 : vector<8x8xf32>
    %453 = vector.extract_strided_slice %386 {offsets = [0, 24], sizes = [8, 8], strides = [1, 1]} : vector<8x32xf32> to vector<8x8xf32>
    %cst_195 = arith.constant dense<0.000000e+00> : vector<8x8xf32>
    %454 = tpu.matmul %452, %453, %cst_195 {dimension_numbers = #tpu.dot_dimension_numbers<[1], [0], [0], [1], [0, 0, 1, 1], [], []>} : vector<8x8xf32>, vector<8x8xf32>, vector<8x8xf32> -> vector<8x8xf32>
    %c0_196 = arith.constant 0 : index
    %c24_197 = arith.constant 24 : index
    %455 = vector.load %arg30[%c0_196, %c24_197] : memref<8x32xf32, #tpu.memory_space<vmem>>, vector<8x8xf32>
    tpu.vector_store %arg30[%c0_196, %c24_197], %454 {strides = array<i32>} : memref<8x32xf32, #tpu.memory_space<vmem>>, vector<8x8xf32>,
    %c0_198 = arith.constant 0 : index
    %c0_199 = arith.constant 0 : index
    %456 = vector.load %arg30[%c0_198, %c0_199] : memref<8x32xf32, #tpu.memory_space<vmem>>, vector<8x32xf32>
    %cst_200 = arith.constant dense<0.000000e+00> : vector<8x32xf32>
    %457 = tpu.matmul %456, %378, %cst_200 {dimension_numbers = #tpu.dot_dimension_numbers<[1], [0], [0], [1], [0, 0, 1, 1], [], []>} : vector<8x32xf32>, vector<32x32xf32>, vector<8x32xf32> -> vector<8x32xf32>
    %458 = vector.broadcast %380 : vector<1x32xf32> to vector<8x32xf32>
    %459 = arith.addf %457, %458 : vector<8x32xf32>
    %460 = arith.addf %346, %459 : vector<8x32xf32>
    %461 = vector.extract_strided_slice %348 {offsets = [2, 0], sizes = [1, 32], strides = [1, 1]} : vector<6x32xf32> to vector<1x32xf32>
    %462 = vector.extract_strided_slice %348 {offsets = [3, 0], sizes = [1, 32], strides = [1, 1]} : vector<6x32xf32> to vector<1x32xf32>
    %cst_201 = arith.constant dense<0.000000e+00> : vector<8xf32>
    %463 = vector.multi_reduction <add>, %460, %cst_201 [1] : vector<8x32xf32> to vector<8xf32>
    %464 = vector.shape_cast %463 : vector<8xf32> to vector<8x1xf32>
    %cst_202 = arith.constant 3.200000e+01 : f32
    %465 = vector.broadcast %cst_202 : f32 to vector<8x1xf32>
    %466 = arith.divf %464, %465 : vector<8x1xf32>
    %467 = vector.broadcast %466 : vector<8x1xf32> to vector<8x32xf32>
    %468 = arith.subf %460, %467 : vector<8x32xf32>
    %469 = arith.mulf %468, %468 : vector<8x32xf32>
    %cst_203 = arith.constant dense<0.000000e+00> : vector<8xf32>
    %470 = vector.multi_reduction <add>, %469, %cst_203 [1] : vector<8x32xf32> to vector<8xf32>
    %471 = vector.shape_cast %470 : vector<8xf32> to vector<8x1xf32>
    %cst_204 = arith.constant 3.200000e+01 : f32
    %472 = vector.broadcast %cst_204 : f32 to vector<8x1xf32>
    %473 = arith.divf %471, %472 : vector<8x1xf32>
    %474 = vector.broadcast %466 : vector<8x1xf32> to vector<8x32xf32>
    %475 = arith.subf %460, %474 : vector<8x32xf32>
    %cst_205 = arith.constant 9.99999997E-7 : f32
    %476 = vector.broadcast %cst_205 : f32 to vector<8x1xf32>
    %477 = arith.addf %473, %476 : vector<8x1xf32>
    %478 = math.rsqrt %477 : vector<8x1xf32>
    %479 = vector.broadcast %478 : vector<8x1xf32> to vector<8x32xf32>
    %480 = arith.mulf %475, %479 : vector<8x32xf32>
    %481 = vector.broadcast %461 : vector<1x32xf32> to vector<8x32xf32>
    %482 = arith.mulf %480, %481 : vector<8x32xf32>
    %483 = vector.broadcast %462 : vector<1x32xf32> to vector<8x32xf32>
    %484 = arith.addf %482, %483 : vector<8x32xf32>
    %c0_206 = arith.constant 0 : index
    %c0_207 = arith.constant 0 : index
    %c0_208 = arith.constant 0 : index
    %485 = vector.load %arg19[%c0_206, %c0_207, %c0_208] : memref<2x32x96xf32, #tpu.memory_space<vmem>>, vector<1x32x96xf32>
    %486 = vector.shape_cast %485 : vector<1x32x96xf32> to vector<32x96xf32>
    %c0_209 = arith.constant 0 : index
    %c0_210 = arith.constant 0 : index
    %c0_211 = arith.constant 0 : index
    %487 = vector.load %arg20[%c0_209, %c0_210, %c0_211] : memref<2x1x96xf32, #tpu.memory_space<vmem>>, vector<1x1x96xf32>
    %488 = vector.shape_cast %487 : vector<1x1x96xf32> to vector<1x96xf32>
    %c0_212 = arith.constant 0 : index
    %c0_213 = arith.constant 0 : index
    %c0_214 = arith.constant 0 : index
    %489 = vector.load %arg21[%c0_212, %c0_213, %c0_214] : memref<2x32x32xf32, #tpu.memory_space<vmem>>, vector<1x32x32xf32>
    %490 = vector.shape_cast %489 : vector<1x32x32xf32> to vector<32x32xf32>
    %c0_215 = arith.constant 0 : index
    %c0_216 = arith.constant 0 : index
    %c0_217 = arith.constant 0 : index
    %491 = vector.load %arg22[%c0_215, %c0_216, %c0_217] : memref<2x1x32xf32, #tpu.memory_space<vmem>>, vector<1x1x32xf32>
    %492 = vector.shape_cast %491 : vector<1x1x32xf32> to vector<1x32xf32>
    %493 = vector.extract_strided_slice %486 {offsets = [0, 0], sizes = [32, 32], strides = [1, 1]} : vector<32x96xf32> to vector<32x32xf32>
    %cst_218 = arith.constant dense<0.000000e+00> : vector<8x32xf32>
    %494 = tpu.matmul %484, %493, %cst_218 {dimension_numbers = #tpu.dot_dimension_numbers<[1], [0], [0], [1], [0, 0, 1, 1], [], []>} : vector<8x32xf32>, vector<32x32xf32>, vector<8x32xf32> -> vector<8x32xf32>
    %495 = vector.extract_strided_slice %488 {offsets = [0, 0], sizes = [1, 32], strides = [1, 1]} : vector<1x96xf32> to vector<1x32xf32>
    %496 = vector.broadcast %495 : vector<1x32xf32> to vector<8x32xf32>
    %497 = arith.addf %494, %496 : vector<8x32xf32>
    %498 = vector.extract_strided_slice %486 {offsets = [0, 32], sizes = [32, 64], strides = [1, 1]} : vector<32x96xf32> to vector<32x64xf32>
    %cst_219 = arith.constant dense<0.000000e+00> : vector<8x64xf32>
    %499 = tpu.matmul %344, %498, %cst_219 {dimension_numbers = #tpu.dot_dimension_numbers<[1], [0], [0], [1], [0, 0, 1, 1], [], []>} : vector<8x32xf32>, vector<32x64xf32>, vector<8x64xf32> -> vector<8x64xf32>
    %500 = vector.extract_strided_slice %488 {offsets = [0, 32], sizes = [1, 64], strides = [1, 1]} : vector<1x96xf32> to vector<1x64xf32>
    %501 = vector.broadcast %500 : vector<1x64xf32> to vector<8x64xf32>
    %502 = arith.addf %499, %501 : vector<8x64xf32>
    %503 = vector.extract_strided_slice %502 {offsets = [0, 0], sizes = [8, 32], strides = [1, 1]} : vector<8x64xf32> to vector<8x32xf32>
    %504 = vector.extract_strided_slice %502 {offsets = [0, 32], sizes = [8, 32], strides = [1, 1]} : vector<8x64xf32> to vector<8x32xf32>
    %505 = tpu.transpose %503, [1, 0] : vector<8x32xf32> -> vector<32x8xf32>
    %506 = vector.extract_strided_slice %497 {offsets = [0, 0], sizes = [8, 8], strides = [1, 1]} : vector<8x32xf32> to vector<8x8xf32>
    %507 = vector.extract_strided_slice %505 {offsets = [0, 0], sizes = [8, 8], strides = [1, 1]} : vector<32x8xf32> to vector<8x8xf32>
    %cst_220 = arith.constant dense<0.000000e+00> : vector<8x8xf32>
    %508 = tpu.matmul %506, %507, %cst_220 {dimension_numbers = #tpu.dot_dimension_numbers<[1], [0], [0], [1], [0, 0, 1, 1], [], []>} : vector<8x8xf32>, vector<8x8xf32>, vector<8x8xf32> -> vector<8x8xf32>
    %509 = arith.addf %508, %5 : vector<8x8xf32>
    %cst_221 = arith.constant dense<0xFF800000> : vector<8xf32>
    %510 = vector.multi_reduction <maximumf>, %509, %cst_221 [1] : vector<8x8xf32> to vector<8xf32>
    %511 = vector.shape_cast %510 : vector<8xf32> to vector<8x1xf32>
    %512 = vector.broadcast %511 : vector<8x1xf32> to vector<8x8xf32>
    %513 = arith.subf %509, %512 : vector<8x8xf32>
    %514 = math.exp %513 : vector<8x8xf32>
    %cst_222 = arith.constant dense<0.000000e+00> : vector<8xf32>
    %515 = vector.multi_reduction <add>, %514, %cst_222 [1] : vector<8x8xf32> to vector<8xf32>
    %516 = vector.shape_cast %515 : vector<8xf32> to vector<8x1xf32>
    %517 = tpu.reciprocal %516 {approx = true} : vector<8x1xf32> -> vector<8x1xf32>
    %518 = vector.broadcast %517 : vector<8x1xf32> to vector<8x8xf32>
    %519 = arith.mulf %514, %518 : vector<8x8xf32>
    %520 = vector.extract_strided_slice %504 {offsets = [0, 0], sizes = [8, 8], strides = [1, 1]} : vector<8x32xf32> to vector<8x8xf32>
    %cst_223 = arith.constant dense<0.000000e+00> : vector<8x8xf32>
    %521 = tpu.matmul %519, %520, %cst_223 {dimension_numbers = #tpu.dot_dimension_numbers<[1], [0], [0], [1], [0, 0, 1, 1], [], []>} : vector<8x8xf32>, vector<8x8xf32>, vector<8x8xf32> -> vector<8x8xf32>
    %c0_224 = arith.constant 0 : index
    %c0_225 = arith.constant 0 : index
    %522 = vector.load %arg30[%c0_224, %c0_225] : memref<8x32xf32, #tpu.memory_space<vmem>>, vector<8x8xf32>
    tpu.vector_store %arg30[%c0_224, %c0_225], %521 {strides = array<i32>} : memref<8x32xf32, #tpu.memory_space<vmem>>, vector<8x8xf32>,
    %523 = vector.extract_strided_slice %497 {offsets = [0, 8], sizes = [8, 8], strides = [1, 1]} : vector<8x32xf32> to vector<8x8xf32>
    %524 = vector.extract_strided_slice %505 {offsets = [8, 0], sizes = [8, 8], strides = [1, 1]} : vector<32x8xf32> to vector<8x8xf32>
    %cst_226 = arith.constant dense<0.000000e+00> : vector<8x8xf32>
    %525 = tpu.matmul %523, %524, %cst_226 {dimension_numbers = #tpu.dot_dimension_numbers<[1], [0], [0], [1], [0, 0, 1, 1], [], []>} : vector<8x8xf32>, vector<8x8xf32>, vector<8x8xf32> -> vector<8x8xf32>
    %526 = arith.addf %525, %5 : vector<8x8xf32>
    %cst_227 = arith.constant dense<0xFF800000> : vector<8xf32>
    %527 = vector.multi_reduction <maximumf>, %526, %cst_227 [1] : vector<8x8xf32> to vector<8xf32>
    %528 = vector.shape_cast %527 : vector<8xf32> to vector<8x1xf32>
    %529 = vector.broadcast %528 : vector<8x1xf32> to vector<8x8xf32>
    %530 = arith.subf %526, %529 : vector<8x8xf32>
    %531 = math.exp %530 : vector<8x8xf32>
    %cst_228 = arith.constant dense<0.000000e+00> : vector<8xf32>
    %532 = vector.multi_reduction <add>, %531, %cst_228 [1] : vector<8x8xf32> to vector<8xf32>
    %533 = vector.shape_cast %532 : vector<8xf32> to vector<8x1xf32>
    %534 = tpu.reciprocal %533 {approx = true} : vector<8x1xf32> -> vector<8x1xf32>
    %535 = vector.broadcast %534 : vector<8x1xf32> to vector<8x8xf32>
    %536 = arith.mulf %531, %535 : vector<8x8xf32>
    %537 = vector.extract_strided_slice %504 {offsets = [0, 8], sizes = [8, 8], strides = [1, 1]} : vector<8x32xf32> to vector<8x8xf32>
    %cst_229 = arith.constant dense<0.000000e+00> : vector<8x8xf32>
    %538 = tpu.matmul %536, %537, %cst_229 {dimension_numbers = #tpu.dot_dimension_numbers<[1], [0], [0], [1], [0, 0, 1, 1], [], []>} : vector<8x8xf32>, vector<8x8xf32>, vector<8x8xf32> -> vector<8x8xf32>
    %c0_230 = arith.constant 0 : index
    %c8_231 = arith.constant 8 : index
    %539 = vector.load %arg30[%c0_230, %c8_231] : memref<8x32xf32, #tpu.memory_space<vmem>>, vector<8x8xf32>
    tpu.vector_store %arg30[%c0_230, %c8_231], %538 {strides = array<i32>} : memref<8x32xf32, #tpu.memory_space<vmem>>, vector<8x8xf32>,
    %540 = vector.extract_strided_slice %497 {offsets = [0, 16], sizes = [8, 8], strides = [1, 1]} : vector<8x32xf32> to vector<8x8xf32>
    %541 = vector.extract_strided_slice %505 {offsets = [16, 0], sizes = [8, 8], strides = [1, 1]} : vector<32x8xf32> to vector<8x8xf32>
    %cst_232 = arith.constant dense<0.000000e+00> : vector<8x8xf32>
    %542 = tpu.matmul %540, %541, %cst_232 {dimension_numbers = #tpu.dot_dimension_numbers<[1], [0], [0], [1], [0, 0, 1, 1], [], []>} : vector<8x8xf32>, vector<8x8xf32>, vector<8x8xf32> -> vector<8x8xf32>
    %543 = arith.addf %542, %5 : vector<8x8xf32>
    %cst_233 = arith.constant dense<0xFF800000> : vector<8xf32>
    %544 = vector.multi_reduction <maximumf>, %543, %cst_233 [1] : vector<8x8xf32> to vector<8xf32>
    %545 = vector.shape_cast %544 : vector<8xf32> to vector<8x1xf32>
    %546 = vector.broadcast %545 : vector<8x1xf32> to vector<8x8xf32>
    %547 = arith.subf %543, %546 : vector<8x8xf32>
    %548 = math.exp %547 : vector<8x8xf32>
    %cst_234 = arith.constant dense<0.000000e+00> : vector<8xf32>
    %549 = vector.multi_reduction <add>, %548, %cst_234 [1] : vector<8x8xf32> to vector<8xf32>
    %550 = vector.shape_cast %549 : vector<8xf32> to vector<8x1xf32>
    %551 = tpu.reciprocal %550 {approx = true} : vector<8x1xf32> -> vector<8x1xf32>
    %552 = vector.broadcast %551 : vector<8x1xf32> to vector<8x8xf32>
    %553 = arith.mulf %548, %552 : vector<8x8xf32>
    %554 = vector.extract_strided_slice %504 {offsets = [0, 16], sizes = [8, 8], strides = [1, 1]} : vector<8x32xf32> to vector<8x8xf32>
    %cst_235 = arith.constant dense<0.000000e+00> : vector<8x8xf32>
    %555 = tpu.matmul %553, %554, %cst_235 {dimension_numbers = #tpu.dot_dimension_numbers<[1], [0], [0], [1], [0, 0, 1, 1], [], []>} : vector<8x8xf32>, vector<8x8xf32>, vector<8x8xf32> -> vector<8x8xf32>
    %c0_236 = arith.constant 0 : index
    %c16_237 = arith.constant 16 : index
    %556 = vector.load %arg30[%c0_236, %c16_237] : memref<8x32xf32, #tpu.memory_space<vmem>>, vector<8x8xf32>
    tpu.vector_store %arg30[%c0_236, %c16_237], %555 {strides = array<i32>} : memref<8x32xf32, #tpu.memory_space<vmem>>, vector<8x8xf32>,
    %557 = vector.extract_strided_slice %497 {offsets = [0, 24], sizes = [8, 8], strides = [1, 1]} : vector<8x32xf32> to vector<8x8xf32>
    %558 = vector.extract_strided_slice %505 {offsets = [24, 0], sizes = [8, 8], strides = [1, 1]} : vector<32x8xf32> to vector<8x8xf32>
    %cst_238 = arith.constant dense<0.000000e+00> : vector<8x8xf32>
    %559 = tpu.matmul %557, %558, %cst_238 {dimension_numbers = #tpu.dot_dimension_numbers<[1], [0], [0], [1], [0, 0, 1, 1], [], []>} : vector<8x8xf32>, vector<8x8xf32>, vector<8x8xf32> -> vector<8x8xf32>
    %560 = arith.addf %559, %5 : vector<8x8xf32>
    %cst_239 = arith.constant dense<0xFF800000> : vector<8xf32>
    %561 = vector.multi_reduction <maximumf>, %560, %cst_239 [1] : vector<8x8xf32> to vector<8xf32>
    %562 = vector.shape_cast %561 : vector<8xf32> to vector<8x1xf32>
    %563 = vector.broadcast %562 : vector<8x1xf32> to vector<8x8xf32>
    %564 = arith.subf %560, %563 : vector<8x8xf32>
    %565 = math.exp %564 : vector<8x8xf32>
    %cst_240 = arith.constant dense<0.000000e+00> : vector<8xf32>
    %566 = vector.multi_reduction <add>, %565, %cst_240 [1] : vector<8x8xf32> to vector<8xf32>
    %567 = vector.shape_cast %566 : vector<8xf32> to vector<8x1xf32>
    %568 = tpu.reciprocal %567 {approx = true} : vector<8x1xf32> -> vector<8x1xf32>
    %569 = vector.broadcast %568 : vector<8x1xf32> to vector<8x8xf32>
    %570 = arith.mulf %565, %569 : vector<8x8xf32>
    %571 = vector.extract_strided_slice %504 {offsets = [0, 24], sizes = [8, 8], strides = [1, 1]} : vector<8x32xf32> to vector<8x8xf32>
    %cst_241 = arith.constant dense<0.000000e+00> : vector<8x8xf32>
    %572 = tpu.matmul %570, %571, %cst_241 {dimension_numbers = #tpu.dot_dimension_numbers<[1], [0], [0], [1], [0, 0, 1, 1], [], []>} : vector<8x8xf32>, vector<8x8xf32>, vector<8x8xf32> -> vector<8x8xf32>
    %c0_242 = arith.constant 0 : index
    %c24_243 = arith.constant 24 : index
    %573 = vector.load %arg30[%c0_242, %c24_243] : memref<8x32xf32, #tpu.memory_space<vmem>>, vector<8x8xf32>
    tpu.vector_store %arg30[%c0_242, %c24_243], %572 {strides = array<i32>} : memref<8x32xf32, #tpu.memory_space<vmem>>, vector<8x8xf32>,
    %c0_244 = arith.constant 0 : index
    %c0_245 = arith.constant 0 : index
    %574 = vector.load %arg30[%c0_244, %c0_245] : memref<8x32xf32, #tpu.memory_space<vmem>>, vector<8x32xf32>
    %cst_246 = arith.constant dense<0.000000e+00> : vector<8x32xf32>
    %575 = tpu.matmul %574, %490, %cst_246 {dimension_numbers = #tpu.dot_dimension_numbers<[1], [0], [0], [1], [0, 0, 1, 1], [], []>} : vector<8x32xf32>, vector<32x32xf32>, vector<8x32xf32> -> vector<8x32xf32>
    %576 = vector.broadcast %492 : vector<1x32xf32> to vector<8x32xf32>
    %577 = arith.addf %575, %576 : vector<8x32xf32>
    %578 = arith.addf %460, %577 : vector<8x32xf32>
    %579 = vector.extract_strided_slice %348 {offsets = [4, 0], sizes = [1, 32], strides = [1, 1]} : vector<6x32xf32> to vector<1x32xf32>
    %580 = vector.extract_strided_slice %348 {offsets = [5, 0], sizes = [1, 32], strides = [1, 1]} : vector<6x32xf32> to vector<1x32xf32>
    %cst_247 = arith.constant dense<0.000000e+00> : vector<8xf32>
    %581 = vector.multi_reduction <add>, %578, %cst_247 [1] : vector<8x32xf32> to vector<8xf32>
    %582 = vector.shape_cast %581 : vector<8xf32> to vector<8x1xf32>
    %cst_248 = arith.constant 3.200000e+01 : f32
    %583 = vector.broadcast %cst_248 : f32 to vector<8x1xf32>
    %584 = arith.divf %582, %583 : vector<8x1xf32>
    %585 = vector.broadcast %584 : vector<8x1xf32> to vector<8x32xf32>
    %586 = arith.subf %578, %585 : vector<8x32xf32>
    %587 = arith.mulf %586, %586 : vector<8x32xf32>
    %cst_249 = arith.constant dense<0.000000e+00> : vector<8xf32>
    %588 = vector.multi_reduction <add>, %587, %cst_249 [1] : vector<8x32xf32> to vector<8xf32>
    %589 = vector.shape_cast %588 : vector<8xf32> to vector<8x1xf32>
    %cst_250 = arith.constant 3.200000e+01 : f32
    %590 = vector.broadcast %cst_250 : f32 to vector<8x1xf32>
    %591 = arith.divf %589, %590 : vector<8x1xf32>
    %592 = vector.broadcast %584 : vector<8x1xf32> to vector<8x32xf32>
    %593 = arith.subf %578, %592 : vector<8x32xf32>
    %cst_251 = arith.constant 9.99999997E-7 : f32
    %594 = vector.broadcast %cst_251 : f32 to vector<8x1xf32>
    %595 = arith.addf %591, %594 : vector<8x1xf32>
    %596 = math.rsqrt %595 : vector<8x1xf32>
    %597 = vector.broadcast %596 : vector<8x1xf32> to vector<8x32xf32>
    %598 = arith.mulf %593, %597 : vector<8x32xf32>
    %599 = vector.broadcast %579 : vector<1x32xf32> to vector<8x32xf32>
    %600 = arith.mulf %598, %599 : vector<8x32xf32>
    %601 = vector.broadcast %580 : vector<1x32xf32> to vector<8x32xf32>
    %602 = arith.addf %600, %601 : vector<8x32xf32>
    %c0_252 = arith.constant 0 : index
    %c0_253 = arith.constant 0 : index
    %c0_254 = arith.constant 0 : index
    %603 = vector.load %arg23[%c0_252, %c0_253, %c0_254] : memref<2x32x64xf32, #tpu.memory_space<vmem>>, vector<1x32x64xf32>
    %604 = vector.shape_cast %603 : vector<1x32x64xf32> to vector<32x64xf32>
    %c0_255 = arith.constant 0 : index
    %c0_256 = arith.constant 0 : index
    %c0_257 = arith.constant 0 : index
    %605 = vector.load %arg24[%c0_255, %c0_256, %c0_257] : memref<2x1x64xf32, #tpu.memory_space<vmem>>, vector<1x1x64xf32>
    %606 = vector.shape_cast %605 : vector<1x1x64xf32> to vector<1x64xf32>
    %c0_258 = arith.constant 0 : index
    %c0_259 = arith.constant 0 : index
    %c0_260 = arith.constant 0 : index
    %607 = vector.load %arg25[%c0_258, %c0_259, %c0_260] : memref<2x64x32xf32, #tpu.memory_space<vmem>>, vector<1x64x32xf32>
    %608 = vector.shape_cast %607 : vector<1x64x32xf32> to vector<64x32xf32>
    %c0_261 = arith.constant 0 : index
    %c0_262 = arith.constant 0 : index
    %c0_263 = arith.constant 0 : index
    %609 = vector.load %arg26[%c0_261, %c0_262, %c0_263] : memref<2x1x32xf32, #tpu.memory_space<vmem>>, vector<1x1x32xf32>
    %610 = vector.shape_cast %609 : vector<1x1x32xf32> to vector<1x32xf32>
    %cst_264 = arith.constant dense<0.000000e+00> : vector<8x64xf32>
    %611 = tpu.matmul %602, %604, %cst_264 {dimension_numbers = #tpu.dot_dimension_numbers<[1], [0], [0], [1], [0, 0, 1, 1], [], []>} : vector<8x32xf32>, vector<32x64xf32>, vector<8x64xf32> -> vector<8x64xf32>
    %612 = vector.broadcast %606 : vector<1x64xf32> to vector<8x64xf32>
    %613 = arith.addf %611, %612 : vector<8x64xf32>
    %cst_265 = arith.constant 0.000000e+00 : f32
    %614 = vector.broadcast %cst_265 : f32 to vector<8x64xf32>
    %615 = arith.maximumf %613, %614 : vector<8x64xf32>
    %cst_266 = arith.constant dense<0.000000e+00> : vector<8x32xf32>
    %616 = tpu.matmul %615, %608, %cst_266 {dimension_numbers = #tpu.dot_dimension_numbers<[1], [0], [0], [1], [0, 0, 1, 1], [], []>} : vector<8x64xf32>, vector<64x32xf32>, vector<8x32xf32> -> vector<8x32xf32>
    %617 = vector.broadcast %610 : vector<1x32xf32> to vector<8x32xf32>
    %618 = arith.addf %616, %617 : vector<8x32xf32>
    %619 = arith.addf %578, %618 : vector<8x32xf32>
    %c1_267 = arith.constant 1 : index
    %c0_268 = arith.constant 0 : index
    %c0_269 = arith.constant 0 : index
    %620 = vector.load %arg27[%c1_267, %c0_268, %c0_269] : memref<2x6x32xf32, #tpu.memory_space<vmem>>, vector<1x6x32xf32>
    %621 = vector.shape_cast %620 : vector<1x6x32xf32> to vector<6x32xf32>
    %622 = vector.extract_strided_slice %621 {offsets = [0, 0], sizes = [1, 32], strides = [1, 1]} : vector<6x32xf32> to vector<1x32xf32>
    %623 = vector.extract_strided_slice %621 {offsets = [1, 0], sizes = [1, 32], strides = [1, 1]} : vector<6x32xf32> to vector<1x32xf32>
    %cst_270 = arith.constant dense<0.000000e+00> : vector<8xf32>
    %624 = vector.multi_reduction <add>, %619, %cst_270 [1] : vector<8x32xf32> to vector<8xf32>
    %625 = vector.shape_cast %624 : vector<8xf32> to vector<8x1xf32>
    %cst_271 = arith.constant 3.200000e+01 : f32
    %626 = vector.broadcast %cst_271 : f32 to vector<8x1xf32>
    %627 = arith.divf %625, %626 : vector<8x1xf32>
    %628 = vector.broadcast %627 : vector<8x1xf32> to vector<8x32xf32>
    %629 = arith.subf %619, %628 : vector<8x32xf32>
    %630 = arith.mulf %629, %629 : vector<8x32xf32>
    %cst_272 = arith.constant dense<0.000000e+00> : vector<8xf32>
    %631 = vector.multi_reduction <add>, %630, %cst_272 [1] : vector<8x32xf32> to vector<8xf32>
    %632 = vector.shape_cast %631 : vector<8xf32> to vector<8x1xf32>
    %cst_273 = arith.constant 3.200000e+01 : f32
    %633 = vector.broadcast %cst_273 : f32 to vector<8x1xf32>
    %634 = arith.divf %632, %633 : vector<8x1xf32>
    %635 = vector.broadcast %627 : vector<8x1xf32> to vector<8x32xf32>
    %636 = arith.subf %619, %635 : vector<8x32xf32>
    %cst_274 = arith.constant 9.99999997E-7 : f32
    %637 = vector.broadcast %cst_274 : f32 to vector<8x1xf32>
    %638 = arith.addf %634, %637 : vector<8x1xf32>
    %639 = math.rsqrt %638 : vector<8x1xf32>
    %640 = vector.broadcast %639 : vector<8x1xf32> to vector<8x32xf32>
    %641 = arith.mulf %636, %640 : vector<8x32xf32>
    %642 = vector.broadcast %622 : vector<1x32xf32> to vector<8x32xf32>
    %643 = arith.mulf %641, %642 : vector<8x32xf32>
    %644 = vector.broadcast %623 : vector<1x32xf32> to vector<8x32xf32>
    %645 = arith.addf %643, %644 : vector<8x32xf32>
    %c1_275 = arith.constant 1 : index
    %c0_276 = arith.constant 0 : index
    %c0_277 = arith.constant 0 : index
    %646 = vector.load %arg15[%c1_275, %c0_276, %c0_277] : memref<2x32x96xf32, #tpu.memory_space<vmem>>, vector<1x32x96xf32>
    %647 = vector.shape_cast %646 : vector<1x32x96xf32> to vector<32x96xf32>
    %c1_278 = arith.constant 1 : index
    %c0_279 = arith.constant 0 : index
    %c0_280 = arith.constant 0 : index
    %648 = vector.load %arg16[%c1_278, %c0_279, %c0_280] : memref<2x1x96xf32, #tpu.memory_space<vmem>>, vector<1x1x96xf32>
    %649 = vector.shape_cast %648 : vector<1x1x96xf32> to vector<1x96xf32>
    %c1_281 = arith.constant 1 : index
    %c0_282 = arith.constant 0 : index
    %c0_283 = arith.constant 0 : index
    %650 = vector.load %arg17[%c1_281, %c0_282, %c0_283] : memref<2x32x32xf32, #tpu.memory_space<vmem>>, vector<1x32x32xf32>
    %651 = vector.shape_cast %650 : vector<1x32x32xf32> to vector<32x32xf32>
    %c1_284 = arith.constant 1 : index
    %c0_285 = arith.constant 0 : index
    %c0_286 = arith.constant 0 : index
    %652 = vector.load %arg18[%c1_284, %c0_285, %c0_286] : memref<2x1x32xf32, #tpu.memory_space<vmem>>, vector<1x1x32xf32>
    %653 = vector.shape_cast %652 : vector<1x1x32xf32> to vector<1x32xf32>
    %cst_287 = arith.constant dense<0.000000e+00> : vector<8x96xf32>
    %654 = tpu.matmul %645, %647, %cst_287 {dimension_numbers = #tpu.dot_dimension_numbers<[1], [0], [0], [1], [0, 0, 1, 1], [], []>} : vector<8x32xf32>, vector<32x96xf32>, vector<8x96xf32> -> vector<8x96xf32>
    %655 = vector.broadcast %649 : vector<1x96xf32> to vector<8x96xf32>
    %656 = arith.addf %654, %655 : vector<8x96xf32>
    %657 = vector.extract_strided_slice %656 {offsets = [0, 0], sizes = [8, 32], strides = [1, 1]} : vector<8x96xf32> to vector<8x32xf32>
    %658 = vector.extract_strided_slice %656 {offsets = [0, 32], sizes = [8, 32], strides = [1, 1]} : vector<8x96xf32> to vector<8x32xf32>
    %659 = vector.extract_strided_slice %656 {offsets = [0, 64], sizes = [8, 32], strides = [1, 1]} : vector<8x96xf32> to vector<8x32xf32>
    %660 = tpu.transpose %658, [1, 0] : vector<8x32xf32> -> vector<32x8xf32>
    %661 = vector.extract_strided_slice %657 {offsets = [0, 0], sizes = [8, 8], strides = [1, 1]} : vector<8x32xf32> to vector<8x8xf32>
    %662 = vector.extract_strided_slice %660 {offsets = [0, 0], sizes = [8, 8], strides = [1, 1]} : vector<32x8xf32> to vector<8x8xf32>
    %cst_288 = arith.constant dense<0.000000e+00> : vector<8x8xf32>
    %663 = tpu.matmul %661, %662, %cst_288 {dimension_numbers = #tpu.dot_dimension_numbers<[1], [0], [0], [1], [0, 0, 1, 1], [], []>} : vector<8x8xf32>, vector<8x8xf32>, vector<8x8xf32> -> vector<8x8xf32>
    %664 = arith.addf %663, %3 : vector<8x8xf32>
    %cst_289 = arith.constant dense<0xFF800000> : vector<8xf32>
    %665 = vector.multi_reduction <maximumf>, %664, %cst_289 [1] : vector<8x8xf32> to vector<8xf32>
    %666 = vector.shape_cast %665 : vector<8xf32> to vector<8x1xf32>
    %667 = vector.broadcast %666 : vector<8x1xf32> to vector<8x8xf32>
    %668 = arith.subf %664, %667 : vector<8x8xf32>
    %669 = math.exp %668 : vector<8x8xf32>
    %cst_290 = arith.constant dense<0.000000e+00> : vector<8xf32>
    %670 = vector.multi_reduction <add>, %669, %cst_290 [1] : vector<8x8xf32> to vector<8xf32>
    %671 = vector.shape_cast %670 : vector<8xf32> to vector<8x1xf32>
    %672 = tpu.reciprocal %671 {approx = true} : vector<8x1xf32> -> vector<8x1xf32>
    %673 = vector.broadcast %672 : vector<8x1xf32> to vector<8x8xf32>
    %674 = arith.mulf %669, %673 : vector<8x8xf32>
    %675 = vector.extract_strided_slice %659 {offsets = [0, 0], sizes = [8, 8], strides = [1, 1]} : vector<8x32xf32> to vector<8x8xf32>
    %cst_291 = arith.constant dense<0.000000e+00> : vector<8x8xf32>
    %676 = tpu.matmul %674, %675, %cst_291 {dimension_numbers = #tpu.dot_dimension_numbers<[1], [0], [0], [1], [0, 0, 1, 1], [], []>} : vector<8x8xf32>, vector<8x8xf32>, vector<8x8xf32> -> vector<8x8xf32>
    %c0_292 = arith.constant 0 : index
    %c0_293 = arith.constant 0 : index
    %677 = vector.load %arg30[%c0_292, %c0_293] : memref<8x32xf32, #tpu.memory_space<vmem>>, vector<8x8xf32>
    tpu.vector_store %arg30[%c0_292, %c0_293], %676 {strides = array<i32>} : memref<8x32xf32, #tpu.memory_space<vmem>>, vector<8x8xf32>,
    %678 = vector.extract_strided_slice %657 {offsets = [0, 8], sizes = [8, 8], strides = [1, 1]} : vector<8x32xf32> to vector<8x8xf32>
    %679 = vector.extract_strided_slice %660 {offsets = [8, 0], sizes = [8, 8], strides = [1, 1]} : vector<32x8xf32> to vector<8x8xf32>
    %cst_294 = arith.constant dense<0.000000e+00> : vector<8x8xf32>
    %680 = tpu.matmul %678, %679, %cst_294 {dimension_numbers = #tpu.dot_dimension_numbers<[1], [0], [0], [1], [0, 0, 1, 1], [], []>} : vector<8x8xf32>, vector<8x8xf32>, vector<8x8xf32> -> vector<8x8xf32>
    %681 = arith.addf %680, %3 : vector<8x8xf32>
    %cst_295 = arith.constant dense<0xFF800000> : vector<8xf32>
    %682 = vector.multi_reduction <maximumf>, %681, %cst_295 [1] : vector<8x8xf32> to vector<8xf32>
    %683 = vector.shape_cast %682 : vector<8xf32> to vector<8x1xf32>
    %684 = vector.broadcast %683 : vector<8x1xf32> to vector<8x8xf32>
    %685 = arith.subf %681, %684 : vector<8x8xf32>
    %686 = math.exp %685 : vector<8x8xf32>
    %cst_296 = arith.constant dense<0.000000e+00> : vector<8xf32>
    %687 = vector.multi_reduction <add>, %686, %cst_296 [1] : vector<8x8xf32> to vector<8xf32>
    %688 = vector.shape_cast %687 : vector<8xf32> to vector<8x1xf32>
    %689 = tpu.reciprocal %688 {approx = true} : vector<8x1xf32> -> vector<8x1xf32>
    %690 = vector.broadcast %689 : vector<8x1xf32> to vector<8x8xf32>
    %691 = arith.mulf %686, %690 : vector<8x8xf32>
    %692 = vector.extract_strided_slice %659 {offsets = [0, 8], sizes = [8, 8], strides = [1, 1]} : vector<8x32xf32> to vector<8x8xf32>
    %cst_297 = arith.constant dense<0.000000e+00> : vector<8x8xf32>
    %693 = tpu.matmul %691, %692, %cst_297 {dimension_numbers = #tpu.dot_dimension_numbers<[1], [0], [0], [1], [0, 0, 1, 1], [], []>} : vector<8x8xf32>, vector<8x8xf32>, vector<8x8xf32> -> vector<8x8xf32>
    %c0_298 = arith.constant 0 : index
    %c8_299 = arith.constant 8 : index
    %694 = vector.load %arg30[%c0_298, %c8_299] : memref<8x32xf32, #tpu.memory_space<vmem>>, vector<8x8xf32>
    tpu.vector_store %arg30[%c0_298, %c8_299], %693 {strides = array<i32>} : memref<8x32xf32, #tpu.memory_space<vmem>>, vector<8x8xf32>,
    %695 = vector.extract_strided_slice %657 {offsets = [0, 16], sizes = [8, 8], strides = [1, 1]} : vector<8x32xf32> to vector<8x8xf32>
    %696 = vector.extract_strided_slice %660 {offsets = [16, 0], sizes = [8, 8], strides = [1, 1]} : vector<32x8xf32> to vector<8x8xf32>
    %cst_300 = arith.constant dense<0.000000e+00> : vector<8x8xf32>
    %697 = tpu.matmul %695, %696, %cst_300 {dimension_numbers = #tpu.dot_dimension_numbers<[1], [0], [0], [1], [0, 0, 1, 1], [], []>} : vector<8x8xf32>, vector<8x8xf32>, vector<8x8xf32> -> vector<8x8xf32>
    %698 = arith.addf %697, %3 : vector<8x8xf32>
    %cst_301 = arith.constant dense<0xFF800000> : vector<8xf32>
    %699 = vector.multi_reduction <maximumf>, %698, %cst_301 [1] : vector<8x8xf32> to vector<8xf32>
    %700 = vector.shape_cast %699 : vector<8xf32> to vector<8x1xf32>
    %701 = vector.broadcast %700 : vector<8x1xf32> to vector<8x8xf32>
    %702 = arith.subf %698, %701 : vector<8x8xf32>
    %703 = math.exp %702 : vector<8x8xf32>
    %cst_302 = arith.constant dense<0.000000e+00> : vector<8xf32>
    %704 = vector.multi_reduction <add>, %703, %cst_302 [1] : vector<8x8xf32> to vector<8xf32>
    %705 = vector.shape_cast %704 : vector<8xf32> to vector<8x1xf32>
    %706 = tpu.reciprocal %705 {approx = true} : vector<8x1xf32> -> vector<8x1xf32>
    %707 = vector.broadcast %706 : vector<8x1xf32> to vector<8x8xf32>
    %708 = arith.mulf %703, %707 : vector<8x8xf32>
    %709 = vector.extract_strided_slice %659 {offsets = [0, 16], sizes = [8, 8], strides = [1, 1]} : vector<8x32xf32> to vector<8x8xf32>
    %cst_303 = arith.constant dense<0.000000e+00> : vector<8x8xf32>
    %710 = tpu.matmul %708, %709, %cst_303 {dimension_numbers = #tpu.dot_dimension_numbers<[1], [0], [0], [1], [0, 0, 1, 1], [], []>} : vector<8x8xf32>, vector<8x8xf32>, vector<8x8xf32> -> vector<8x8xf32>
    %c0_304 = arith.constant 0 : index
    %c16_305 = arith.constant 16 : index
    %711 = vector.load %arg30[%c0_304, %c16_305] : memref<8x32xf32, #tpu.memory_space<vmem>>, vector<8x8xf32>
    tpu.vector_store %arg30[%c0_304, %c16_305], %710 {strides = array<i32>} : memref<8x32xf32, #tpu.memory_space<vmem>>, vector<8x8xf32>,
    %712 = vector.extract_strided_slice %657 {offsets = [0, 24], sizes = [8, 8], strides = [1, 1]} : vector<8x32xf32> to vector<8x8xf32>
    %713 = vector.extract_strided_slice %660 {offsets = [24, 0], sizes = [8, 8], strides = [1, 1]} : vector<32x8xf32> to vector<8x8xf32>
    %cst_306 = arith.constant dense<0.000000e+00> : vector<8x8xf32>
    %714 = tpu.matmul %712, %713, %cst_306 {dimension_numbers = #tpu.dot_dimension_numbers<[1], [0], [0], [1], [0, 0, 1, 1], [], []>} : vector<8x8xf32>, vector<8x8xf32>, vector<8x8xf32> -> vector<8x8xf32>
    %715 = arith.addf %714, %3 : vector<8x8xf32>
    %cst_307 = arith.constant dense<0xFF800000> : vector<8xf32>
    %716 = vector.multi_reduction <maximumf>, %715, %cst_307 [1] : vector<8x8xf32> to vector<8xf32>
    %717 = vector.shape_cast %716 : vector<8xf32> to vector<8x1xf32>
    %718 = vector.broadcast %717 : vector<8x1xf32> to vector<8x8xf32>
    %719 = arith.subf %715, %718 : vector<8x8xf32>
    %720 = math.exp %719 : vector<8x8xf32>
    %cst_308 = arith.constant dense<0.000000e+00> : vector<8xf32>
    %721 = vector.multi_reduction <add>, %720, %cst_308 [1] : vector<8x8xf32> to vector<8xf32>
    %722 = vector.shape_cast %721 : vector<8xf32> to vector<8x1xf32>
    %723 = tpu.reciprocal %722 {approx = true} : vector<8x1xf32> -> vector<8x1xf32>
    %724 = vector.broadcast %723 : vector<8x1xf32> to vector<8x8xf32>
    %725 = arith.mulf %720, %724 : vector<8x8xf32>
    %726 = vector.extract_strided_slice %659 {offsets = [0, 24], sizes = [8, 8], strides = [1, 1]} : vector<8x32xf32> to vector<8x8xf32>
    %cst_309 = arith.constant dense<0.000000e+00> : vector<8x8xf32>
    %727 = tpu.matmul %725, %726, %cst_309 {dimension_numbers = #tpu.dot_dimension_numbers<[1], [0], [0], [1], [0, 0, 1, 1], [], []>} : vector<8x8xf32>, vector<8x8xf32>, vector<8x8xf32> -> vector<8x8xf32>
    %c0_310 = arith.constant 0 : index
    %c24_311 = arith.constant 24 : index
    %728 = vector.load %arg30[%c0_310, %c24_311] : memref<8x32xf32, #tpu.memory_space<vmem>>, vector<8x8xf32>
    tpu.vector_store %arg30[%c0_310, %c24_311], %727 {strides = array<i32>} : memref<8x32xf32, #tpu.memory_space<vmem>>, vector<8x8xf32>,
    %c0_312 = arith.constant 0 : index
    %c0_313 = arith.constant 0 : index
    %729 = vector.load %arg30[%c0_312, %c0_313] : memref<8x32xf32, #tpu.memory_space<vmem>>, vector<8x32xf32>
    %cst_314 = arith.constant dense<0.000000e+00> : vector<8x32xf32>
    %730 = tpu.matmul %729, %651, %cst_314 {dimension_numbers = #tpu.dot_dimension_numbers<[1], [0], [0], [1], [0, 0, 1, 1], [], []>} : vector<8x32xf32>, vector<32x32xf32>, vector<8x32xf32> -> vector<8x32xf32>
    %731 = vector.broadcast %653 : vector<1x32xf32> to vector<8x32xf32>
    %732 = arith.addf %730, %731 : vector<8x32xf32>
    %733 = arith.addf %619, %732 : vector<8x32xf32>
    %734 = vector.extract_strided_slice %621 {offsets = [2, 0], sizes = [1, 32], strides = [1, 1]} : vector<6x32xf32> to vector<1x32xf32>
    %735 = vector.extract_strided_slice %621 {offsets = [3, 0], sizes = [1, 32], strides = [1, 1]} : vector<6x32xf32> to vector<1x32xf32>
    %cst_315 = arith.constant dense<0.000000e+00> : vector<8xf32>
    %736 = vector.multi_reduction <add>, %733, %cst_315 [1] : vector<8x32xf32> to vector<8xf32>
    %737 = vector.shape_cast %736 : vector<8xf32> to vector<8x1xf32>
    %cst_316 = arith.constant 3.200000e+01 : f32
    %738 = vector.broadcast %cst_316 : f32 to vector<8x1xf32>
    %739 = arith.divf %737, %738 : vector<8x1xf32>
    %740 = vector.broadcast %739 : vector<8x1xf32> to vector<8x32xf32>
    %741 = arith.subf %733, %740 : vector<8x32xf32>
    %742 = arith.mulf %741, %741 : vector<8x32xf32>
    %cst_317 = arith.constant dense<0.000000e+00> : vector<8xf32>
    %743 = vector.multi_reduction <add>, %742, %cst_317 [1] : vector<8x32xf32> to vector<8xf32>
    %744 = vector.shape_cast %743 : vector<8xf32> to vector<8x1xf32>
    %cst_318 = arith.constant 3.200000e+01 : f32
    %745 = vector.broadcast %cst_318 : f32 to vector<8x1xf32>
    %746 = arith.divf %744, %745 : vector<8x1xf32>
    %747 = vector.broadcast %739 : vector<8x1xf32> to vector<8x32xf32>
    %748 = arith.subf %733, %747 : vector<8x32xf32>
    %cst_319 = arith.constant 9.99999997E-7 : f32
    %749 = vector.broadcast %cst_319 : f32 to vector<8x1xf32>
    %750 = arith.addf %746, %749 : vector<8x1xf32>
    %751 = math.rsqrt %750 : vector<8x1xf32>
    %752 = vector.broadcast %751 : vector<8x1xf32> to vector<8x32xf32>
    %753 = arith.mulf %748, %752 : vector<8x32xf32>
    %754 = vector.broadcast %734 : vector<1x32xf32> to vector<8x32xf32>
    %755 = arith.mulf %753, %754 : vector<8x32xf32>
    %756 = vector.broadcast %735 : vector<1x32xf32> to vector<8x32xf32>
    %757 = arith.addf %755, %756 : vector<8x32xf32>
    %c1_320 = arith.constant 1 : index
    %c0_321 = arith.constant 0 : index
    %c0_322 = arith.constant 0 : index
    %758 = vector.load %arg19[%c1_320, %c0_321, %c0_322] : memref<2x32x96xf32, #tpu.memory_space<vmem>>, vector<1x32x96xf32>
    %759 = vector.shape_cast %758 : vector<1x32x96xf32> to vector<32x96xf32>
    %c1_323 = arith.constant 1 : index
    %c0_324 = arith.constant 0 : index
    %c0_325 = arith.constant 0 : index
    %760 = vector.load %arg20[%c1_323, %c0_324, %c0_325] : memref<2x1x96xf32, #tpu.memory_space<vmem>>, vector<1x1x96xf32>
    %761 = vector.shape_cast %760 : vector<1x1x96xf32> to vector<1x96xf32>
    %c1_326 = arith.constant 1 : index
    %c0_327 = arith.constant 0 : index
    %c0_328 = arith.constant 0 : index
    %762 = vector.load %arg21[%c1_326, %c0_327, %c0_328] : memref<2x32x32xf32, #tpu.memory_space<vmem>>, vector<1x32x32xf32>
    %763 = vector.shape_cast %762 : vector<1x32x32xf32> to vector<32x32xf32>
    %c1_329 = arith.constant 1 : index
    %c0_330 = arith.constant 0 : index
    %c0_331 = arith.constant 0 : index
    %764 = vector.load %arg22[%c1_329, %c0_330, %c0_331] : memref<2x1x32xf32, #tpu.memory_space<vmem>>, vector<1x1x32xf32>
    %765 = vector.shape_cast %764 : vector<1x1x32xf32> to vector<1x32xf32>
    %766 = vector.extract_strided_slice %759 {offsets = [0, 0], sizes = [32, 32], strides = [1, 1]} : vector<32x96xf32> to vector<32x32xf32>
    %cst_332 = arith.constant dense<0.000000e+00> : vector<8x32xf32>
    %767 = tpu.matmul %757, %766, %cst_332 {dimension_numbers = #tpu.dot_dimension_numbers<[1], [0], [0], [1], [0, 0, 1, 1], [], []>} : vector<8x32xf32>, vector<32x32xf32>, vector<8x32xf32> -> vector<8x32xf32>
    %768 = vector.extract_strided_slice %761 {offsets = [0, 0], sizes = [1, 32], strides = [1, 1]} : vector<1x96xf32> to vector<1x32xf32>
    %769 = vector.broadcast %768 : vector<1x32xf32> to vector<8x32xf32>
    %770 = arith.addf %767, %769 : vector<8x32xf32>
    %771 = vector.extract_strided_slice %759 {offsets = [0, 32], sizes = [32, 64], strides = [1, 1]} : vector<32x96xf32> to vector<32x64xf32>
    %cst_333 = arith.constant dense<0.000000e+00> : vector<8x64xf32>
    %772 = tpu.matmul %344, %771, %cst_333 {dimension_numbers = #tpu.dot_dimension_numbers<[1], [0], [0], [1], [0, 0, 1, 1], [], []>} : vector<8x32xf32>, vector<32x64xf32>, vector<8x64xf32> -> vector<8x64xf32>
    %773 = vector.extract_strided_slice %761 {offsets = [0, 32], sizes = [1, 64], strides = [1, 1]} : vector<1x96xf32> to vector<1x64xf32>
    %774 = vector.broadcast %773 : vector<1x64xf32> to vector<8x64xf32>
    %775 = arith.addf %772, %774 : vector<8x64xf32>
    %776 = vector.extract_strided_slice %775 {offsets = [0, 0], sizes = [8, 32], strides = [1, 1]} : vector<8x64xf32> to vector<8x32xf32>
    %777 = vector.extract_strided_slice %775 {offsets = [0, 32], sizes = [8, 32], strides = [1, 1]} : vector<8x64xf32> to vector<8x32xf32>
    %778 = tpu.transpose %776, [1, 0] : vector<8x32xf32> -> vector<32x8xf32>
    %779 = vector.extract_strided_slice %770 {offsets = [0, 0], sizes = [8, 8], strides = [1, 1]} : vector<8x32xf32> to vector<8x8xf32>
    %780 = vector.extract_strided_slice %778 {offsets = [0, 0], sizes = [8, 8], strides = [1, 1]} : vector<32x8xf32> to vector<8x8xf32>
    %cst_334 = arith.constant dense<0.000000e+00> : vector<8x8xf32>
    %781 = tpu.matmul %779, %780, %cst_334 {dimension_numbers = #tpu.dot_dimension_numbers<[1], [0], [0], [1], [0, 0, 1, 1], [], []>} : vector<8x8xf32>, vector<8x8xf32>, vector<8x8xf32> -> vector<8x8xf32>
    %782 = arith.addf %781, %5 : vector<8x8xf32>
    %cst_335 = arith.constant dense<0xFF800000> : vector<8xf32>
    %783 = vector.multi_reduction <maximumf>, %782, %cst_335 [1] : vector<8x8xf32> to vector<8xf32>
    %784 = vector.shape_cast %783 : vector<8xf32> to vector<8x1xf32>
    %785 = vector.broadcast %784 : vector<8x1xf32> to vector<8x8xf32>
    %786 = arith.subf %782, %785 : vector<8x8xf32>
    %787 = math.exp %786 : vector<8x8xf32>
    %cst_336 = arith.constant dense<0.000000e+00> : vector<8xf32>
    %788 = vector.multi_reduction <add>, %787, %cst_336 [1] : vector<8x8xf32> to vector<8xf32>
    %789 = vector.shape_cast %788 : vector<8xf32> to vector<8x1xf32>
    %790 = tpu.reciprocal %789 {approx = true} : vector<8x1xf32> -> vector<8x1xf32>
    %791 = vector.broadcast %790 : vector<8x1xf32> to vector<8x8xf32>
    %792 = arith.mulf %787, %791 : vector<8x8xf32>
    %793 = vector.extract_strided_slice %777 {offsets = [0, 0], sizes = [8, 8], strides = [1, 1]} : vector<8x32xf32> to vector<8x8xf32>
    %cst_337 = arith.constant dense<0.000000e+00> : vector<8x8xf32>
    %794 = tpu.matmul %792, %793, %cst_337 {dimension_numbers = #tpu.dot_dimension_numbers<[1], [0], [0], [1], [0, 0, 1, 1], [], []>} : vector<8x8xf32>, vector<8x8xf32>, vector<8x8xf32> -> vector<8x8xf32>
    %c0_338 = arith.constant 0 : index
    %c0_339 = arith.constant 0 : index
    %795 = vector.load %arg30[%c0_338, %c0_339] : memref<8x32xf32, #tpu.memory_space<vmem>>, vector<8x8xf32>
    tpu.vector_store %arg30[%c0_338, %c0_339], %794 {strides = array<i32>} : memref<8x32xf32, #tpu.memory_space<vmem>>, vector<8x8xf32>,
    %796 = vector.extract_strided_slice %770 {offsets = [0, 8], sizes = [8, 8], strides = [1, 1]} : vector<8x32xf32> to vector<8x8xf32>
    %797 = vector.extract_strided_slice %778 {offsets = [8, 0], sizes = [8, 8], strides = [1, 1]} : vector<32x8xf32> to vector<8x8xf32>
    %cst_340 = arith.constant dense<0.000000e+00> : vector<8x8xf32>
    %798 = tpu.matmul %796, %797, %cst_340 {dimension_numbers = #tpu.dot_dimension_numbers<[1], [0], [0], [1], [0, 0, 1, 1], [], []>} : vector<8x8xf32>, vector<8x8xf32>, vector<8x8xf32> -> vector<8x8xf32>
    %799 = arith.addf %798, %5 : vector<8x8xf32>
    %cst_341 = arith.constant dense<0xFF800000> : vector<8xf32>
    %800 = vector.multi_reduction <maximumf>, %799, %cst_341 [1] : vector<8x8xf32> to vector<8xf32>
    %801 = vector.shape_cast %800 : vector<8xf32> to vector<8x1xf32>
    %802 = vector.broadcast %801 : vector<8x1xf32> to vector<8x8xf32>
    %803 = arith.subf %799, %802 : vector<8x8xf32>
    %804 = math.exp %803 : vector<8x8xf32>
    %cst_342 = arith.constant dense<0.000000e+00> : vector<8xf32>
    %805 = vector.multi_reduction <add>, %804, %cst_342 [1] : vector<8x8xf32> to vector<8xf32>
    %806 = vector.shape_cast %805 : vector<8xf32> to vector<8x1xf32>
    %807 = tpu.reciprocal %806 {approx = true} : vector<8x1xf32> -> vector<8x1xf32>
    %808 = vector.broadcast %807 : vector<8x1xf32> to vector<8x8xf32>
    %809 = arith.mulf %804, %808 : vector<8x8xf32>
    %810 = vector.extract_strided_slice %777 {offsets = [0, 8], sizes = [8, 8], strides = [1, 1]} : vector<8x32xf32> to vector<8x8xf32>
    %cst_343 = arith.constant dense<0.000000e+00> : vector<8x8xf32>
    %811 = tpu.matmul %809, %810, %cst_343 {dimension_numbers = #tpu.dot_dimension_numbers<[1], [0], [0], [1], [0, 0, 1, 1], [], []>} : vector<8x8xf32>, vector<8x8xf32>, vector<8x8xf32> -> vector<8x8xf32>
    %c0_344 = arith.constant 0 : index
    %c8_345 = arith.constant 8 : index
    %812 = vector.load %arg30[%c0_344, %c8_345] : memref<8x32xf32, #tpu.memory_space<vmem>>, vector<8x8xf32>
    tpu.vector_store %arg30[%c0_344, %c8_345], %811 {strides = array<i32>} : memref<8x32xf32, #tpu.memory_space<vmem>>, vector<8x8xf32>,
    %813 = vector.extract_strided_slice %770 {offsets = [0, 16], sizes = [8, 8], strides = [1, 1]} : vector<8x32xf32> to vector<8x8xf32>
    %814 = vector.extract_strided_slice %778 {offsets = [16, 0], sizes = [8, 8], strides = [1, 1]} : vector<32x8xf32> to vector<8x8xf32>
    %cst_346 = arith.constant dense<0.000000e+00> : vector<8x8xf32>
    %815 = tpu.matmul %813, %814, %cst_346 {dimension_numbers = #tpu.dot_dimension_numbers<[1], [0], [0], [1], [0, 0, 1, 1], [], []>} : vector<8x8xf32>, vector<8x8xf32>, vector<8x8xf32> -> vector<8x8xf32>
    %816 = arith.addf %815, %5 : vector<8x8xf32>
    %cst_347 = arith.constant dense<0xFF800000> : vector<8xf32>
    %817 = vector.multi_reduction <maximumf>, %816, %cst_347 [1] : vector<8x8xf32> to vector<8xf32>
    %818 = vector.shape_cast %817 : vector<8xf32> to vector<8x1xf32>
    %819 = vector.broadcast %818 : vector<8x1xf32> to vector<8x8xf32>
    %820 = arith.subf %816, %819 : vector<8x8xf32>
    %821 = math.exp %820 : vector<8x8xf32>
    %cst_348 = arith.constant dense<0.000000e+00> : vector<8xf32>
    %822 = vector.multi_reduction <add>, %821, %cst_348 [1] : vector<8x8xf32> to vector<8xf32>
    %823 = vector.shape_cast %822 : vector<8xf32> to vector<8x1xf32>
    %824 = tpu.reciprocal %823 {approx = true} : vector<8x1xf32> -> vector<8x1xf32>
    %825 = vector.broadcast %824 : vector<8x1xf32> to vector<8x8xf32>
    %826 = arith.mulf %821, %825 : vector<8x8xf32>
    %827 = vector.extract_strided_slice %777 {offsets = [0, 16], sizes = [8, 8], strides = [1, 1]} : vector<8x32xf32> to vector<8x8xf32>
    %cst_349 = arith.constant dense<0.000000e+00> : vector<8x8xf32>
    %828 = tpu.matmul %826, %827, %cst_349 {dimension_numbers = #tpu.dot_dimension_numbers<[1], [0], [0], [1], [0, 0, 1, 1], [], []>} : vector<8x8xf32>, vector<8x8xf32>, vector<8x8xf32> -> vector<8x8xf32>
    %c0_350 = arith.constant 0 : index
    %c16_351 = arith.constant 16 : index
    %829 = vector.load %arg30[%c0_350, %c16_351] : memref<8x32xf32, #tpu.memory_space<vmem>>, vector<8x8xf32>
    tpu.vector_store %arg30[%c0_350, %c16_351], %828 {strides = array<i32>} : memref<8x32xf32, #tpu.memory_space<vmem>>, vector<8x8xf32>,
    %830 = vector.extract_strided_slice %770 {offsets = [0, 24], sizes = [8, 8], strides = [1, 1]} : vector<8x32xf32> to vector<8x8xf32>
    %831 = vector.extract_strided_slice %778 {offsets = [24, 0], sizes = [8, 8], strides = [1, 1]} : vector<32x8xf32> to vector<8x8xf32>
    %cst_352 = arith.constant dense<0.000000e+00> : vector<8x8xf32>
    %832 = tpu.matmul %830, %831, %cst_352 {dimension_numbers = #tpu.dot_dimension_numbers<[1], [0], [0], [1], [0, 0, 1, 1], [], []>} : vector<8x8xf32>, vector<8x8xf32>, vector<8x8xf32> -> vector<8x8xf32>
    %833 = arith.addf %832, %5 : vector<8x8xf32>
    %cst_353 = arith.constant dense<0xFF800000> : vector<8xf32>
    %834 = vector.multi_reduction <maximumf>, %833, %cst_353 [1] : vector<8x8xf32> to vector<8xf32>
    %835 = vector.shape_cast %834 : vector<8xf32> to vector<8x1xf32>
    %836 = vector.broadcast %835 : vector<8x1xf32> to vector<8x8xf32>
    %837 = arith.subf %833, %836 : vector<8x8xf32>
    %838 = math.exp %837 : vector<8x8xf32>
    %cst_354 = arith.constant dense<0.000000e+00> : vector<8xf32>
    %839 = vector.multi_reduction <add>, %838, %cst_354 [1] : vector<8x8xf32> to vector<8xf32>
    %840 = vector.shape_cast %839 : vector<8xf32> to vector<8x1xf32>
    %841 = tpu.reciprocal %840 {approx = true} : vector<8x1xf32> -> vector<8x1xf32>
    %842 = vector.broadcast %841 : vector<8x1xf32> to vector<8x8xf32>
    %843 = arith.mulf %838, %842 : vector<8x8xf32>
    %844 = vector.extract_strided_slice %777 {offsets = [0, 24], sizes = [8, 8], strides = [1, 1]} : vector<8x32xf32> to vector<8x8xf32>
    %cst_355 = arith.constant dense<0.000000e+00> : vector<8x8xf32>
    %845 = tpu.matmul %843, %844, %cst_355 {dimension_numbers = #tpu.dot_dimension_numbers<[1], [0], [0], [1], [0, 0, 1, 1], [], []>} : vector<8x8xf32>, vector<8x8xf32>, vector<8x8xf32> -> vector<8x8xf32>
    %c0_356 = arith.constant 0 : index
    %c24_357 = arith.constant 24 : index
    %846 = vector.load %arg30[%c0_356, %c24_357] : memref<8x32xf32, #tpu.memory_space<vmem>>, vector<8x8xf32>
    tpu.vector_store %arg30[%c0_356, %c24_357], %845 {strides = array<i32>} : memref<8x32xf32, #tpu.memory_space<vmem>>, vector<8x8xf32>,
    %c0_358 = arith.constant 0 : index
    %c0_359 = arith.constant 0 : index
    %847 = vector.load %arg30[%c0_358, %c0_359] : memref<8x32xf32, #tpu.memory_space<vmem>>, vector<8x32xf32>
    %cst_360 = arith.constant dense<0.000000e+00> : vector<8x32xf32>
    %848 = tpu.matmul %847, %763, %cst_360 {dimension_numbers = #tpu.dot_dimension_numbers<[1], [0], [0], [1], [0, 0, 1, 1], [], []>} : vector<8x32xf32>, vector<32x32xf32>, vector<8x32xf32> -> vector<8x32xf32>
    %849 = vector.broadcast %765 : vector<1x32xf32> to vector<8x32xf32>
    %850 = arith.addf %848, %849 : vector<8x32xf32>
    %851 = arith.addf %733, %850 : vector<8x32xf32>
    %852 = vector.extract_strided_slice %621 {offsets = [4, 0], sizes = [1, 32], strides = [1, 1]} : vector<6x32xf32> to vector<1x32xf32>
    %853 = vector.extract_strided_slice %621 {offsets = [5, 0], sizes = [1, 32], strides = [1, 1]} : vector<6x32xf32> to vector<1x32xf32>
    %cst_361 = arith.constant dense<0.000000e+00> : vector<8xf32>
    %854 = vector.multi_reduction <add>, %851, %cst_361 [1] : vector<8x32xf32> to vector<8xf32>
    %855 = vector.shape_cast %854 : vector<8xf32> to vector<8x1xf32>
    %cst_362 = arith.constant 3.200000e+01 : f32
    %856 = vector.broadcast %cst_362 : f32 to vector<8x1xf32>
    %857 = arith.divf %855, %856 : vector<8x1xf32>
    %858 = vector.broadcast %857 : vector<8x1xf32> to vector<8x32xf32>
    %859 = arith.subf %851, %858 : vector<8x32xf32>
    %860 = arith.mulf %859, %859 : vector<8x32xf32>
    %cst_363 = arith.constant dense<0.000000e+00> : vector<8xf32>
    %861 = vector.multi_reduction <add>, %860, %cst_363 [1] : vector<8x32xf32> to vector<8xf32>
    %862 = vector.shape_cast %861 : vector<8xf32> to vector<8x1xf32>
    %cst_364 = arith.constant 3.200000e+01 : f32
    %863 = vector.broadcast %cst_364 : f32 to vector<8x1xf32>
    %864 = arith.divf %862, %863 : vector<8x1xf32>
    %865 = vector.broadcast %857 : vector<8x1xf32> to vector<8x32xf32>
    %866 = arith.subf %851, %865 : vector<8x32xf32>
    %cst_365 = arith.constant 9.99999997E-7 : f32
    %867 = vector.broadcast %cst_365 : f32 to vector<8x1xf32>
    %868 = arith.addf %864, %867 : vector<8x1xf32>
    %869 = math.rsqrt %868 : vector<8x1xf32>
    %870 = vector.broadcast %869 : vector<8x1xf32> to vector<8x32xf32>
    %871 = arith.mulf %866, %870 : vector<8x32xf32>
    %872 = vector.broadcast %852 : vector<1x32xf32> to vector<8x32xf32>
    %873 = arith.mulf %871, %872 : vector<8x32xf32>
    %874 = vector.broadcast %853 : vector<1x32xf32> to vector<8x32xf32>
    %875 = arith.addf %873, %874 : vector<8x32xf32>
    %c1_366 = arith.constant 1 : index
    %c0_367 = arith.constant 0 : index
    %c0_368 = arith.constant 0 : index
    %876 = vector.load %arg23[%c1_366, %c0_367, %c0_368] : memref<2x32x64xf32, #tpu.memory_space<vmem>>, vector<1x32x64xf32>
    %877 = vector.shape_cast %876 : vector<1x32x64xf32> to vector<32x64xf32>
    %c1_369 = arith.constant 1 : index
    %c0_370 = arith.constant 0 : index
    %c0_371 = arith.constant 0 : index
    %878 = vector.load %arg24[%c1_369, %c0_370, %c0_371] : memref<2x1x64xf32, #tpu.memory_space<vmem>>, vector<1x1x64xf32>
    %879 = vector.shape_cast %878 : vector<1x1x64xf32> to vector<1x64xf32>
    %c1_372 = arith.constant 1 : index
    %c0_373 = arith.constant 0 : index
    %c0_374 = arith.constant 0 : index
    %880 = vector.load %arg25[%c1_372, %c0_373, %c0_374] : memref<2x64x32xf32, #tpu.memory_space<vmem>>, vector<1x64x32xf32>
    %881 = vector.shape_cast %880 : vector<1x64x32xf32> to vector<64x32xf32>
    %c1_375 = arith.constant 1 : index
    %c0_376 = arith.constant 0 : index
    %c0_377 = arith.constant 0 : index
    %882 = vector.load %arg26[%c1_375, %c0_376, %c0_377] : memref<2x1x32xf32, #tpu.memory_space<vmem>>, vector<1x1x32xf32>
    %883 = vector.shape_cast %882 : vector<1x1x32xf32> to vector<1x32xf32>
    %cst_378 = arith.constant dense<0.000000e+00> : vector<8x64xf32>
    %884 = tpu.matmul %875, %877, %cst_378 {dimension_numbers = #tpu.dot_dimension_numbers<[1], [0], [0], [1], [0, 0, 1, 1], [], []>} : vector<8x32xf32>, vector<32x64xf32>, vector<8x64xf32> -> vector<8x64xf32>
    %885 = vector.broadcast %879 : vector<1x64xf32> to vector<8x64xf32>
    %886 = arith.addf %884, %885 : vector<8x64xf32>
    %cst_379 = arith.constant 0.000000e+00 : f32
    %887 = vector.broadcast %cst_379 : f32 to vector<8x64xf32>
    %888 = arith.maximumf %886, %887 : vector<8x64xf32>
    %cst_380 = arith.constant dense<0.000000e+00> : vector<8x32xf32>
    %889 = tpu.matmul %888, %881, %cst_380 {dimension_numbers = #tpu.dot_dimension_numbers<[1], [0], [0], [1], [0, 0, 1, 1], [], []>} : vector<8x64xf32>, vector<64x32xf32>, vector<8x32xf32> -> vector<8x32xf32>
    %890 = vector.broadcast %883 : vector<1x32xf32> to vector<8x32xf32>
    %891 = arith.addf %889, %890 : vector<8x32xf32>
    %892 = arith.addf %851, %891 : vector<8x32xf32>
    %893 = vector.extract_strided_slice %6 {offsets = [1, 0, 0], sizes = [1, 1, 32], strides = [1, 1, 1]} : vector<2x2x32xf32> to vector<1x1x32xf32>
    %894 = vector.shape_cast %893 : vector<1x1x32xf32> to vector<1x32xf32>
    %895 = vector.extract_strided_slice %6 {offsets = [1, 1, 0], sizes = [1, 1, 32], strides = [1, 1, 1]} : vector<2x2x32xf32> to vector<1x1x32xf32>
    %896 = vector.shape_cast %895 : vector<1x1x32xf32> to vector<1x32xf32>
    %cst_381 = arith.constant dense<0.000000e+00> : vector<8xf32>
    %897 = vector.multi_reduction <add>, %892, %cst_381 [1] : vector<8x32xf32> to vector<8xf32>
    %898 = vector.shape_cast %897 : vector<8xf32> to vector<8x1xf32>
    %cst_382 = arith.constant 3.200000e+01 : f32
    %899 = vector.broadcast %cst_382 : f32 to vector<8x1xf32>
    %900 = arith.divf %898, %899 : vector<8x1xf32>
    %901 = vector.broadcast %900 : vector<8x1xf32> to vector<8x32xf32>
    %902 = arith.subf %892, %901 : vector<8x32xf32>
    %903 = arith.mulf %902, %902 : vector<8x32xf32>
    %cst_383 = arith.constant dense<0.000000e+00> : vector<8xf32>
    %904 = vector.multi_reduction <add>, %903, %cst_383 [1] : vector<8x32xf32> to vector<8xf32>
    %905 = vector.shape_cast %904 : vector<8xf32> to vector<8x1xf32>
    %cst_384 = arith.constant 3.200000e+01 : f32
    %906 = vector.broadcast %cst_384 : f32 to vector<8x1xf32>
    %907 = arith.divf %905, %906 : vector<8x1xf32>
    %908 = vector.broadcast %900 : vector<8x1xf32> to vector<8x32xf32>
    %909 = arith.subf %892, %908 : vector<8x32xf32>
    %cst_385 = arith.constant 9.99999997E-7 : f32
    %910 = vector.broadcast %cst_385 : f32 to vector<8x1xf32>
    %911 = arith.addf %907, %910 : vector<8x1xf32>
    %912 = math.rsqrt %911 : vector<8x1xf32>
    %913 = vector.broadcast %912 : vector<8x1xf32> to vector<8x32xf32>
    %914 = arith.mulf %909, %913 : vector<8x32xf32>
    %915 = vector.broadcast %894 : vector<1x32xf32> to vector<8x32xf32>
    %916 = arith.mulf %914, %915 : vector<8x32xf32>
    %917 = vector.broadcast %896 : vector<1x32xf32> to vector<8x32xf32>
    %918 = arith.addf %916, %917 : vector<8x32xf32>
    %c0_386 = arith.constant 0 : index
    %c0_387 = arith.constant 0 : index
    %c0_388 = arith.constant 0 : index
    %919 = vector.load %arg29[%c0_386, %c0_387, %c0_388] : memref<1x8x32xf32, #tpu.memory_space<vmem>>, vector<1x8x32xf32>
    %920 = vector.shape_cast %919 : vector<1x8x32xf32> to vector<8x32xf32>
    %921 = vector.shape_cast %918 : vector<8x32xf32> to vector<1x8x32xf32>
    tpu.vector_store %arg29[%c0_386, %c0_387, %c0_388], %921 {strides = array<i32>} : memref<1x8x32xf32, #tpu.memory_space<vmem>>, vector<1x8x32xf32>,
    return
  }
  func.func @transform_0(%arg0: i32) -> (i32, i32, i32) {
    %c0_i32 = arith.constant 0 : i32
    %c0_i32_0 = arith.constant 0 : i32
    %c0_i32_1 = arith.constant 0 : i32
    return %arg0, %c0_i32, %c0_i32_0 : i32, i32, i32
  }
  func.func @transform_1(%arg0: i32) -> (i32, i32, i32) {
    %c0_i32 = arith.constant 0 : i32
    %c0_i32_0 = arith.constant 0 : i32
    %c0_i32_1 = arith.constant 0 : i32
    return %arg0, %c0_i32, %c0_i32_0 : i32, i32, i32
  }
  func.func @transform_2(%arg0: i32) -> (i32, i32, i32) {
    %c0_i32 = arith.constant 0 : i32
    %c0_i32_0 = arith.constant 0 : i32
    %c0_i32_1 = arith.constant 0 : i32
    return %arg0, %c0_i32, %c0_i32_0 : i32, i32, i32
  }
  func.func @transform_3(%arg0: i32) -> (i32, i32, i32) {
    %c0_i32 = arith.constant 0 : i32
    %c0_i32_0 = arith.constant 0 : i32
    %c0_i32_1 = arith.constant 0 : i32
    return %arg0, %c0_i32, %c0_i32_0 : i32, i32, i32
  }
  func.func @transform_4(%arg0: i32) -> (i32, i32, i32) {
    %c0_i32 = arith.constant 0 : i32
    %c0_i32_0 = arith.constant 0 : i32
    %c0_i32_1 = arith.constant 0 : i32
    return %arg0, %c0_i32, %c0_i32_0 : i32, i32, i32
  }
  func.func @transform_5(%arg0: i32) -> (i32, i32, i32) {
    %c0_i32 = arith.constant 0 : i32
    %c0_i32_0 = arith.constant 0 : i32
    %c0_i32_1 = arith.constant 0 : i32
    %c0_i32_2 = arith.constant 0 : i32
    return %c0_i32, %c0_i32_0, %c0_i32_1 : i32, i32, i32
  }
  func.func @transform_6(%arg0: i32) -> (i32, i32, i32) {
    %c0_i32 = arith.constant 0 : i32
    %c0_i32_0 = arith.constant 0 : i32
    %c0_i32_1 = arith.constant 0 : i32
    %c0_i32_2 = arith.constant 0 : i32
    return %c0_i32, %c0_i32_0, %c0_i32_1 : i32, i32, i32
  }
  func.func @transform_7(%arg0: i32) -> (i32, i32, i32) {
    %c0_i32 = arith.constant 0 : i32
    %c0_i32_0 = arith.constant 0 : i32
    %c0_i32_1 = arith.constant 0 : i32
    %c0_i32_2 = arith.constant 0 : i32
    return %c0_i32, %c0_i32_0, %c0_i32_1 : i32, i32, i32
  }
  func.func @transform_8(%arg0: i32) -> (i32, i32, i32) {
    %c0_i32 = arith.constant 0 : i32
    %c0_i32_0 = arith.constant 0 : i32
    %c0_i32_1 = arith.constant 0 : i32
    %c0_i32_2 = arith.constant 0 : i32
    return %c0_i32, %c0_i32_0, %c0_i32_1 : i32, i32, i32
  }
  func.func @transform_9(%arg0: i32) -> (i32, i32, i32) {
    %c0_i32 = arith.constant 0 : i32
    %c0_i32_0 = arith.constant 0 : i32
    %c0_i32_1 = arith.constant 0 : i32
    %c0_i32_2 = arith.constant 0 : i32
    return %c0_i32, %c0_i32_0, %c0_i32_1 : i32, i32, i32
  }
  func.func @transform_10(%arg0: i32) -> (i32, i32, i32) {
    %c0_i32 = arith.constant 0 : i32
    %c0_i32_0 = arith.constant 0 : i32
    %c0_i32_1 = arith.constant 0 : i32
    %c0_i32_2 = arith.constant 0 : i32
    return %c0_i32, %c0_i32_0, %c0_i32_1 : i32, i32, i32
  }
  func.func @transform_11(%arg0: i32) -> (i32, i32, i32) {
    %c0_i32 = arith.constant 0 : i32
    %c0_i32_0 = arith.constant 0 : i32
    %c0_i32_1 = arith.constant 0 : i32
    %c0_i32_2 = arith.constant 0 : i32
    return %c0_i32, %c0_i32_0, %c0_i32_1 : i32, i32, i32
  }
  func.func @transform_12(%arg0: i32) -> (i32, i32, i32) {
    %c0_i32 = arith.constant 0 : i32
    %c0_i32_0 = arith.constant 0 : i32
    %c0_i32_1 = arith.constant 0 : i32
    %c0_i32_2 = arith.constant 0 : i32
    return %c0_i32, %c0_i32_0, %c0_i32_1 : i32, i32, i32
  }
  func.func @transform_13(%arg0: i32) -> (i32, i32, i32) {
    %c0_i32 = arith.constant 0 : i32
    %c0_i32_0 = arith.constant 0 : i32
    %c0_i32_1 = arith.constant 0 : i32
    %c0_i32_2 = arith.constant 0 : i32
    return %c0_i32, %c0_i32_0, %c0_i32_1 : i32, i32, i32
  }
  func.func @transform_14(%arg0: i32) -> (i32, i32, i32) {
    %c0_i32 = arith.constant 0 : i32
    %c0_i32_0 = arith.constant 0 : i32
    %c0_i32_1 = arith.constant 0 : i32
    %c0_i32_2 = arith.constant 0 : i32
    return %c0_i32, %c0_i32_0, %c0_i32_1 : i32, i32, i32
  }
  func.func @transform_15(%arg0: i32) -> (i32, i32, i32) {
    %c0_i32 = arith.constant 0 : i32
    %c0_i32_0 = arith.constant 0 : i32
    %c0_i32_1 = arith.constant 0 : i32
    %c0_i32_2 = arith.constant 0 : i32
    return %c0_i32, %c0_i32_0, %c0_i32_1 : i32, i32, i32
  }
  func.func @transform_16(%arg0: i32) -> (i32, i32, i32) {
    %c0_i32 = arith.constant 0 : i32
    %c0_i32_0 = arith.constant 0 : i32
    %c0_i32_1 = arith.constant 0 : i32
    %c0_i32_2 = arith.constant 0 : i32
    return %c0_i32, %c0_i32_0, %c0_i32_1 : i32, i32, i32
  }
  func.func @transform_17(%arg0: i32) -> (i32, i32, i32) {
    %c0_i32 = arith.constant 0 : i32
    %c0_i32_0 = arith.constant 0 : i32
    %c0_i32_1 = arith.constant 0 : i32
    %c0_i32_2 = arith.constant 0 : i32
    return %c0_i32, %c0_i32_0, %c0_i32_1 : i32, i32, i32
  }
  func.func @transform_18(%arg0: i32) -> (i32, i32, i32) {
    %c0_i32 = arith.constant 0 : i32
    %c0_i32_0 = arith.constant 0 : i32
    %c0_i32_1 = arith.constant 0 : i32
    %c0_i32_2 = arith.constant 0 : i32
    return %c0_i32, %c0_i32_0, %c0_i32_1 : i32, i32, i32
  }
  func.func @transform_19(%arg0: i32) -> (i32, i32, i32) {
    %c0_i32 = arith.constant 0 : i32
    %c0_i32_0 = arith.constant 0 : i32
    %c0_i32_1 = arith.constant 0 : i32
    %c0_i32_2 = arith.constant 0 : i32
    return %c0_i32, %c0_i32_0, %c0_i32_1 : i32, i32, i32
  }
  func.func @transform_20(%arg0: i32) -> (i32, i32, i32) {
    %c0_i32 = arith.constant 0 : i32
    %c0_i32_0 = arith.constant 0 : i32
    %c0_i32_1 = arith.constant 0 : i32
    %c0_i32_2 = arith.constant 0 : i32
    return %c0_i32, %c0_i32_0, %c0_i32_1 : i32, i32, i32
  }
  func.func @transform_21(%arg0: i32) -> (i32, i32, i32) {
    %c0_i32 = arith.constant 0 : i32
    %c0_i32_0 = arith.constant 0 : i32
    %c0_i32_1 = arith.constant 0 : i32
    %c0_i32_2 = arith.constant 0 : i32
    return %c0_i32, %c0_i32_0, %c0_i32_1 : i32, i32, i32
  }
  func.func @transform_22(%arg0: i32) -> (i32, i32, i32) {
    %c0_i32 = arith.constant 0 : i32
    %c0_i32_0 = arith.constant 0 : i32
    %c0_i32_1 = arith.constant 0 : i32
    %c0_i32_2 = arith.constant 0 : i32
    return %c0_i32, %c0_i32_0, %c0_i32_1 : i32, i32, i32
  }
  func.func @transform_23(%arg0: i32) -> (i32, i32, i32) {
    %c0_i32 = arith.constant 0 : i32
    %c0_i32_0 = arith.constant 0 : i32
    %c0_i32_1 = arith.constant 0 : i32
    %c0_i32_2 = arith.constant 0 : i32
    return %c0_i32, %c0_i32_0, %c0_i32_1 : i32, i32, i32
  }
  func.func @transform_24(%arg0: i32) -> (i32, i32, i32) {
    %c0_i32 = arith.constant 0 : i32
    %c0_i32_0 = arith.constant 0 : i32
    %c0_i32_1 = arith.constant 0 : i32
    %c0_i32_2 = arith.constant 0 : i32
    return %c0_i32, %c0_i32_0, %c0_i32_1 : i32, i32, i32
  }
  func.func @transform_25(%arg0: i32) -> (i32, i32, i32) {
    %c0_i32 = arith.constant 0 : i32
    %c0_i32_0 = arith.constant 0 : i32
    %c0_i32_1 = arith.constant 0 : i32
    %c0_i32_2 = arith.constant 0 : i32
    return %c0_i32, %c0_i32_0, %c0_i32_1 : i32, i32, i32
  }
  func.func @transform_26(%arg0: i32) -> (i32, i32, i32) {
    %c0_i32 = arith.constant 0 : i32
    %c0_i32_0 = arith.constant 0 : i32
    %c0_i32_1 = arith.constant 0 : i32
    %c0_i32_2 = arith.constant 0 : i32
    return %c0_i32, %c0_i32_0, %c0_i32_1 : i32, i32, i32
  }
  func.func @transform_27(%arg0: i32) -> (i32, i32, i32) {
    %c0_i32 = arith.constant 0 : i32
    %c0_i32_0 = arith.constant 0 : i32
    %c0_i32_1 = arith.constant 0 : i32
    %c0_i32_2 = arith.constant 0 : i32
    return %c0_i32, %c0_i32_0, %c0_i32_1 : i32, i32, i32
  }
  func.func @transform_28(%arg0: i32) -> (i32, i32, i32) {
    %c0_i32 = arith.constant 0 : i32
    %c0_i32_0 = arith.constant 0 : i32
    %c0_i32_1 = arith.constant 0 : i32
    return %arg0, %c0_i32, %c0_i32_0 : i32, i32, i32
  }
}

</mosaic_0001>

<bundles_post_ra>
// kernel: encoder_decoder_forward.1
= control target key start
LH: loop header
LB: loop body
LE: loop exit
PB: predicated region body
PF: predicated region fallthrough
CT: control target
= control target key end

     0   :  { %s10029_s0 = inlined_call_operand.vmem [shape: f32[2,8,32], index: 0, kind: input, shape index: {}]   ;;  %s10030_s1 = inlined_call_operand.vmem [shape: f32[2,8,32], index: 1, kind: input, shape index: {}]   ;;  %s10031_s2 = inlined_call_operand.vmem [shape: f32[2,8,8], index: 2, kind: input, shape index: {}, may-alias: {2,4}]   ;;  %s10032_s3 = inlined_call_operand.vmem [shape: f32[2,8,8], index: 3, kind: input, shape index: {}]   ;;  %s10033_s4 = inlined_call_operand.vmem [shape: f32[2,8,8], index: 4, kind: input, shape index: {}, may-alias: {2,4}]   ;;  %s10034_s5 = inlined_call_operand.vmem [shape: f32[2,32,96], index: 5, kind: input, shape index: {}]   ;;  %s10035_s6 = inlined_call_operand.vmem [shape: f32[2,1,96], index: 6, kind: input, shape index: {}]   ;;  %s10036_s7 = inlined_call_operand.vmem [shape: f32[2,32,32], index: 7, kind: input, shape index: {}]   ;;  %s10037_s8 = inlined_call_operand.vmem [shape: f32[2,1,32], index: 8, kind: input, shape index: {}]   ;;  %s10038_s9 = inlined_call_operand.vmem [shape: f32[2,32,64], index: 9, kind: input, shape index: {}]   ;;  %s10039_s10 = inlined_call_operand.vmem [shape: f32[2,1,64], index: 10, kind: input, shape index: {}]   ;;  %s10040_s11 = inlined_call_operand.vmem [shape: f32[2,64,32], index: 11, kind: input, shape index: {}]   ;;  %s10041_s12 = inlined_call_operand.vmem [shape: f32[2,1,32], index: 12, kind: input, shape index: {}]   ;;  %s10042_s13 = inlined_call_operand.vmem [shape: f32[2,4,32], index: 13, kind: input, shape index: {}]   ;;  %s10043_s14 = inlined_call_operand.vmem [shape: f32[2,32,96], index: 14, kind: input, shape index: {}]   ;;  %s10044_s15 = inlined_call_operand.vmem [shape: f32[2,1,96], index: 15, kind: input, shape index: {}]   ;;  %s10045_s16 = inlined_call_operand.vmem [shape: f32[2,32,32], index: 16, kind: input, shape index: {}]   ;;  %s10046_s17 = inlined_call_operand.vmem [shape: f32[2,1,32], index: 17, kind: input, shape index: {}]   ;;  %s10047_s18 = inlined_call_operand.vmem [shape: f32[2,32,96], index: 18, kind: input, shape index: {}]   ;;  %s10048_s19 = inlined_call_operand.vmem [shape: f32[2,1,96], index: 19, kind: input, shape index: {}]   ;;  %s10049_s20 = inlined_call_operand.vmem [shape: f32[2,32,32], index: 20, kind: input, shape index: {}]   ;;  %s10050_s21 = inlined_call_operand.vmem [shape: f32[2,1,32], index: 21, kind: input, shape index: {}]   ;;  %s10051_s22 = inlined_call_operand.vmem [shape: f32[2,32,64], index: 22, kind: input, shape index: {}]   ;;  %s10052_s23 = inlined_call_operand.vmem [shape: f32[2,1,64], index: 23, kind: input, shape index: {}]   ;;  %s10053_s24 = inlined_call_operand.vmem [shape: f32[2,64,32], index: 24, kind: input, shape index: {}]   ;;  %s10054_s25 = inlined_call_operand.vmem [shape: f32[2,1,32], index: 25, kind: input, shape index: {}]   ;;  %s10055_s26 = inlined_call_operand.vmem [shape: f32[2,6,32], index: 26, kind: input, shape index: {}]   ;;  %s10056_s27 = inlined_call_operand.vmem [shape: f32[2,2,32], index: 27, kind: input, shape index: {}]   ;;  %s10057_s28 = inlined_call_operand.hbm [shape: f32[2,8,32], index: 28, kind: output, shape index: {}]  }
   0x1   :  { %10124 = sst [smem:[#allocation15_spill]] %s10029_s0 }
   0x2   :  { %10125 = sst [smem:[#allocation16_spill]] %s10030_s1 }
   0x3   :  { %10126 = sst [smem:[#allocation17_spill]] %s10031_s2 }
   0x4   :  { %10127 = sst [smem:[#allocation18_spill]] %s10032_s3 }
   0x5   :  { %10128 = sst [smem:[#allocation19_spill]] %s10033_s4 }
   0x6   :  { %10129 = sst [smem:[#allocation20_spill]] %s10034_s5 }
   0x7   :  { %10130 = sst [smem:[#allocation21_spill]] %s10035_s6 }
   0x8   :  { %10131 = sst [smem:[#allocation22_spill]] %s10036_s7 }
   0x9   :  { %10132 = sst [smem:[#allocation23_spill]] %s10037_s8 }
   0xa   :  { %10133 = sst [smem:[#allocation24_spill]] %s10038_s9 }
   0xb   :  { %10134 = sst [smem:[#allocation25_spill]] %s10039_s10 }
   0xc   :  { %10135 = sst [smem:[#allocation26_spill]] %s10040_s11 }
   0xd   :  { %10136 = sst [smem:[#allocation27_spill]] %s10041_s12 }
   0xe   :  { %10137 = sst [smem:[#allocation28_spill]] %s10042_s13 }
   0xf   :  { %10138 = sst [smem:[#allocation29_spill]] %s10046_s17 }
  0x10   :  { %10139 = sst [smem:[#allocation30_spill]] %s10047_s18 }
  0x11   :  { %10140 = sst [smem:[#allocation31_spill]] %s10048_s19 }
  0x12   :  { %10141 = sst [smem:[#allocation32_spill]] %s10049_s20 }
  0x13   :  { %10142 = sst [smem:[#allocation33_spill]] %s10050_s21 }
  0x14   :  { %10143 = sst [smem:[#allocation34_spill]] %s10051_s22 }
  0x15   :  { %10144 = sst [smem:[#allocation35_spill]] %s10052_s23 }
  0x16   :  { %10145 = sst [smem:[#allocation36_spill]] %s10053_s24 }
  0x17   :  { %10146 = sst [smem:[#allocation37_spill]] %s10054_s25 }
  0x18   :  { %10147 = sst [smem:[#allocation38_spill]] %s10056_s27 }
  0x19   :  { %10148 = sst [smem:[#allocation39_spill]] %s10057_s28 }
  0x1a   :  { %33 = vsyncpa [#allocation4], 0 }
  0x1b   :  { %35 = vsyncpa [#allocation4 + $0x1], 0  ;;  %s8795_s8 = smov 0   ;;  %s8797_s5 = smov 0  }
  0x1c   :  { %s8799_s9 = smov 0   ;;  %s8801_s30 = smov 0  }
  0x1d LB: > { %10149 = sst [smem:[#allocation6_spill]] %s8618_s8  ;;  %s8816_s3 = sadd.s32 4294967295, %s8630_s30   ;;  %s8630_s30 = sphi %s8801_s30, %s10216_s30   ;;  %s8626_s9 = sphi %s8799_s9, %s10219_s9   ;;  %s8622_s5 = sphi %s8797_s5, %s10218_s5   ;;  %s8618_s8 = sphi %s8795_s8, %s10217_s8  }
  0x1e   : > { %10150 = sst [smem:[#allocation7_spill]] %s8622_s5  ;;  %s7292_s6 = sadd.s32 4294967294, %s8630_s30  }
  0x1f   : > { %10151 = sst [smem:[#allocation8_spill]] %s8626_s9  ;;  %s8820_s10 = sadd.s32 1, %s8630_s30  }
  0x20   : > { %10152 = sst [smem:[#allocation9_spill]] %s8630_s30  ;;  %s661_s0 = sadd.s32 1, %s8626_s9 }
  0x21   : > { %10153 = sst [smem:[#allocation10_spill]] %s8816_s3  ;;  %s658_s11 = ssub.s32 %s8630_s30, %s8820_s10 }
  0x22   : > { %10154 = sst [smem:[#allocation11_spill]] %s8820_s10  ;;  %p671_p0 = scmp.ne.s32.totalorder %s8626_s9, %s8622_s5 }
  0x23   : > { %p659_p1 = scmp.eq.s32.totalorder %s658_s11, 0  ;;  %p672_p2 = scmp.eq.s32.totalorder %s8816_s3, 1 }
  0x24   : > { %p677_p3 = scmp.ne.s32.totalorder %s8622_s5, %s8618_s8  ;;  %p678_p4 = scmp.eq.s32.totalorder %s7292_s6, 1 }
  0x25   : > { %s8831_s29 = scalar_select %p659_p1, %s8626_s9, %s661_s0  }
  0x26   : > { %p8833_p5 = por %p672_p2, %p671_p0  ;;  %p8837_p6 = por %p678_p4, %p677_p3 }
  0x27   : > { %10155 = sst [smem:[#allocation12_spill]] %s8831_s29  ;;  %p7295_p7 = scmp.ge.s32.totalorder %s8630_s30, 1 }
  0x28   : > { %s10156_s2 = scalar_select %p8833_p5, 1, 0 }
  0x29   : > { %s10158_s7 = scalar_select %p8837_p6, 1, 0 }
  0x2a   : > { %10157 = sst [smem:[#allocation13_spill]] %s10156_s2  ;;  %p800_p8 = scmp.lt.s32.totalorder %s8630_s30, 3 }
  0x2b   : > { %10159 = sst [smem:[#allocation14_spill]] %s10158_s7 }
  0x2c   : > { %p801_p9 = pnand %p7295_p7, %p800_p8 }
  0x2d   : > { %p889_p10 = scmp.lt.s32.totalorder (!%p801_p9), %s8816_s3, 1  ;;  %vm916_vm0 = vcmask (!%p801_p9), 261120   ;;  %s10160_s0 = sld [smem:[#allocation15_spill]] (!%p801_p9)  ;;  %v8632_v10 = vmov (!%p801_p9), 0.0|0.0   ;;  %vm8633_vm1 = vmmov (!%p801_p9), 0   ;;  %v8634_v13 = vmov (!%p801_p9), 0.0  }
  0x2e   : > { %804 = sbr.rel (%p801_p9) target bundleno = 13035 (0x32eb), region = 132  ;;  %s10161_s9 = sld [smem:[#allocation20_spill]] (!%p801_p9)  ;;  %8216 = vmatprep.subr.bf16.mxu1 (!%p801_p9), %v8632_v10  ;;  %7710 = vmatprep.mubr.msk.f32.mxu1 (!%p801_p9), %vm8633_vm1, %v8634_v13  ;;  %v931_v17 = vlaneseq (!%p801_p9)  ;;  %vm1033_vm2 = vcmask (!%p801_p9), 64512   ;;  %vm1365_vm3 = vcmask (!%p801_p9), 130112   ;;  %vm1536_vm4 = vcmask (!%p801_p9), 195712  }
  0x2f   : > { %7723 = vmatprep.subr.mxu0 (!%p801_p9), %v8634_v13  ;;  %7725 = vmatprep.mubr.msk.f32.mxu0 (!%p801_p9), %vm8633_vm1, %v8634_v13  ;;  %s10163_s13 = sld [smem:[#allocation28_spill]] (!%p801_p9)  ;;  %s10087_s4 = smov (!%p801_p9), 120   ;;  %vm1707_vm5 = vcmask (!%p801_p9), 261312   ;;  %vm1913_vm6 = vcmask (!%p801_p9), 523264  }
  0x30   : > { %v8877_v19 = vshrl.u32 (!%p801_p9), %v931_v17, 7  ;;  %s10089_s6 = smov (!%p801_p9), 96   ;;  %s10075_s8 = smov (!%p801_p9), 112  }
  0x31   : > { %s10071_s29 = smov (!%p801_p9), 104   ;;  %s10077_s7 = smov (!%p801_p9), 56  }
  0x32   : > { %v8880_v20 = vsub.s32 (!%p801_p9), 0, %v8877_v19  ;;  %v8888_v22 = vsub.s32 (!%p801_p9), 1, %v8877_v19  ;;  %s10095_s28 = smov (!%p801_p9), 24   ;;  %s10170_s30 = sld [smem:[#allocation26_spill]] (!%p801_p9) }
  0x33   : > { %s10173_s5 = sld [smem:[#allocation27_spill]] (!%p801_p9)  ;;  %s10174_s2 = smov (!%p801_p9), 88  }
  0x34   : > { %s10162_s10 = smov (!%p801_p9), %s10161_s9  ;;  %v941_v7 = vld [vmem:[%s10161_s9] sm:$0xff] (!%p801_p9)  ;;  %s10073_s9 = smov (!%p801_p9), 72  }
  0x35   : > { %s890_s12 = scalar_select %p889_p10, %s8816_s3, 1  ;;  %v942_v8 = vld [vmem:[%s10162_s10 + $0x8] sm:$0xff]  ;;  %v943_v9 = vld [vmem:[%s10162_s10 + $0x10] sm:$0xff]  ;;  %v944_v12 = vld [vmem:[%s10162_s10 + $0x18] sm:$0xff] }
  0x36   : > { %v8217_v11 = vpack.c.bf16 %v942_v8, %v941_v7  ;;  %v8220_v14 = vpack.c.bf16 %v944_v12, %v943_v9  ;;  %v8885_v21 = vld [vmem:[%s10163_s13] sm:$0xf]  ;;  %s10178_s3 = smov 112   ;;  %s10185_s21 = smov 8  }
  0x37   : > { %s8845_s1 = sshll.u32 %s890_s12, 3  ;;  %v934_v23 = vrot.slane %v8885_v21, %v8880_v20  ;;  %v939_v26 = vrot.slane %v8885_v21, %v8888_v22  ;;  %s10164_s12 = sld [smem:[#allocation21_spill]] }
  0x38   : > { %s892_s11 = scalar_lea.vmem %s10160_s0, %s8845_s1  ;;  %8218 = vmatpush3.bf16.msra.mxu1 %v8217_v11  ;;  %s10091_s0 = smov 88  }
  0x39   : > { %v8851_v0 = vld [vmem:[%s892_s11] sm:$0xff]  ;;  %8219 = vmatprep.subr.bf16.mxu1 %v8632_v10  ;;  %s10083_s11 = smov 80   ;;  %s10186_s20 = smov 16  }
  0x3a   : > { %v917_v1 = vsel %vm916_vm0, %v8851_v0, 0.0  ;;  %s10187_s18 = smov 24   ;;  %s10188_s23 = sld [smem:[#allocation16_spill]] }
  0x3b   : > { %918 = vadd.xlane.f32.xlu0 %v917_v1  ;;  %s10189_s25 = sld [smem:[#allocation18_spill]]  ;;  %s10191_s27 = sld [smem:[#allocation27_spill]] }
  0x3c   : > { %8221 = vmatpush3.bf16.msra.mxu1 %v8220_v14  ;;  %s10194_s22 = sld [smem:[#allocation31_spill]]  ;;  %s10199_s17 = sld [smem:[#allocation34_spill]] }
  0x3d   : > { %7713 = vmatprep.subr.mxu1 %v8634_v13  ;;  %v7302_v29 = vld [vmem:[%s10164_s12] ss:$0 sm:$0xff] }
  0x40   : > { %s896_s24 = scalar_lea.vmem %s10188_s23, %s8845_s1  ;;  %s10193_s23 = sld [smem:[#allocation30_spill]] }
  0xc8   : > { %v919_v2 = vpop.xlane.xlu0 %918 }
  0xc9   : > { %v921_v3 = vmul.f32 0.03125, %v919_v2 }
  0xcb   : > { %v922_v4 = vsub.f32 %v8851_v0, %v921_v3 }
  0xcd   : > { %v923_v5 = vmul.f32 %v922_v4, %v922_v4 }
  0xcf   : > { %v924_v6 = vsel %vm916_vm0, %v923_v5, 0.0 }
  0xd0   : > { %925 = vadd.xlane.f32.xlu0 %v924_v6 }
 0x15d   : > { %v926_v15 = vpop.xlane.xlu0 %925 }
 0x15e   : > { %v927_v16 = vmul.f32 0.03125, %v926_v15 }
 0x160   : > { %v928_v18 = vadd.f32 1e-06, %v927_v16 }
 0x162   : > { %8448 = vrsqrt.f32 %v928_v18 }
 0x16c   : > { %v8449_v24 = vpop.eup %8448 }
 0x16d   : > { %v930_v25 = vmul.f32 %v8449_v24, %v922_v4 }
 0x16f   : > { %v935_v27 = vmul.f32 %v934_v23, %v930_v25 }
 0x171   : > { %v940_v28 = vadd.f32 %v939_v26, %v935_v27 }
 0x173   : > { %7711 = vmatmul.mubr.msk.f32.vlgmr.msra.gmra.mrb[0].mxu1 %vm916_vm0, %v940_v28 }
 0x174   : > { %7715 = vmatprep.mubr.msk.f32.mxu1 %vm8633_vm1, %v8634_v13 }
 0x246   : > { %v1026_v30 = vpop.f32.mrb[0].mxu1 }
 0x247   : > { %v8900_v31 = vadd.f32 %v7302_v29, %v1026_v30  ;;  %v7712_v32 = vpop.f32.mrb[1].mxu1 }
 0x249   : > { %1196 = vrot.lane.b32.xlu0 %v8900_v31, %s10087_s4  ;;  %1031 = vrot.lane.b32.xlu1 %v8900_v31, %s10089_s6  ;;  %s10097_s4 = smov 16   ;;  %s10171_s6 = smov %s10170_s30 }
 0x24d   : > { %1198 = vrot.lane.b32.xlu1 %v8900_v31, %s10091_s0  ;;  %s10168_s0 = sld [smem:[#allocation23_spill]] }
 0x251   : > { %1369 = vrot.lane.b32.xlu1 %v8900_v31, %s10083_s11 }
 0x255   : > { %1367 = vrot.lane.b32.xlu1 %v8900_v31, %s10075_s8 }
 0x259   : > { %1540 = vrot.lane.b32.xlu1 %v8900_v31, %s10073_s9  ;;  %s10165_s9 = sld [smem:[#allocation17_spill]] }
 0x25d   : > { %1538 = vrot.lane.b32.xlu1 %v8900_v31, %s10071_s29  ;;  %s10079_s29 = smov 40  }
 0x25f   : > { %s900_s8 = scalar_lea.vmem %s10165_s9, %s8845_s1  ;;  %s10081_s9 = smov 48  }
 0x260   : > { %v8941_v40 = vld [vmem:[%s900_s8] sm:$0xff]  ;;  %s10085_s8 = smov 64  }
 0x2bb   : > { %v1032_v33 = vpop.permute.xlu1 %1031  ;;  %v1197_v35 = vpop.permute.xlu0 %1196 }
 0x2bc   : > { %7714 = vmatpush3.xpose.msk.msra.mxu1 %vm1033_vm2, %v1032_v33 }
 0x2bd   : > { %7718 = vmatprep.subr.mxu1 %v8634_v13 }
 0x2bf   : > { %7716 = vmatmul.mubr.msk.f32.vlgmr.msra.gmra.mrb[2].mxu1 %vm1033_vm2, %v8900_v31  ;;  %v1199_v34 = vpop.permute.xlu1 %1198 }
 0x2c0   : > { %7724 = vmatpush3.xpose.msk.msra.mxu0 %vm1033_vm2, %v1199_v34  ;;  %7720 = vmatprep.mubr.msk.f32.mxu1 %vm8633_vm1, %v8634_v13 }
 0x2c1   : > { %7733 = vmatprep.subr.mxu0 %v8634_v13 }
 0x2c3   : > { %7726 = vmatmul.mubr.msk.f32.vlgmr.msra.gmra.mrb[0].mxu0 %vm1033_vm2, %v1197_v35  ;;  %v1370_v36 = vpop.permute.xlu1 %1369 }
 0x2c4   : > { %7734 = vmatpush3.xpose.msk.msra.mxu0 %vm1033_vm2, %v1370_v36  ;;  %7735 = vmatprep.mubr.msk.f32.mxu0 %vm8633_vm1, %v8634_v13 }
 0x2c5   : > { %7743 = vmatprep.subr.mxu0 %v8634_v13 }
 0x2c7   : > { %v1368_v37 = vpop.permute.xlu1 %1367 }
 0x2c8   : > { %7736 = vmatmul.mubr.msk.f32.vlgmr.msra.gmra.mrb[2].mxu0 %vm1033_vm2, %v1368_v37 }
 0x2c9   : > { %7745 = vmatprep.mubr.msk.f32.mxu0 %vm8633_vm1, %v8634_v13 }
 0x2cb   : > { %v1541_v38 = vpop.permute.xlu1 %1540 }
 0x2cc   : > { %7744 = vmatpush3.xpose.msk.msra.mxu0 %vm1033_vm2, %v1541_v38 }
 0x2cd   : > { %8222 = vmatprep.subr.bf16.mxu0 %v8632_v10 }
 0x2cf   : > { %v1539_v39 = vpop.permute.xlu1 %1538 }
 0x2d0   : > { %7746 = vmatmul.mubr.msk.f32.vlgmr.msra.gmra.mrb[4].mxu0 %vm1033_vm2, %v1539_v39 }
 0x2d1   : > { %7761 = vmatprep.mubr.msk.f32.mxu0 %vm8633_vm1, %v8634_v13 }
 0x392   : > { %v1104_v41 = vpop.f32.mrb[2].mxu1 }
 0x393   : > { %v1105_v42 = vadd.f32 %v1104_v41, %v8941_v40  ;;  %v7717_v43 = vpop.f32.mrb[3].mxu1 }
 0x395   : > { %v1108_v44 = vsel %vm1033_vm2, %v1105_v42, -inf }
 0x396   : > { %v1270_v45 = vpop.f32.mrb[0].mxu0  ;;  %1109 = vmax.xlane.f32.xlu1 %v1108_v44 }
 0x397   : > { %v1271_v46 = vadd.f32 %v1270_v45, %v8941_v40  ;;  %v7727_v47 = vpop.f32.mrb[1].mxu0 }
 0x399   : > { %v1274_v48 = vsel %vm1033_vm2, %v1271_v46, -inf }
 0x39a   : > { %1275 = vmax.xlane.f32.xlu0 %v1274_v48 }
 0x39b   : > { %v1441_v49 = vpop.f32.mrb[2].mxu0 }
 0x39c   : > { %v1442_v50 = vadd.f32 %v1441_v49, %v8941_v40  ;;  %v7737_v51 = vpop.f32.mrb[3].mxu0 }
 0x39e   : > { %v1445_v52 = vsel %vm1033_vm2, %v1442_v50, -inf }
 0x39f   : > { %1446 = vmax.xlane.f32.xlu1 %v1445_v52 }
 0x3a3   : > { %v1612_v53 = vpop.f32.mrb[4].mxu0 }
 0x3a4   : > { %v1613_v54 = vadd.f32 %v1612_v53, %v8941_v40  ;;  %v7747_v55 = vpop.f32.mrb[5].mxu0 }
 0x3a5   : > { %v7316_v55 = vld [vmem:[%s10168_s0] ss:$0 sm:$0xff] }
 0x3a6   : > { %v1616_v56 = vsel %vm1033_vm2, %v1613_v54, -inf }
 0x3a7   : > { %1617 = vmax.xlane.f32.xlu0 %v1616_v56 }
 0x3b0   : > { %1119 = vrot.lane.b32.xlu1 %v8900_v31, %s10085_s8  ;;  %s10175_s8 = smov 96  }
 0x423   : > { %v1110_v57 = vpop.xlane.xlu1 %1109 }
 0x424   : > { %v1111_v58 = vsub.f32 %v1105_v42, %v1110_v57 }
 0x426   : > { %v1112_v59 = vmul.f32 1.442695, %v1111_v58 }
 0x427   : > { %v1276_v60 = vpop.xlane.xlu0 %1275 }
 0x428   : > { %8450 = vpow2.f32 %v1112_v59  ;;  %v1277_v61 = vsub.f32 %v1271_v46, %v1276_v60 }
 0x42a   : > { %v1278_v62 = vmul.f32 1.442695, %v1277_v61 }
 0x42c   : > { %8452 = vpow2.f32 %v1278_v62  ;;  %v1447_v63 = vpop.xlane.xlu1 %1446 }
 0x42d   : > { %v1448_v1 = vsub.f32 %v1442_v50, %v1447_v63 }
 0x42f   : > { %v1449_v2 = vmul.f32 1.442695, %v1448_v1 }
 0x430   : > { %v1120_v3 = vpop.permute.xlu1 %1119 }
 0x431   : > { %8454 = vpow2.f32 %v1449_v2  ;;  %7719 = vmatpush3.msra.mxu1 %v1120_v3 }
 0x432   : > { %v8451_v4 = vpop.eup %8450  ;;  %7728 = vmatprep.subr.mxu1 %v8634_v13 }
 0x433   : > { %v1114_v5 = vsel %vm1033_vm2, %v8451_v4, 0.0 }
 0x434   : > { %v1618_v6 = vpop.xlane.xlu0 %1617  ;;  %1115 = vadd.xlane.f32.xlu1 %v1114_v5 }
 0x435   : > { %v1619_v7 = vsub.f32 %v1613_v54, %v1618_v6 }
 0x436   : > { %v8453_v8 = vpop.eup %8452 }
 0x437   : > { %v1620_v9 = vmul.f32 1.442695, %v1619_v7  ;;  %v1280_v11 = vsel %vm1033_vm2, %v8453_v8, 0.0 }
 0x438   : > { %1281 = vadd.xlane.f32.xlu0 %v1280_v11  ;;  %v1820_v11 = vld [vmem:[%s10171_s6 + $0x10] sm:$0xff] }
 0x439   : > { %8456 = vpow2.f32 %v1620_v9  ;;  %v1819_v9 = vld [vmem:[%s10171_s6 + $0x8] sm:$0xff] }
 0x43b   : > { %v8455_v12 = vpop.eup %8454 }
 0x43c   : > { %v1451_v14 = vsel %vm1033_vm2, %v8455_v12, 0.0 }
 0x43d   : > { %1452 = vadd.xlane.f32.xlu1 %v1451_v14  ;;  %v1821_v14 = vld [vmem:[%s10171_s6 + $0x18] sm:$0xff] }
 0x443   : > { %v8457_v15 = vpop.eup %8456 }
 0x444   : > { %v1622_v16 = vsel %vm1033_vm2, %v8457_v15, 0.0 }
 0x445   : > { %1623 = vadd.xlane.f32.xlu0 %v1622_v16  ;;  %v1822_v16 = vld [vmem:[%s10171_s6 + $0x20] sm:$0xff] }
 0x44e   : > { %1456 = vrot.lane.b32.xlu1 %v8900_v31, %s10081_s9  ;;  %s10166_s9 = sld [smem:[#allocation22_spill]] }
 0x452   : > { %1627 = vrot.lane.b32.xlu1 %v8900_v31, %s10079_s29  ;;  %s10099_s29 = smov 8  }
 0x454   : > { %s10167_s11 = smov %s10166_s9  ;;  %v946_v38 = vld [vmem:[%s10166_s9] sm:$0xff]  ;;  %s10176_s9 = smov 120  }
 0x455   : > { %v947_v39 = vld [vmem:[%s10167_s11 + $0x8] sm:$0xff]  ;;  %v948_v42 = vld [vmem:[%s10167_s11 + $0x10] sm:$0xff]  ;;  %v949_v43 = vld [vmem:[%s10167_s11 + $0x18] sm:$0xff] }
 0x456   : > { %v8223_v41 = vpack.c.bf16 %v947_v39, %v946_v38  ;;  %v8226_v44 = vpack.c.bf16 %v949_v43, %v948_v42  ;;  %v7320_v42 = vld [vmem:[%s10173_s5] ss:$0 sm:$0xff]  ;;  %s10177_s5 = smov 80  }
 0x458   : > { %8224 = vmatpush3.bf16.msra.mxu0 %v8223_v41 }
 0x459   : > { %8225 = vmatprep.subr.bf16.mxu0 %v8632_v10 }
 0x45b   : > { %1285 = vrot.lane.b32.xlu0 %v8900_v31, %s10077_s7  ;;  %s10169_s7 = sld [smem:[#allocation24_spill]] }
 0x45c   : > { %8227 = vmatpush3.bf16.msra.mxu0 %v8226_v44 }
 0x45d   : > { %8234 = vmatprep.subr.bf16.mxu0 %v8632_v10 }
 0x461   : > { %v1813_v3 = vld [vmem:[%s10169_s7] sm:$0xff]  ;;  %v1815_v5 = vld [vmem:[%s10169_s7 + $0x10] sm:$0xff]  ;;  %v1816_v6 = vld [vmem:[%s10169_s7 + $0x18] sm:$0xff] }
 0x462   : > { %v8232_v7 = vpack.c.bf16 %v1816_v6, %v1815_v5  ;;  %v7333_v5 = vld [vmem:[%s10164_s12 + $0x1] ss:$0 sm:$0xff]  ;;  %s10183_s12 = smov 40  }
 0x4c1   : > { %v1116_v17 = vpop.xlane.xlu1 %1115 }
 0x4c2   : > { %8458 = vrcp.f32 %v1116_v17  ;;  %v1823_v17 = vld [vmem:[%s10171_s6 + $0x28] sm:$0xff] }
 0x4c5   : > { %v1282_v18 = vpop.xlane.xlu0 %1281 }
 0x4c6   : > { %8460 = vrcp.f32 %v1282_v18  ;;  %v8241_v18 = vpack.c.bf16 %v1823_v17, %v1822_v16 }
 0x4ca   : > { %v1453_v23 = vpop.xlane.xlu1 %1452 }
 0x4cb   : > { %8462 = vrcp.f32 %v1453_v23 }
 0x4cc   : > { %v8459_v24 = vpop.eup %8458 }
 0x4cd   : > { %v1118_v25 = vmul.f32 %v8459_v24, %v8451_v4 }
 0x4ce   : > { %v1457_v28 = vpop.permute.xlu1 %1456 }
 0x4cf   : > { %7721 = vmatmul.mubr.msk.f32.vlgmr.msra.gmra.mrb[4].mxu1 %vm1033_vm2, %v1118_v25 }
 0x4d0   : > { %7730 = vmatprep.mubr.msk.f32.mxu1 %vm8633_vm1, %v8634_v13  ;;  %v8461_v27 = vpop.eup %8460 }
 0x4d1   : > { %v1284_v30 = vmul.f32 %v8461_v27, %v8453_v8  ;;  %v1818_v8 = vld [vmem:[%s10170_s30] sm:$0xff]  ;;  %v9052_v27 = vsub.s32 3, %v8877_v19  ;;  %s10179_s30 = smov 72  }
 0x4d2   : > { %v1624_v26 = vpop.xlane.xlu0 %1623  ;;  %v1628_v33 = vpop.permute.xlu1 %1627 }
 0x4d3   : > { %8464 = vrcp.f32 %v1624_v26  ;;  %v9049_v26 = vsub.s32 2, %v8877_v19 }
 0x4d5   : > { %v8463_v31 = vpop.eup %8462 }
 0x4d6   : > { %v1286_v29 = vpop.permute.xlu0 %1285  ;;  %v1455_v32 = vmul.f32 %v8463_v31, %v8455_v12  ;;  %v8235_v12 = vpack.c.bf16 %v1819_v9, %v1818_v8  ;;  %v1811_v31 = vrot.slane %v8885_v21, %v9052_v27 }
 0x4d7   : > { %7729 = vmatpush3.msra.mxu1 %v1286_v29 }
 0x4d8   : > { %7731 = vmatmul.mubr.msk.f32.vlgmr.msra.gmra.mrb[6].mxu1 %vm1033_vm2, %v1284_v30  ;;  %7738 = vmatprep.subr.mxu1 %v8634_v13 }
 0x4d9   : > { %7739 = vmatpush3.msra.mxu1 %v1457_v28  ;;  %7740 = vmatprep.mubr.msk.f32.mxu1 %vm8633_vm1, %v8634_v13  ;;  %v1806_v28 = vrot.slane %v8885_v21, %v9049_v26 }
 0x4da   : > { %7748 = vmatprep.subr.mxu1 %v8634_v13 }
 0x4dc   : > { %7741 = vmatmul.mubr.msk.f32.vlgmr.msra.gmra.mrb[8].mxu1 %vm1033_vm2, %v1455_v32 }
 0x4dd   : > { %v8465_v34 = vpop.eup %8464  ;;  %7749 = vmatpush3.msra.mxu1 %v1628_v33  ;;  %7750 = vmatprep.mubr.msk.f32.mxu1 %vm8633_vm1, %v8634_v13 }
 0x4de   : > { %v1626_v35 = vmul.f32 %v8465_v34, %v8457_v15  ;;  %8228 = vmatprep.subr.bf16.mxu1 %v8632_v10  ;;  %v8238_v15 = vpack.c.bf16 %v1821_v14, %v1820_v11  ;;  %v1824_v34 = vld [vmem:[%s10171_s6 + $0x30] sm:$0xff] }
 0x4e0   : > { %7751 = vmatmul.mubr.msk.f32.vlgmr.msra.gmra.mrb[10].mxu1 %vm1033_vm2, %v1626_v35  ;;  %v1825_v35 = vld [vmem:[%s10171_s6 + $0x38] sm:$0xff] }
 0x4e1   : > { %7772 = vmatprep.mubr.msk.f32.mxu1 %vm8633_vm1, %v8634_v13 }
 0x5a2   : > { %v1191_v36 = vpop.f32.mrb[4].mxu1 }
 0x5a3   : > { %1195 = vst.msk [vmem:[#allocation2] sm:$0xff] %vm1033_vm2, %v1191_v36  ;;  %v7722_v37 = vpop.f32.mrb[5].mxu1  ;;  %v8244_v36 = vpack.c.bf16 %v1825_v35, %v1824_v34 }
 0x5ab   : > { %v1357_v45 = vpop.f32.mrb[6].mxu1 }
 0x5ac   : > { %1362 = vrot.lane.b32.xlu0 %v1357_v45, %s10099_s29  ;;  %v7732_v46 = vpop.f32.mrb[7].mxu1  ;;  %s10172_s29 = sld [smem:[#allocation25_spill]] }
 0x5af   : > { %v1528_v47 = vpop.f32.mrb[8].mxu1 }
 0x5b0   : > { %1533 = vrot.lane.b32.xlu1 %v1528_v47, %s10097_s4  ;;  %v7742_v48 = vpop.f32.mrb[9].mxu1  ;;  %s10180_s4 = smov 104  }
 0x5b2   : > { %v7318_v21 = vld [vmem:[%s10172_s29] ss:$0 sm:$0xff] }
 0x5b3   : > { %v1699_v49 = vpop.f32.mrb[10].mxu1 }
 0x5b4   : > { %1704 = vrot.lane.b32.xlu0 %v1699_v49, %s10095_s28  ;;  %v7752_v50 = vpop.f32.mrb[11].mxu1  ;;  %s10181_s28 = smov 64  }
 0x61e   : > { %v1363_v51 = vpop.permute.xlu0 %1362 }
 0x61f   : > { %1366 = vst.msk [vmem:[#allocation2] sm:$0xff] %vm1365_vm3, %v1363_v51 }
 0x622   : > { %v1534_v52 = vpop.permute.xlu1 %1533 }
 0x623   : > { %1537 = vst.msk [vmem:[#allocation2] sm:$0xff] %vm1536_vm4, %v1534_v52 }
 0x626   : > { %v1705_v53 = vpop.permute.xlu0 %1704 }
 0x627   : > { %1708 = vst.msk [vmem:[#allocation2] sm:$0xff] %vm1707_vm5, %v1705_v53  ;;  %v7323_v53 = vld [vmem:[%s10162_s10 + $0x20] sm:$0xff] }
 0x62e   : > { %v1709_v54 = vld [vmem:[#allocation2] sm:$0xff] }
 0x62f   : > { %7762 = vmatmul.mubr.msk.f32.vlgmr.msra.gmra.mrb[6].mxu0 %vm916_vm0, %v1709_v54  ;;  %v7324_v54 = vld [vmem:[%s10162_s10 + $0x28] sm:$0xff] }
 0x630   : > { %7791 = vmatprep.mubr.msk.f32.mxu0 %vm8633_vm1, %v8634_v13  ;;  %8236 = vmatpush3.bf16.msra.mxu0 %v8235_v12 }
 0x631   : > { %8237 = vmatprep.subr.bf16.mxu0 %v8632_v10 }
 0x634   : > { %8239 = vmatpush3.bf16.msra.mxu0 %v8238_v15 }
 0x635   : > { %8240 = vmatprep.subr.bf16.mxu0 %v8632_v10 }
 0x638   : > { %8242 = vmatpush3.bf16.msra.mxu0 %v8241_v18 }
 0x639   : > { %8243 = vmatprep.subr.bf16.mxu0 %v8632_v10 }
 0x63c   : > { %8245 = vmatpush3.bf16.msra.mxu0 %v8244_v36 }
 0x63d   : > { %7815 = vmatprep.subr.mxu0 %v8634_v13 }
 0x702   : > { %v1785_v56 = vpop.f32.mrb[6].mxu0 }
 0x703   : > { %v1786_v57 = vadd.f32 %v7316_v55, %v1785_v56  ;;  %v7763_v58 = vpop.f32.mrb[7].mxu0  ;;  %v8247_v55 = vpack.c.bf16 %v7324_v54, %v7323_v53  ;;  %v7325_v56 = vld [vmem:[%s10162_s10 + $0x30] sm:$0xff] }
 0x705   : > { %v9007_v59 = vadd.f32 %v1786_v57, %v8851_v0  ;;  %v1814_v0 = vld [vmem:[%s10169_s7 + $0x8] sm:$0xff]  ;;  %v7326_v57 = vld [vmem:[%s10162_s10 + $0x38] sm:$0xff]  ;;  %s10182_s10 = smov 48  }
 0x706   : > { %v8229_v4 = vpack.c.bf16 %v1814_v0, %v1813_v3  ;;  %v8250_v58 = vpack.c.bf16 %v7326_v57, %v7325_v56 }
 0x707   : > { %v1790_v60 = vsel %vm916_vm0, %v9007_v59, 0.0 }
 0x708   : > { %1791 = vadd.xlane.f32.xlu1 %v1790_v60  ;;  %8230 = vmatpush3.bf16.msra.mxu1 %v8229_v4 }
 0x709   : > { %8231 = vmatprep.subr.bf16.mxu1 %v8632_v10 }
 0x70c   : > { %8233 = vmatpush3.bf16.msra.mxu1 %v8232_v7 }
 0x70d   : > { %8246 = vmatprep.subr.bf16.mxu1 %v8632_v10 }
 0x795   : > { %v1792_v61 = vpop.xlane.xlu1 %1791 }
 0x796   : > { %v1793_v62 = vmul.f32 0.03125, %v1792_v61 }
 0x798   : > { %v1794_v63 = vsub.f32 %v9007_v59, %v1793_v62  ;;  %v9101_v62 = vld [vmem:[%s10163_s13 + $0x4] sm:$0xf]  ;;  %s10184_s13 = smov 56  }
 0x799   : > { %v2011_v3 = vrot.slane %v9101_v62, %v8888_v22 }
 0x79a   : > { %v1795_v1 = vmul.f32 %v1794_v63, %v1794_v63 }
 0x79c   : > { %v1796_v2 = vsel %vm916_vm0, %v1795_v1, 0.0 }
 0x79d   : > { %1797 = vadd.xlane.f32.xlu0 %v1796_v2 }
 0x82a   : > { %v1798_v23 = vpop.xlane.xlu0 %1797 }
 0x82b   : > { %v1799_v24 = vmul.f32 0.03125, %v1798_v23 }
 0x82d   : > { %v1800_v25 = vadd.f32 1e-06, %v1799_v24 }
 0x82f   : > { %8466 = vrsqrt.f32 %v1800_v25 }
 0x839   : > { %v8467_v29 = vpop.eup %8466 }
 0x83a   : > { %v1802_v30 = vmul.f32 %v8467_v29, %v1794_v63  ;;  %v2006_v63 = vrot.slane %v9101_v62, %v8880_v20 }
 0x83c   : > { %v1807_v32 = vmul.f32 %v1806_v28, %v1802_v30 }
 0x83e   : > { %v1812_v33 = vadd.f32 %v1811_v31, %v1807_v32 }
 0x840   : > { %7773 = vmatmul.mubr.msk.f32.vlgmr.msra.gmra.mrb[12].mxu1 %vm916_vm0, %v1812_v33 }
 0x841   : > { %7802 = vmatprep.mubr.msk.f32.mxu1 %vm8633_vm1, %v8634_v13  ;;  %8248 = vmatpush3.bf16.msra.mxu1 %v8247_v55 }
 0x842   : > { %8249 = vmatprep.subr.bf16.mxu1 %v8632_v10 }
 0x845   : > { %8251 = vmatpush3.bf16.msra.mxu1 %v8250_v58 }
 0x846   : > { %7805 = vmatprep.subr.mxu1 %v8634_v13 }
 0x913   : > { %v1902_v37 = vpop.f32.mrb[12].mxu1 }
 0x914   : > { %v1903_v38 = vadd.f32 %v7318_v21, %v1902_v37  ;;  %v7774_v39 = vpop.f32.mrb[13].mxu1 }
 0x916   : > { %v1906_v41 = vmax.f32 %v1903_v38, 0.0 }
 0x918   : > { %7792 = vmatmul.mubr.msk.f32.vlgmr.msra.gmra.mrb[8].mxu0 %vm1913_vm6, %v1906_v41 }
 0x919   : > { %7817 = vmatprep.mubr.msk.f32.mxu0 %vm8633_vm1, %v8634_v13 }
 0x9eb   : > { %v1983_v43 = vpop.f32.mrb[8].mxu0 }
 0x9ec   : > { %v1984_v44 = vadd.f32 %v7320_v42, %v1983_v43  ;;  %v7793_v45 = vpop.f32.mrb[9].mxu0 }
 0x9ee   : > { %v9078_v46 = vadd.f32 %v1984_v44, %v9007_v59 }
 0x9f0   : > { %v1990_v47 = vsel %vm916_vm0, %v9078_v46, 0.0 }
 0x9f1   : > { %1991 = vadd.xlane.f32.xlu0 %v1990_v47 }
 0xa7e   : > { %v1992_v48 = vpop.xlane.xlu0 %1991 }
 0xa7f   : > { %v1993_v49 = vmul.f32 0.03125, %v1992_v48 }
 0xa81   : > { %v1994_v50 = vsub.f32 %v9078_v46, %v1993_v49 }
 0xa83   : > { %v1995_v51 = vmul.f32 %v1994_v50, %v1994_v50 }
 0xa85   : > { %v1996_v52 = vsel %vm916_vm0, %v1995_v51, 0.0 }
 0xa86   : > { %1997 = vadd.xlane.f32.xlu1 %v1996_v52 }
 0xb13   : > { %v1998_v59 = vpop.xlane.xlu1 %1997 }
 0xb14   : > { %v1999_v60 = vmul.f32 0.03125, %v1998_v59 }
 0xb16   : > { %v2000_v61 = vadd.f32 1e-06, %v1999_v60 }
 0xb18   : > { %8468 = vrsqrt.f32 %v2000_v61 }
 0xb22   : > { %v8469_v1 = vpop.eup %8468 }
 0xb23   : > { %v2002_v2 = vmul.f32 %v8469_v1, %v1994_v50 }
 0xb25   : > { %v2007_v0 = vmul.f32 %v2006_v63, %v2002_v2 }
 0xb27   : > { %v2012_v4 = vadd.f32 %v2011_v3, %v2007_v0 }
 0xb29   : > { %7803 = vmatmul.mubr.msk.f32.vlgmr.msra.gmra.mrb[14].mxu1 %vm916_vm0, %v2012_v4 }
 0xb2a   : > { %7807 = vmatprep.mubr.msk.f32.mxu1 %vm8633_vm1, %v8634_v13 }
 0xbfc   : > { %v2102_v6 = vpop.f32.mrb[14].mxu1 }
 0xbfd   : > { %v9113_v7 = vadd.f32 %v7333_v5, %v2102_v6  ;;  %v7804_v8 = vpop.f32.mrb[15].mxu1 }
 0xbff   : > { %2273 = vrot.lane.b32.xlu1 %v9113_v7, %s10174_s2  ;;  %2107 = vrot.lane.b32.xlu0 %v9113_v7, %s10175_s8 }
 0xc03   : > { %2271 = vrot.lane.b32.xlu1 %v9113_v7, %s10176_s9  ;;  %2443 = vrot.lane.b32.xlu0 %v9113_v7, %s10177_s5 }
 0xc07   : > { %2441 = vrot.lane.b32.xlu1 %v9113_v7, %s10178_s3  ;;  %2613 = vrot.lane.b32.xlu0 %v9113_v7, %s10179_s30 }
 0xc0b   : > { %2611 = vrot.lane.b32.xlu1 %v9113_v7, %s10180_s4 }
 0xc71   : > { %v2274_v9 = vpop.permute.xlu1 %2273  ;;  %v2108_v11 = vpop.permute.xlu0 %2107 }
 0xc72   : > { %7806 = vmatpush3.xpose.msk.msra.mxu1 %vm1033_vm2, %v2108_v11  ;;  %7816 = vmatpush3.xpose.msk.msra.mxu0 %vm1033_vm2, %v2274_v9 }
 0xc73   : > { %7825 = vmatprep.subr.mxu0 %v8634_v13  ;;  %7810 = vmatprep.subr.mxu1 %v8634_v13 }
 0xc75   : > { %v2272_v12 = vpop.permute.xlu1 %2271  ;;  %7808 = vmatmul.mubr.msk.f32.vlgmr.msra.gmra.mrb[16].mxu1 %vm1033_vm2, %v9113_v7  ;;  %v2444_v14 = vpop.permute.xlu0 %2443 }
 0xc76   : > { %7818 = vmatmul.mubr.msk.f32.vlgmr.msra.gmra.mrb[10].mxu0 %vm1033_vm2, %v2272_v12  ;;  %7812 = vmatprep.mubr.msk.f32.mxu1 %vm8633_vm1, %v8634_v13 }
 0xc77   : > { %7826 = vmatpush3.xpose.msk.msra.mxu0 %vm1033_vm2, %v2444_v14  ;;  %7827 = vmatprep.mubr.msk.f32.mxu0 %vm8633_vm1, %v8634_v13 }
 0xc78   : > { %7835 = vmatprep.subr.mxu0 %v8634_v13 }
 0xc79   : > { %v2442_v15 = vpop.permute.xlu1 %2441  ;;  %v2614_v16 = vpop.permute.xlu0 %2613 }
 0xc7a   : > { %7828 = vmatmul.mubr.msk.f32.vlgmr.msra.gmra.mrb[12].mxu0 %vm1033_vm2, %v2442_v15  ;;  %v7328_v15 = vld [vmem:[%s10167_s11 + $0x20] sm:$0xff] }
 0xc7b   : > { %7836 = vmatpush3.xpose.msk.msra.mxu0 %vm1033_vm2, %v2614_v16  ;;  %7837 = vmatprep.mubr.msk.f32.mxu0 %vm8633_vm1, %v8634_v13  ;;  %v7329_v16 = vld [vmem:[%s10167_s11 + $0x28] sm:$0xff] }
 0xc7c   : > { %8252 = vmatprep.subr.bf16.mxu0 %v8632_v10 }
 0xc7d   : > { %v2612_v17 = vpop.permute.xlu1 %2611 }
 0xc7e   : > { %7838 = vmatmul.mubr.msk.f32.vlgmr.msra.gmra.mrb[14].mxu0 %vm1033_vm2, %v2612_v17 }
 0xc7f   : > { %7853 = vmatprep.mubr.msk.f32.mxu0 %vm8633_vm1, %v8634_v13 }
 0xd48   : > { %v2179_v18 = vpop.f32.mrb[16].mxu1 }
 0xd49   : > { %v2180_v23 = vadd.f32 %v2179_v18, %v8941_v40  ;;  %v7809_v24 = vpop.f32.mrb[17].mxu1  ;;  %v2345_v25 = vpop.f32.mrb[10].mxu0  ;;  %v8253_v18 = vpack.c.bf16 %v7329_v16, %v7328_v15  ;;  %v2878_v16 = vrot.slane %v9101_v62, %v9049_v26 }
 0xd4a   : > { %v2346_v28 = vadd.f32 %v2345_v25, %v8941_v40  ;;  %v7819_v29 = vpop.f32.mrb[11].mxu0  ;;  %v7331_v24 = vld [vmem:[%s10167_s11 + $0x38] sm:$0xff] }
 0xd4b   : > { %v2183_v30 = vsel %vm1033_vm2, %v2180_v23, -inf  ;;  %8254 = vmatpush3.bf16.msra.mxu0 %v8253_v18 }
 0xd4c   : > { %2184 = vmax.xlane.f32.xlu0 %v2183_v30  ;;  %v2349_v31 = vsel %vm1033_vm2, %v2346_v28, -inf  ;;  %8255 = vmatprep.subr.bf16.mxu0 %v8632_v10 }
 0xd4d   : > { %2350 = vmax.xlane.f32.xlu1 %v2349_v31  ;;  %v2515_v32 = vpop.f32.mrb[12].mxu0 }
 0xd4e   : > { %v2516_v33 = vadd.f32 %v2515_v32, %v8941_v40  ;;  %v7829_v34 = vpop.f32.mrb[13].mxu0 }
 0xd50   : > { %v2519_v35 = vsel %vm1033_vm2, %v2516_v33, -inf }
 0xd51   : > { %v2685_v36 = vpop.f32.mrb[14].mxu0  ;;  %2520 = vmax.xlane.f32.xlu0 %v2519_v35  ;;  %v9208_v35 = vld [vmem:[%s896_s24] sm:$0xff]  ;;  %s10197_s24 = sld [smem:[#allocation32_spill]] }
 0xd52   : > { %v2686_v21 = vadd.f32 %v2685_v36, %v8941_v40  ;;  %v7839_v37 = vpop.f32.mrb[15].mxu0  ;;  %v3088_v36 = vsel %vm916_vm0, %v9208_v35, 0.0 }
 0xd54   : > { %v2689_v38 = vsel %vm1033_vm2, %v2686_v21, -inf }
 0xd55   : > { %2690 = vmax.xlane.f32.xlu0 %v2689_v38 }
 0xd5e   : > { %2194 = vrot.lane.b32.xlu1 %v9113_v7, %s10181_s28 }
 0xdd9   : > { %v2185_v39 = vpop.xlane.xlu0 %2184 }
 0xdda   : > { %v2186_v41 = vsub.f32 %v2180_v23, %v2185_v39  ;;  %v2351_v42 = vpop.xlane.xlu1 %2350  ;;  %v7330_v23 = vld [vmem:[%s10167_s11 + $0x30] sm:$0xff]  ;;  %s10192_s11 = sld [smem:[#allocation29_spill]] }
 0xddb   : > { %v2352_v43 = vsub.f32 %v2346_v28, %v2351_v42  ;;  %v8256_v28 = vpack.c.bf16 %v7331_v24, %v7330_v23  ;;  %v2883_v23 = vrot.slane %v9101_v62, %v9052_v27  ;;  %v3111_v24 = vld [vmem:[%s10043_s14] sm:$0xff]  ;;  %v3113_v62 = vld [vmem:[%s10043_s14 + $0x10] sm:$0xff] }
 0xddc   : > { %v2187_v44 = vmul.f32 1.442695, %v2186_v41 }
 0xddd   : > { %v2353_v45 = vmul.f32 1.442695, %v2352_v43  ;;  %8257 = vmatpush3.bf16.msra.mxu0 %v8256_v28  ;;  %v7347_v43 = vld [vmem:[%s10168_s0 + $0x1] ss:$0 sm:$0xff]  ;;  %s8649_s0 = smov [#allocation3]  }
 0xdde   : > { %8470 = vpow2.f32 %v2187_v44  ;;  %v2195_v47 = vpop.permute.xlu1 %2194  ;;  %v2521_v48 = vpop.xlane.xlu0 %2520  ;;  %8264 = vmatprep.subr.bf16.mxu0 %v8632_v10 }
 0xddf   : > { %8472 = vpow2.f32 %v2353_v45  ;;  %v2522_v49 = vsub.f32 %v2516_v33, %v2521_v48  ;;  %7811 = vmatpush3.msra.mxu1 %v2195_v47 }
 0xde0   : > { %7820 = vmatprep.subr.mxu1 %v8634_v13 }
 0xde1   : > { %v2523_v40 = vmul.f32 1.442695, %v2522_v49 }
 0xde2   : > { %v2691_v50 = vpop.xlane.xlu0 %2690 }
 0xde3   : > { %8474 = vpow2.f32 %v2523_v40  ;;  %v2692_v51 = vsub.f32 %v2686_v21, %v2691_v50 }
 0xde5   : > { %v2693_v52 = vmul.f32 1.442695, %v2692_v51 }
 0xde7   : > { %8476 = vpow2.f32 %v2693_v52 }
 0xde8   : > { %v8471_v53 = vpop.eup %8470 }
 0xde9   : > { %v8473_v54 = vpop.eup %8472  ;;  %v2189_v55 = vsel %vm1033_vm2, %v8471_v53, 0.0 }
 0xdea   : > { %2190 = vadd.xlane.f32.xlu1 %v2189_v55  ;;  %v2355_v56 = vsel %vm1033_vm2, %v8473_v54, 0.0 }
 0xdeb   : > { %2356 = vadd.xlane.f32.xlu0 %v2355_v56 }
 0xded   : > { %v8475_v57 = vpop.eup %8474 }
 0xdee   : > { %v2525_v58 = vsel %vm1033_vm2, %v8475_v57, 0.0 }
 0xdef   : > { %2526 = vadd.xlane.f32.xlu1 %v2525_v58 }
 0xdf1   : > { %v8477_v59 = vpop.eup %8476 }
 0xdf2   : > { %v2695_v60 = vsel %vm1033_vm2, %v8477_v59, 0.0 }
 0xdf3   : > { %2696 = vadd.xlane.f32.xlu0 %v2695_v60  ;;  %v7352_v60 = vld [vmem:[%s10169_s7 + $0x38] sm:$0xff] }
 0xe00   : > { %2530 = vrot.lane.b32.xlu1 %v9113_v7, %s10182_s10 }
 0xe04   : > { %2700 = vrot.lane.b32.xlu1 %v9113_v7, %s10183_s12 }
 0xe09   : > { %2360 = vrot.lane.b32.xlu0 %v9113_v7, %s10184_s13 }
 0xe77   : > { %v2191_v61 = vpop.xlane.xlu1 %2190 }
 0xe78   : > { %8478 = vrcp.f32 %v2191_v61  ;;  %v2357_v63 = vpop.xlane.xlu0 %2356 }
 0xe79   : > { %8480 = vrcp.f32 %v2357_v63  ;;  %v7354_v63 = vld [vmem:[%s10171_s6 + $0x40] sm:$0xff] }
 0xe7c   : > { %v2527_v1 = vpop.xlane.xlu1 %2526 }
 0xe7d   : > { %8482 = vrcp.f32 %v2527_v1  ;;  %v7355_v1 = vld [vmem:[%s10171_s6 + $0x48] sm:$0xff] }
 0xe80   : > { %v2697_v2 = vpop.xlane.xlu0 %2696  ;;  %v2531_v6 = vpop.permute.xlu1 %2530 }
 0xe81   : > { %8484 = vrcp.f32 %v2697_v2  ;;  %v7356_v2 = vld [vmem:[%s10171_s6 + $0x50] sm:$0xff] }
 0xe82   : > { %v8479_v3 = vpop.eup %8478 }
 0xe83   : > { %v2193_v0 = vmul.f32 %v8479_v3, %v8471_v53  ;;  %v8481_v4 = vpop.eup %8480  ;;  %v8265_v3 = vpack.c.bf16 %v7355_v1, %v7354_v63 }
 0xe84   : > { %v2361_v5 = vpop.permute.xlu0 %2360  ;;  %v2359_v7 = vmul.f32 %v8481_v4, %v8473_v54  ;;  %v2701_v12 = vpop.permute.xlu1 %2700 }
 0xe85   : > { %7813 = vmatmul.mubr.msk.f32.vlgmr.msra.gmra.mrb[18].mxu1 %vm1033_vm2, %v2193_v0  ;;  %v7357_v0 = vld [vmem:[%s10171_s6 + $0x58] sm:$0xff] }
 0xe86   : > { %7821 = vmatpush3.msra.mxu1 %v2361_v5  ;;  %7822 = vmatprep.mubr.msk.f32.mxu1 %vm8633_vm1, %v8634_v13  ;;  %v8268_v4 = vpack.c.bf16 %v7357_v0, %v7356_v2  ;;  %v7358_v5 = vld [vmem:[%s10171_s6 + $0x60] sm:$0xff] }
 0xe87   : > { %7830 = vmatprep.subr.mxu1 %v8634_v13  ;;  %v8483_v8 = vpop.eup %8482 }
 0xe88   : > { %v2529_v9 = vmul.f32 %v8483_v8, %v8475_v57  ;;  %v7350_v57 = vld [vmem:[%s10169_s7 + $0x28] sm:$0xff] }
 0xe89   : > { %7823 = vmatmul.mubr.msk.f32.vlgmr.msra.gmra.mrb[20].mxu1 %vm1033_vm2, %v2359_v7 }
 0xe8a   : > { %7831 = vmatpush3.msra.mxu1 %v2531_v6  ;;  %7832 = vmatprep.mubr.msk.f32.mxu1 %vm8633_vm1, %v8634_v13  ;;  %v7359_v6 = vld [vmem:[%s10171_s6 + $0x68] sm:$0xff] }
 0xe8b   : > { %7840 = vmatprep.subr.mxu1 %v8634_v13  ;;  %v8485_v11 = vpop.eup %8484  ;;  %v8271_v7 = vpack.c.bf16 %v7359_v6, %v7358_v5 }
 0xe8c   : > { %v2699_v14 = vmul.f32 %v8485_v11, %v8477_v59  ;;  %v7351_v59 = vld [vmem:[%s10169_s7 + $0x30] sm:$0xff] }
 0xe8d   : > { %7833 = vmatmul.mubr.msk.f32.vlgmr.msra.gmra.mrb[22].mxu1 %vm1033_vm2, %v2529_v9  ;;  %v8262_v61 = vpack.c.bf16 %v7352_v60, %v7351_v59 }
 0xe8e   : > { %7841 = vmatpush3.msra.mxu1 %v2701_v12  ;;  %7842 = vmatprep.mubr.msk.f32.mxu1 %vm8633_vm1, %v8634_v13 }
 0xe8f   : > { %8258 = vmatprep.subr.bf16.mxu1 %v8632_v10 }
 0xe91   : > { %7843 = vmatmul.mubr.msk.f32.vlgmr.msra.gmra.mrb[24].mxu1 %vm1033_vm2, %v2699_v14 }
 0xe92   : > { %7864 = vmatprep.mubr.msk.f32.mxu1 %vm8633_vm1, %v8634_v13 }
 0xf58   : > { %v2266_v17 = vpop.f32.mrb[18].mxu1 }
 0xf59   : > { %2270 = vst.msk [vmem:[#allocation2] sm:$0xff] %vm1033_vm2, %v2266_v17  ;;  %v7814_v25 = vpop.f32.mrb[19].mxu1 }
 0xf5a   : > { %v3112_v25 = vld [vmem:[%s10043_s14 + $0x8] sm:$0xff] }
 0xf5c   : > { %v2432_v29 = vpop.f32.mrb[20].mxu1 }
 0xf5d   : > { %2437 = vrot.lane.b32.xlu0 %v2432_v29, %s10185_s21  ;;  %v7824_v30 = vpop.f32.mrb[21].mxu1  ;;  %v9278_v29 = vld [vmem:[%s10055_s26] sm:$0x3f] }
 0xf60   : > { %v2602_v31 = vpop.f32.mrb[22].mxu1 }
 0xf61   : > { %2607 = vrot.lane.b32.xlu1 %v2602_v31, %s10186_s20  ;;  %v7834_v32 = vpop.f32.mrb[23].mxu1  ;;  %v8277_v31 = vpack.c.bf16 %v3112_v25, %v3111_v24 }
 0xf64   : > { %v2772_v33 = vpop.f32.mrb[24].mxu1 }
 0xf65   : > { %2777 = vrot.lane.b32.xlu0 %v2772_v33, %s10187_s18  ;;  %v7844_v34 = vpop.f32.mrb[25].mxu1  ;;  %s904_s18 = scalar_lea.vmem %s10189_s25, %s8845_s1  ;;  %s10190_s25 = smov 24  }
 0xf66   : > { %v3114_v34 = vld [vmem:[%s10043_s14 + $0x18] sm:$0xff]  ;;  %v9357_v63 = vld [vmem:[%s904_s18] sm:$0xff]  ;;  %s10201_s18 = sld [smem:[#allocation35_spill]] }
 0xf84   : > { %3089 = vadd.xlane.f32.xlu0 %v3088_v36  ;;  %v3104_v36 = vrot.slane %v9278_v29, %v8880_v20 }
 0xfcf   : > { %v2438_v21 = vpop.permute.xlu0 %2437 }
 0xfd0   : > { %2440 = vst.msk [vmem:[#allocation2] sm:$0xff] %vm1365_vm3, %v2438_v21  ;;  %v8280_v21 = vpack.c.bf16 %v3114_v34, %v3113_v62 }
 0xfd3   : > { %v2608_v37 = vpop.permute.xlu1 %2607 }
 0xfd4   : > { %2610 = vst.msk [vmem:[#allocation2] sm:$0xff] %vm1536_vm4, %v2608_v37 }
 0xfd7   : > { %v2778_v38 = vpop.permute.xlu0 %2777 }
 0xfd8   : > { %2780 = vst.msk [vmem:[#allocation2] sm:$0xff] %vm1707_vm5, %v2778_v38  ;;  %v3109_v38 = vrot.slane %v9278_v29, %v8888_v22 }
 0xfdf   : > { %v2781_v39 = vld [vmem:[#allocation2] sm:$0xff] }
 0xfe0   : > { %7854 = vmatmul.mubr.msk.f32.vlgmr.msra.gmra.mrb[16].mxu0 %vm916_vm0, %v2781_v39 }
 0xfe1   : > { %7883 = vmatprep.mubr.msk.f32.mxu0 %vm8633_vm1, %v8634_v13  ;;  %8266 = vmatpush3.bf16.msra.mxu0 %v8265_v3 }
 0xfe2   : > { %8267 = vmatprep.subr.bf16.mxu0 %v8632_v10 }
 0xfe5   : > { %8269 = vmatpush3.bf16.msra.mxu0 %v8268_v4 }
 0xfe6   : > { %8270 = vmatprep.subr.bf16.mxu0 %v8632_v10 }
 0xfe9   : > { %8272 = vmatpush3.bf16.msra.mxu0 %v8271_v7 }
 0xfea   : > { %8273 = vmatprep.subr.bf16.mxu0 %v8632_v10 }
0x1011   : > { %v3090_v41 = vpop.xlane.xlu0 %3089 }
0x1012   : > { %v3091_v42 = vmul.f32 0.03125, %v3090_v41  ;;  %v7360_v41 = vld [vmem:[%s10171_s6 + $0x70] sm:$0xff] }
0x1014   : > { %v3092_v44 = vsub.f32 %v9208_v35, %v3091_v42  ;;  %v7361_v42 = vld [vmem:[%s10171_s6 + $0x78] sm:$0xff]  ;;  %s10196_s6 = sld [smem:[#allocation19_spill]] }
0x1016   : > { %v3093_v40 = vmul.f32 %v3092_v44, %v3092_v44 }
0x1018   : > { %v3094_v51 = vsel %vm916_vm0, %v3093_v40, 0.0 }
0x101a   : > { %s908_s19 = scalar_lea.vmem %s10196_s6, %s8845_s1  ;;  %s10198_s1 = sld [smem:[#allocation33_spill]] }
0x101b   : > { %s10200_s6 = sld [smem:[#allocation36_spill]] }
0x10b3   : > { %v2857_v45 = vpop.f32.mrb[16].mxu0 }
0x10b4   : > { %v2858_v47 = vadd.f32 %v7347_v43, %v2857_v45  ;;  %v7855_v48 = vpop.f32.mrb[17].mxu0  ;;  %v8274_v43 = vpack.c.bf16 %v7361_v42, %v7360_v41 }
0x10b6   : > { %v9223_v49 = vadd.f32 %v2858_v47, %v9078_v46  ;;  %v7349_v46 = vld [vmem:[%s10169_s7 + $0x20] sm:$0xff]  ;;  %8275 = vmatpush3.bf16.msra.mxu0 %v8274_v43  ;;  %s10210_s7 = sld [smem:[#allocation38_spill]] }
0x10b7   : > { %v8259_v58 = vpack.c.bf16 %v7350_v57, %v7349_v46  ;;  %7907 = vmatprep.subr.mxu0 %v8634_v13 }
0x10b8   : > { %v2862_v50 = vsel %vm916_vm0, %v9223_v49, 0.0 }
0x10b9   : > { %2863 = vadd.xlane.f32.xlu1 %v2862_v50  ;;  %8260 = vmatpush3.bf16.msra.mxu1 %v8259_v58  ;;  %v7367_v50 = vld [vmem:[%s10044_s15] ss:$0 sm:$0xff] }
0x10ba   : > { %8261 = vmatprep.subr.bf16.mxu1 %v8632_v10 }
0x10bd   : > { %3095 = vadd.xlane.f32.xlu1 %v3094_v51  ;;  %8263 = vmatpush3.bf16.msra.mxu1 %v8262_v61 }
0x10be   : > { %8276 = vmatprep.subr.bf16.mxu1 %v8632_v10 }
0x1146   : > { %v2864_v52 = vpop.xlane.xlu1 %2863 }
0x1147   : > { %v2865_v53 = vmul.f32 0.03125, %v2864_v52 }
0x1149   : > { %v2866_v54 = vsub.f32 %v9223_v49, %v2865_v53 }
0x114a   : > { %v3096_v8 = vpop.xlane.xlu1 %3095 }
0x114b   : > { %v2867_v55 = vmul.f32 %v2866_v54, %v2866_v54  ;;  %v3097_v9 = vmul.f32 0.03125, %v3096_v8 }
0x114d   : > { %v2868_v56 = vsel %vm916_vm0, %v2867_v55, 0.0  ;;  %v3098_v14 = vadd.f32 1e-06, %v3097_v9 }
0x114e   : > { %2869 = vadd.xlane.f32.xlu0 %v2868_v56 }
0x11db   : > { %v2870_v11 = vpop.xlane.xlu0 %2869 }
0x11dc   : > { %v2871_v12 = vmul.f32 0.03125, %v2870_v11 }
0x11de   : > { %v2872_v15 = vadd.f32 1e-06, %v2871_v12 }
0x11e0   : > { %8486 = vrsqrt.f32 %v2872_v15 }
0x11e1   : > { %8488 = vrsqrt.f32 %v3098_v14 }
0x11ea   : > { %v8487_v17 = vpop.eup %8486 }
0x11eb   : > { %v2874_v18 = vmul.f32 %v8487_v17, %v2866_v54  ;;  %v8489_v28 = vpop.eup %8488 }
0x11ec   : > { %v3100_v32 = vmul.f32 %v8489_v28, %v3092_v44  ;;  %v7363_v44 = vld [vmem:[%s10172_s29 + $0x1] ss:$0 sm:$0xff]  ;;  %s10205_s29 = sld [smem:[#allocation33_spill]] }
0x11ed   : > { %v2879_v30 = vmul.f32 %v2878_v16, %v2874_v18 }
0x11ee   : > { %v3105_v37 = vmul.f32 %v3104_v36, %v3100_v32 }
0x11ef   : > { %v2884_v33 = vadd.f32 %v2883_v23, %v2879_v30 }
0x11f0   : > { %v3110_v39 = vadd.f32 %v3109_v38, %v3105_v37 }
0x11f1   : > { %7865 = vmatmul.mubr.msk.f32.vlgmr.msra.gmra.mrb[26].mxu1 %vm916_vm0, %v2884_v33 }
0x11f2   : > { %8278 = vmatpush3.bf16.msra.mxu1 %v8277_v31  ;;  %7894 = vmatprep.mubr.msk.f32.mxu1 %vm8633_vm1, %v8634_v13 }
0x11f3   : > { %8279 = vmatprep.subr.bf16.mxu1 %v8632_v10 }
0x11f6   : > { %8281 = vmatpush3.bf16.msra.mxu1 %v8280_v21 }
0x11f7   : > { %7897 = vmatprep.subr.mxu1 %v8634_v13 }
0x11f9   : > { %7895 = vmatmul.mubr.msk.f32.vlgmr.msra.gmra.mrb[28].mxu1 %vm916_vm0, %v3110_v39 }
0x11fa   : > { %7899 = vmatprep.mubr.msk.f32.mxu1 %vm8633_vm1, %v8634_v13 }
0x12c4   : > { %v2978_v45 = vpop.f32.mrb[26].mxu1 }
0x12c5   : > { %v2979_v47 = vadd.f32 %v7363_v44, %v2978_v45  ;;  %v7866_v48 = vpop.f32.mrb[27].mxu1 }
0x12c7   : > { %v2982_v40 = vmax.f32 %v2979_v47, 0.0 }
0x12c9   : > { %7884 = vmatmul.mubr.msk.f32.vlgmr.msra.gmra.mrb[18].mxu0 %vm1913_vm6, %v2982_v40 }
0x12ca   : > { %7909 = vmatprep.mubr.msk.f32.mxu0 %vm8633_vm1, %v8634_v13 }
0x12cc   : > { %v3196_v51 = vpop.f32.mrb[28].mxu1 }
0x12cd   : > { %v9314_v52 = vadd.f32 %v7367_v50, %v3196_v51  ;;  %v7896_v53 = vpop.f32.mrb[29].mxu1 }
0x12cf   : > { %3367 = vrot.lane.b32.xlu1 %v9314_v52, %s10174_s2  ;;  %3201 = vrot.lane.b32.xlu0 %v9314_v52, %s10175_s8 }
0x12d3   : > { %3365 = vrot.lane.b32.xlu1 %v9314_v52, %s10176_s9  ;;  %3537 = vrot.lane.b32.xlu0 %v9314_v52, %s10177_s5 }
0x12d7   : > { %3535 = vrot.lane.b32.xlu1 %v9314_v52, %s10178_s3  ;;  %3707 = vrot.lane.b32.xlu0 %v9314_v52, %s10179_s30 }
0x12db   : > { %3705 = vrot.lane.b32.xlu1 %v9314_v52, %s10180_s4 }
0x1341   : > { %v3368_v54 = vpop.permute.xlu1 %3367  ;;  %v3202_v55 = vpop.permute.xlu0 %3201 }
0x1342   : > { %7898 = vmatpush3.xpose.msk.msra.mxu1 %vm1033_vm2, %v3202_v55  ;;  %7908 = vmatpush3.xpose.msk.msra.mxu0 %vm1033_vm2, %v3368_v54 }
0x1343   : > { %7917 = vmatprep.subr.mxu0 %v8634_v13  ;;  %7902 = vmatprep.subr.mxu1 %v8634_v13 }
0x1345   : > { %v3366_v56 = vpop.permute.xlu1 %3365  ;;  %7900 = vmatmul.mubr.msk.f32.vlgmr.msra.gmra.mrb[30].mxu1 %vm1033_vm2, %v9314_v52  ;;  %v3538_v46 = vpop.permute.xlu0 %3537 }
0x1346   : > { %7910 = vmatmul.mubr.msk.f32.vlgmr.msra.gmra.mrb[20].mxu0 %vm1033_vm2, %v3366_v56  ;;  %7904 = vmatprep.mubr.msk.f32.mxu1 %vm8633_vm1, %v8634_v13 }
0x1347   : > { %7918 = vmatpush3.xpose.msk.msra.mxu0 %vm1033_vm2, %v3538_v46  ;;  %7919 = vmatprep.mubr.msk.f32.mxu0 %vm8633_vm1, %v8634_v13 }
0x1348   : > { %7927 = vmatprep.subr.mxu0 %v8634_v13 }
0x1349   : > { %v3536_v57 = vpop.permute.xlu1 %3535  ;;  %v3708_v58 = vpop.permute.xlu0 %3707 }
0x134a   : > { %7920 = vmatmul.mubr.msk.f32.vlgmr.msra.gmra.mrb[22].mxu0 %vm1033_vm2, %v3536_v57 }
0x134b   : > { %7928 = vmatpush3.xpose.msk.msra.mxu0 %vm1033_vm2, %v3708_v58  ;;  %7929 = vmatprep.mubr.msk.f32.mxu0 %vm8633_vm1, %v8634_v13 }
0x134c   : > { %8282 = vmatprep.subr.bf16.mxu0 %v8632_v10 }
0x134d   : > { %v3706_v59 = vpop.permute.xlu1 %3705 }
0x134e   : > { %7930 = vmatmul.mubr.msk.f32.vlgmr.msra.gmra.mrb[24].mxu0 %vm1033_vm2, %v3706_v59 }
0x134f   : > { %7945 = vmatprep.mubr.msk.f32.mxu0 %vm8633_vm1, %v8634_v13 }
0x139c   : > { %v9351_v60 = vpop.f32.mrb[18].mxu0 }
0x139d   : > { %v7885_v61 = vpop.f32.mrb[19].mxu0 }
0x1418   : > { %v3273_v1 = vpop.f32.mrb[30].mxu1 }
0x1419   : > { %v3274_v2 = vadd.f32 %v3273_v1, %v9357_v63  ;;  %v7901_v3 = vpop.f32.mrb[31].mxu1  ;;  %v3439_v0 = vpop.f32.mrb[20].mxu0  ;;  %v3116_v1 = vld [vmem:[%s10045_s16] sm:$0xff] }
0x141a   : > { %v3440_v4 = vadd.f32 %v3439_v0, %v9357_v63  ;;  %v7911_v5 = vpop.f32.mrb[21].mxu0 }
0x141b   : > { %v3277_v6 = vsel %vm1033_vm2, %v3274_v2, -inf  ;;  %v3119_v5 = vld [vmem:[%s10045_s16 + $0x18] sm:$0xff] }
0x141c   : > { %3278 = vmax.xlane.f32.xlu0 %v3277_v6  ;;  %v3443_v7 = vsel %vm1033_vm2, %v3440_v4, -inf }
0x141d   : > { %3444 = vmax.xlane.f32.xlu1 %v3443_v7  ;;  %v3609_v8 = vpop.f32.mrb[22].mxu0 }
0x141e   : > { %v3610_v9 = vadd.f32 %v3609_v8, %v9357_v63  ;;  %v7921_v11 = vpop.f32.mrb[23].mxu0 }
0x1420   : > { %v3613_v12 = vsel %vm1033_vm2, %v3610_v9, -inf }
0x1421   : > { %v3779_v14 = vpop.f32.mrb[24].mxu0  ;;  %3614 = vmax.xlane.f32.xlu0 %v3613_v12 }
0x1422   : > { %v3780_v15 = vadd.f32 %v3779_v14, %v9357_v63  ;;  %v7931_v16 = vpop.f32.mrb[25].mxu0 }
0x1423   : > { %v7365_v16 = vld [vmem:[%s10191_s27 + $0x1] ss:$0 sm:$0xff]  ;;  %s10195_s27 = sld [smem:[#allocation38_spill]] }
0x1424   : > { %v3783_v17 = vsel %vm1033_vm2, %v3780_v15, -inf }
0x1425   : > { %3784 = vmax.xlane.f32.xlu0 %v3783_v17  ;;  %v3059_v17 = vadd.f32 %v7365_v16, %v9351_v60 }
0x142e   : > { %3288 = vrot.lane.b32.xlu1 %v9314_v52, %s10181_s28 }
0x14a9   : > { %v3279_v18 = vpop.xlane.xlu0 %3278 }
0x14aa   : > { %v3280_v23 = vsub.f32 %v3274_v2, %v3279_v18  ;;  %v3445_v24 = vpop.xlane.xlu1 %3444  ;;  %v3117_v2 = vld [vmem:[%s10045_s16 + $0x8] sm:$0xff]  ;;  %v3062_v18 = vadd.f32 %v3059_v17, %v9223_v49 }
0x14ab   : > { %v3446_v25 = vsub.f32 %v3440_v4, %v3445_v24  ;;  %v8283_v0 = vpack.c.bf16 %v3117_v2, %v3116_v1  ;;  %v3118_v4 = vld [vmem:[%s10045_s16 + $0x10] sm:$0xff]  ;;  %v912_v1 = vld [vmem:[%s10195_s27] sm:$0x3] }
0x14ac   : > { %v3281_v28 = vmul.f32 1.442695, %v3280_v23  ;;  %v8286_v7 = vpack.c.bf16 %v3119_v5, %v3118_v4  ;;  %v3063_v23 = vsel %vm916_vm0, %v3062_v18, 0.0  ;;  %v3079_v4 = vrot.slane %v912_v1, %v8880_v20 }
0x14ad   : > { %v3447_v30 = vmul.f32 1.442695, %v3446_v25  ;;  %8284 = vmatpush3.bf16.msra.mxu0 %v8283_v0 }
0x14ae   : > { %8490 = vpow2.f32 %v3281_v28  ;;  %v3289_v31 = vpop.permute.xlu1 %3288  ;;  %v3615_v32 = vpop.xlane.xlu0 %3614  ;;  %8285 = vmatprep.subr.bf16.mxu0 %v8632_v10 }
0x14af   : > { %8492 = vpow2.f32 %v3447_v30  ;;  %v3616_v33 = vsub.f32 %v3610_v9, %v3615_v32  ;;  %7903 = vmatpush3.msra.mxu1 %v3289_v31  ;;  %v7381_v31 = vld [vmem:[%s10192_s11] ss:$0 sm:$0xff] }
0x14b0   : > { %7912 = vmatprep.subr.mxu1 %v8634_v13 }
0x14b1   : > { %v3617_v62 = vmul.f32 1.442695, %v3616_v33  ;;  %8287 = vmatpush3.bf16.msra.mxu0 %v8286_v7 }
0x14b2   : > { %v3785_v34 = vpop.xlane.xlu0 %3784  ;;  %8294 = vmatprep.subr.bf16.mxu0 %v8632_v10 }
0x14b3   : > { %8494 = vpow2.f32 %v3617_v62  ;;  %v3786_v36 = vsub.f32 %v3780_v15, %v3785_v34 }
0x14b5   : > { %v3787_v21 = vmul.f32 1.442695, %v3786_v36 }
0x14b7   : > { %8496 = vpow2.f32 %v3787_v21 }
0x14b8   : > { %v8491_v37 = vpop.eup %8490 }
0x14b9   : > { %v8493_v38 = vpop.eup %8492  ;;  %v3283_v39 = vsel %vm1033_vm2, %v8491_v37, 0.0 }
0x14ba   : > { %3284 = vadd.xlane.f32.xlu1 %v3283_v39  ;;  %v3449_v41 = vsel %vm1033_vm2, %v8493_v38, 0.0  ;;  %v3979_v39 = vld [vmem:[%s10193_s23] sm:$0xff] }
0x14bb   : > { %3450 = vadd.xlane.f32.xlu0 %v3449_v41  ;;  %v3980_v41 = vld [vmem:[%s10193_s23 + $0x8] sm:$0xff] }
0x14bd   : > { %v8495_v42 = vpop.eup %8494 }
0x14be   : > { %v3619_v43 = vsel %vm1033_vm2, %v8495_v42, 0.0 }
0x14bf   : > { %3620 = vadd.xlane.f32.xlu1 %v3619_v43  ;;  %v8289_v43 = vpack.c.bf16 %v3980_v41, %v3979_v39 }
0x14c1   : > { %v8497_v44 = vpop.eup %8496 }
0x14c2   : > { %v3789_v45 = vsel %vm1033_vm2, %v8497_v44, 0.0 }
0x14c3   : > { %3790 = vadd.xlane.f32.xlu0 %v3789_v45 }
0x14d0   : > { %3624 = vrot.lane.b32.xlu1 %v9314_v52, %s10182_s10 }
0x14d4   : > { %3794 = vrot.lane.b32.xlu1 %v9314_v52, %s10183_s12 }
0x14d9   : > { %3454 = vrot.lane.b32.xlu0 %v9314_v52, %s10184_s13 }
0x1547   : > { %v3285_v47 = vpop.xlane.xlu1 %3284 }
0x1548   : > { %8498 = vrcp.f32 %v3285_v47  ;;  %v3451_v48 = vpop.xlane.xlu0 %3450 }
0x1549   : > { %8500 = vrcp.f32 %v3451_v48 }
0x154c   : > { %v3621_v40 = vpop.xlane.xlu1 %3620 }
0x154d   : > { %8502 = vrcp.f32 %v3621_v40 }
0x1550   : > { %v3791_v50 = vpop.xlane.xlu0 %3790  ;;  %v3625_v52 = vpop.permute.xlu1 %3624 }
0x1551   : > { %8504 = vrcp.f32 %v3791_v50 }
0x1552   : > { %v8499_v51 = vpop.eup %8498 }
0x1553   : > { %v3287_v53 = vmul.f32 %v8499_v51, %v8491_v37  ;;  %v8501_v54 = vpop.eup %8500 }
0x1554   : > { %v3455_v55 = vpop.permute.xlu0 %3454  ;;  %v3453_v56 = vmul.f32 %v8501_v54, %v8493_v38  ;;  %v3795_v59 = vpop.permute.xlu1 %3794 }
0x1555   : > { %7905 = vmatmul.mubr.msk.f32.vlgmr.msra.gmra.mrb[32].mxu1 %vm1033_vm2, %v3287_v53 }
0x1556   : > { %7913 = vmatpush3.msra.mxu1 %v3455_v55  ;;  %7914 = vmatprep.mubr.msk.f32.mxu1 %vm8633_vm1, %v8634_v13 }
0x1557   : > { %7922 = vmatprep.subr.mxu1 %v8634_v13  ;;  %v8503_v46 = vpop.eup %8502 }
0x1558   : > { %v3623_v57 = vmul.f32 %v8503_v46, %v8495_v42  ;;  %v8428_v42 = vpack.i.bf16 %v3980_v41, %v3979_v39  ;;  %v9512_v39 = vld [vmem:[%s908_s19] sm:$0xff] }
0x1559   : > { %7915 = vmatmul.mubr.msk.f32.vlgmr.msra.gmra.mrb[34].mxu1 %vm1033_vm2, %v3453_v56 }
0x155a   : > { %7923 = vmatpush3.msra.mxu1 %v3625_v52  ;;  %7924 = vmatprep.mubr.msk.f32.mxu1 %vm8633_vm1, %v8634_v13 }
0x155b   : > { %7932 = vmatprep.subr.mxu1 %v8634_v13  ;;  %v8505_v58 = vpop.eup %8504 }
0x155c   : > { %v3793_v61 = vmul.f32 %v8505_v58, %v8497_v44  ;;  %v3982_v44 = vld [vmem:[%s10193_s23 + $0x18] sm:$0xff] }
0x155d   : > { %7925 = vmatmul.mubr.msk.f32.vlgmr.msra.gmra.mrb[36].mxu1 %vm1033_vm2, %v3623_v57  ;;  %v7383_v57 = vld [vmem:[%s10194_s22] ss:$0 sm:$0xff] }
0x155e   : > { %7933 = vmatpush3.msra.mxu1 %v3795_v59  ;;  %7934 = vmatprep.mubr.msk.f32.mxu1 %vm8633_vm1, %v8634_v13 }
0x155f   : > { %8288 = vmatprep.subr.bf16.mxu1 %v8632_v10 }
0x1561   : > { %7935 = vmatmul.mubr.msk.f32.vlgmr.msra.gmra.mrb[38].mxu1 %vm1033_vm2, %v3793_v61 }
0x1562   : > { %7956 = vmatprep.mubr.msk.f32.mxu1 %vm8633_vm1, %v8634_v13  ;;  %8290 = vmatpush3.bf16.msra.mxu1 %v8289_v43 }
0x1563   : > { %8291 = vmatprep.subr.bf16.mxu1 %v8632_v10 }
0x1628   : > { %v3360_v3 = vpop.f32.mrb[32].mxu1 }
0x1629   : > { %3364 = vst.msk [vmem:[#allocation2] sm:$0xff] %vm1033_vm2, %v3360_v3  ;;  %v7906_v6 = vpop.f32.mrb[33].mxu1 }
0x162c   : > { %v3526_v8 = vpop.f32.mrb[34].mxu1 }
0x162d   : > { %3531 = vrot.lane.b32.xlu0 %v3526_v8, %s10185_s21  ;;  %v7916_v9 = vpop.f32.mrb[35].mxu1 }
0x1630   : > { %v3696_v11 = vpop.f32.mrb[36].mxu1 }
0x1631   : > { %3701 = vrot.lane.b32.xlu1 %v3696_v11, %s10186_s20  ;;  %v7926_v12 = vpop.f32.mrb[37].mxu1  ;;  %v3084_v11 = vrot.slane %v912_v1, %v8888_v22 }
0x1634   : > { %v3866_v14 = vpop.f32.mrb[38].mxu1 }
0x1635   : > { %3871 = vrot.lane.b32.xlu0 %v3866_v14, %s10190_s25  ;;  %v7936_v15 = vpop.f32.mrb[39].mxu1 }
0x1636   : > { %v3972_v15 = vrot.slane %v9278_v29, %v9049_v26 }
0x1655   : > { %3064 = vadd.xlane.f32.xlu1 %v3063_v23 }
0x169f   : > { %v3532_v24 = vpop.permute.xlu0 %3531 }
0x16a0   : > { %3534 = vst.msk [vmem:[#allocation2] sm:$0xff] %vm1365_vm3, %v3532_v24 }
0x16a3   : > { %v3702_v25 = vpop.permute.xlu1 %3701 }
0x16a4   : > { %3704 = vst.msk [vmem:[#allocation2] sm:$0xff] %vm1536_vm4, %v3702_v25 }
0x16a7   : > { %v3872_v28 = vpop.permute.xlu0 %3871 }
0x16a8   : > { %3874 = vst.msk [vmem:[#allocation2] sm:$0xff] %vm1707_vm5, %v3872_v28 }
0x16af   : > { %v3875_v30 = vld [vmem:[#allocation2] sm:$0xff] }
0x16b0   : > { %7946 = vmatmul.mubr.msk.f32.vlgmr.msra.gmra.mrb[26].mxu0 %vm916_vm0, %v3875_v30 }
0x16b1   : > { %7967 = vmatprep.mubr.msk.f32.mxu0 %vm8633_vm1, %v8634_v13 }
0x16e2   : > { %v3065_v60 = vpop.xlane.xlu1 %3064 }
0x16e3   : > { %v3066_v49 = vmul.f32 0.03125, %v3065_v60 }
0x16e5   : > { %v3067_v33 = vsub.f32 %v3062_v18, %v3066_v49  ;;  %v3977_v18 = vrot.slane %v9278_v29, %v9052_v27 }
0x16e7   : > { %v3068_v37 = vmul.f32 %v3067_v33, %v3067_v33 }
0x16e9   : > { %v3069_v38 = vsel %vm916_vm0, %v3068_v37, 0.0 }
0x1783   : > { %v3951_v32 = vpop.f32.mrb[26].mxu0 }
0x1784   : > { %v3952_v62 = vadd.f32 %v7381_v31, %v3951_v32  ;;  %v7947_v34 = vpop.f32.mrb[27].mxu0 }
0x1786   : > { %v9429_v36 = vadd.f32 %v3952_v62, %v9208_v35  ;;  %v3981_v35 = vld [vmem:[%s10193_s23 + $0x10] sm:$0xff] }
0x1787   : > { %v8433_v45 = vpack.i.bf16 %v3982_v44, %v3981_v35  ;;  %v8292_v47 = vpack.c.bf16 %v3982_v44, %v3981_v35 }
0x1788   : > { %v3956_v21 = vsel %vm916_vm0, %v9429_v36, 0.0 }
0x1789   : > { %3957 = vadd.xlane.f32.xlu0 %v3956_v21  ;;  %8293 = vmatpush3.bf16.msra.mxu1 %v8292_v47 }
0x178a   : > { %7970 = vmatprep.subr.mxu1 %v8634_v13 }
0x178d   : > { %3070 = vadd.xlane.f32.xlu0 %v3069_v38 }
0x17a3   : > { %8429 = vrot.lane.b32.xlu0 %v8428_v42, %s10175_s8 }
0x1816   : > { %v3958_v48 = vpop.xlane.xlu0 %3957 }
0x1817   : > { %v3959_v40 = vmul.f32 0.03125, %v3958_v48 }
0x1819   : > { %v3960_v50 = vsub.f32 %v9429_v36, %v3959_v40 }
0x181a   : > { %v3071_v54 = vpop.xlane.xlu0 %3070 }
0x181b   : > { %v3961_v51 = vmul.f32 %v3960_v50, %v3960_v50  ;;  %v3072_v58 = vmul.f32 0.03125, %v3071_v54 }
0x181d   : > { %v3962_v53 = vsel %vm916_vm0, %v3961_v51, 0.0  ;;  %v3073_v59 = vadd.f32 1e-06, %v3072_v58 }
0x181e   : > { %3963 = vadd.xlane.f32.xlu1 %v3962_v53  ;;  %v8430_v55 = vpop.permute.xlu0 %8429 }
0x181f   : > { %v8432_v56 = vunpack.i.h.bf16 %v8430_v55  ;;  %v8431_v52 = vunpack.i.l.bf16 %v8430_v55  ;;  %8506 = vrsqrt.f32 %v3073_v59 }
0x1821   : > { %v8295_v46 = vpack.c.bf16 %v8432_v56, %v8431_v52 }
0x1823   : > { %8296 = vmatpush3.bf16.msra.mxu0 %v8295_v46 }
0x1824   : > { %8297 = vmatprep.subr.bf16.mxu0 %v8632_v10 }
0x1829   : > { %v8507_v61 = vpop.eup %8506 }
0x182a   : > { %v3075_v0 = vmul.f32 %v8507_v61, %v3067_v33 }
0x182c   : > { %v3080_v9 = vmul.f32 %v3079_v4, %v3075_v0 }
0x182e   : > { %v9462_v14 = vadd.f32 %v3084_v11, %v3080_v9 }
0x182f   : > { %8434 = vrot.lane.b32.xlu1 %v8433_v45, %s10175_s8 }
0x1833   : > { %4084 = vrot.lane.b32.xlu1 %v7383_v57, %s10175_s8 }
0x18ab   : > { %v3964_v2 = vpop.xlane.xlu1 %3963 }
0x18ac   : > { %v3965_v3 = vmul.f32 0.03125, %v3964_v2 }
0x18ae   : > { %v3966_v5 = vadd.f32 1e-06, %v3965_v3 }
0x18af   : > { %v8435_v6 = vpop.permute.xlu1 %8434 }
0x18b0   : > { %8508 = vrsqrt.f32 %v3966_v5  ;;  %v8437_v7 = vunpack.i.h.bf16 %v8435_v6  ;;  %v8436_v8 = vunpack.i.l.bf16 %v8435_v6 }
0x18b2   : > { %v8298_v12 = vpack.c.bf16 %v8437_v7, %v8436_v8 }
0x18b3   : > { %v4085_v25 = vpop.permute.xlu1 %4084 }
0x18b4   : > { %8299 = vmatpush3.bf16.msra.mxu0 %v8298_v12 }
0x18b5   : > { %7980 = vmatprep.subr.mxu0 %v8634_v13 }
0x18b7   : > { %7968 = vmatmul.mubr.msk.f32.vlgmr.msra.gmra.mrb[28].mxu0 %vm916_vm0, %v9462_v14 }
0x18b8   : > { %7982 = vmatprep.mubr.msk.f32.mxu0 %vm8633_vm1, %v8634_v13 }
0x18ba   : > { %v8509_v16 = vpop.eup %8508 }
0x18bb   : > { %v3968_v17 = vmul.f32 %v8509_v16, %v3960_v50 }
0x18bd   : > { %v3973_v23 = vmul.f32 %v3972_v15, %v3968_v17 }
0x18bf   : > { %v3978_v24 = vadd.f32 %v3977_v18, %v3973_v23 }
0x18c1   : > { %7957 = vmatmul.mubr.msk.f32.vlgmr.msra.gmra.mrb[40].mxu1 %vm916_vm0, %v3978_v24 }
0x18c2   : > { %7972 = vmatprep.mubr.msk.f32.mxu1 %vm8633_vm1, %v8634_v13 }
0x198a   : > { %v4156_v28 = vpop.f32.mrb[28].mxu0 }
0x198b   : > { %v9476_v30 = vadd.f32 %v4156_v28, %v4085_v25  ;;  %v7969_v60 = vpop.f32.mrb[29].mxu0 }
0x198d   : > { %4326 = vrot.lane.b32.xlu0 %v9476_v30, %s10176_s9  ;;  %7971 = vmatpush3.xpose.msk.msra.mxu1 %vm1033_vm2, %v9476_v30 }
0x198e   : > { %7975 = vmatprep.subr.mxu1 %v8634_v13 }
0x1991   : > { %4496 = vrot.lane.b32.xlu0 %v9476_v30, %s10178_s3 }
0x1994   : > { %v4064_v49 = vpop.f32.mrb[40].mxu1 }
0x1995   : > { %v4065_v31 = vadd.f32 %v7383_v57, %v4064_v49  ;;  %4666 = vrot.lane.b32.xlu0 %v9476_v30, %s10180_s4  ;;  %v7958_v32 = vpop.f32.mrb[41].mxu1 }
0x1997   : > { %4324 = vrot.lane.b32.xlu1 %v4065_v31, %s10176_s9  ;;  %7973 = vmatmul.mubr.msk.f32.vlgmr.msra.gmra.mrb[42].mxu1 %vm1033_vm2, %v4065_v31 }
0x1998   : > { %7977 = vmatprep.mubr.msk.f32.mxu1 %vm8633_vm1, %v8634_v13 }
0x199b   : > { %4494 = vrot.lane.b32.xlu1 %v4065_v31, %s10178_s3 }
0x199f   : > { %4664 = vrot.lane.b32.xlu1 %v4065_v31, %s10180_s4 }
0x19ff   : > { %v4327_v33 = vpop.permute.xlu0 %4326 }
0x1a00   : > { %7981 = vmatpush3.xpose.msk.msra.mxu0 %vm1033_vm2, %v4327_v33 }
0x1a01   : > { %7990 = vmatprep.subr.mxu0 %v8634_v13 }
0x1a03   : > { %v4497_v62 = vpop.permute.xlu0 %4496 }
0x1a07   : > { %v4667_v37 = vpop.permute.xlu0 %4666 }
0x1a09   : > { %v4325_v34 = vpop.permute.xlu1 %4324 }
0x1a0a   : > { %7983 = vmatmul.mubr.msk.f32.vlgmr.msra.gmra.mrb[30].mxu0 %vm1033_vm2, %v4325_v34 }
0x1a0b   : > { %7991 = vmatpush3.xpose.msk.msra.mxu0 %vm1033_vm2, %v4497_v62  ;;  %7992 = vmatprep.mubr.msk.f32.mxu0 %vm8633_vm1, %v8634_v13 }
0x1a0c   : > { %8000 = vmatprep.subr.mxu0 %v8634_v13 }
0x1a0d   : > { %v4495_v21 = vpop.permute.xlu1 %4494 }
0x1a0e   : > { %7993 = vmatmul.mubr.msk.f32.vlgmr.msra.gmra.mrb[32].mxu0 %vm1033_vm2, %v4495_v21 }
0x1a0f   : > { %8001 = vmatpush3.xpose.msk.msra.mxu0 %vm1033_vm2, %v4667_v37  ;;  %8002 = vmatprep.mubr.msk.f32.mxu0 %vm8633_vm1, %v8634_v13 }
0x1a10   : > { %8300 = vmatprep.subr.bf16.mxu0 %v8632_v10 }
0x1a11   : > { %v4665_v38 = vpop.permute.xlu1 %4664 }
0x1a12   : > { %8003 = vmatmul.mubr.msk.f32.vlgmr.msra.gmra.mrb[34].mxu0 %vm1033_vm2, %v4665_v38 }
0x1a13   : > { %8018 = vmatprep.mubr.msk.f32.mxu0 %vm8633_vm1, %v8634_v13 }
0x1a6a   : > { %v4232_v41 = vpop.f32.mrb[42].mxu1 }
0x1a6b   : > { %v4233_v35 = vadd.f32 %v4232_v41, %v9512_v39  ;;  %v7974_v42 = vpop.f32.mrb[43].mxu1 }
0x1a6c   : > { %v3984_v42 = vld [vmem:[%s10197_s24] sm:$0xff] }
0x1a6d   : > { %v4236_v43 = vsel %vm1033_vm2, %v4233_v35, -inf }
0x1a6e   : > { %4237 = vmax.xlane.f32.xlu0 %v4236_v43  ;;  %v3985_v43 = vld [vmem:[%s10197_s24 + $0x8] sm:$0xff] }
0x1add   : > { %v4398_v44 = vpop.f32.mrb[30].mxu0 }
0x1ade   : > { %v4399_v45 = vadd.f32 %v4398_v44, %v9512_v39  ;;  %v7984_v47 = vpop.f32.mrb[31].mxu0  ;;  %v8301_v44 = vpack.c.bf16 %v3985_v43, %v3984_v42  ;;  %v4949_v42 = vld [vmem:[%s10200_s6 + $0x30] sm:$0xff]  ;;  %v4950_v43 = vld [vmem:[%s10200_s6 + $0x38] sm:$0xff] }
0x1adf   : > { %v3987_v47 = vld [vmem:[%s10197_s24 + $0x18] sm:$0xff] }
0x1ae0   : > { %v4402_v48 = vsel %vm1033_vm2, %v4399_v45, -inf  ;;  %8302 = vmatpush3.bf16.msra.mxu0 %v8301_v44  ;;  %v8322_v44 = vpack.c.bf16 %v4950_v43, %v4949_v42 }
0x1ae1   : > { %4403 = vmax.xlane.f32.xlu1 %v4402_v48  ;;  %v4568_v40 = vpop.f32.mrb[32].mxu0  ;;  %8303 = vmatprep.subr.bf16.mxu0 %v8632_v10 }
0x1ae2   : > { %v4569_v50 = vadd.f32 %v4568_v40, %v9512_v39  ;;  %v7994_v51 = vpop.f32.mrb[33].mxu0 }
0x1ae4   : > { %v4572_v53 = vsel %vm1033_vm2, %v4569_v50, -inf }
0x1ae5   : > { %v4738_v54 = vpop.f32.mrb[34].mxu0  ;;  %4573 = vmax.xlane.f32.xlu0 %v4572_v53 }
0x1ae6   : > { %v4739_v55 = vadd.f32 %v4738_v54, %v9512_v39  ;;  %v8004_v56 = vpop.f32.mrb[35].mxu0 }
0x1ae8   : > { %v4742_v52 = vsel %vm1033_vm2, %v4739_v55, -inf }
0x1ae9   : > { %4743 = vmax.xlane.f32.xlu0 %v4742_v52 }
0x1af2   : > { %4247 = vrot.lane.b32.xlu1 %v9476_v30, %s10175_s8 }
0x1afb   : > { %v4238_v46 = vpop.xlane.xlu0 %4237 }
0x1afc   : > { %v4239_v57 = vsub.f32 %v4233_v35, %v4238_v46 }
0x1afe   : > { %v4240_v58 = vmul.f32 1.442695, %v4239_v57 }
0x1b00   : > { %8510 = vpow2.f32 %v4240_v58  ;;  %v7398_v58 = vld [vmem:[%s10198_s1] ss:$0 sm:$0xff] }
0x1b0a   : > { %v8511_v59 = vpop.eup %8510 }
0x1b0b   : > { %v4242_v61 = vsel %vm1033_vm2, %v8511_v59, 0.0 }
0x1b16   : > { %4243 = vadd.xlane.f32.xlu1 %v4242_v61 }
0x1b6e   : > { %v4404_v1 = vpop.xlane.xlu1 %4403 }
0x1b6f   : > { %v4405_v2 = vsub.f32 %v4399_v45, %v4404_v1  ;;  %v3986_v45 = vld [vmem:[%s10197_s24 + $0x10] sm:$0xff]  ;;  %s8572_s24 = sshll.u32 %s8649_s0, 4  ;;  %s8573_s24 = int_to_ptr.vmem [resolvable:$false] %s8572_s24 }
0x1b70   : > { %v8304_v48 = vpack.c.bf16 %v3987_v47, %v3986_v45 }
0x1b71   : > { %v4406_v3 = vmul.f32 1.442695, %v4405_v2 }
0x1b72   : > { %v4248_v0 = vpop.permute.xlu1 %4247  ;;  %v4574_v4 = vpop.xlane.xlu0 %4573  ;;  %8305 = vmatpush3.bf16.msra.mxu0 %v8304_v48 }
0x1b73   : > { %8512 = vpow2.f32 %v4406_v3  ;;  %v4575_v5 = vsub.f32 %v4569_v50, %v4574_v4  ;;  %7976 = vmatpush3.msra.mxu1 %v4248_v0  ;;  %8312 = vmatprep.subr.bf16.mxu0 %v8632_v10 }
0x1b74   : > { %7985 = vmatprep.subr.mxu1 %v8634_v13 }
0x1b75   : > { %v4576_v6 = vmul.f32 1.442695, %v4575_v5 }
0x1b76   : > { %v4744_v7 = vpop.xlane.xlu0 %4743 }
0x1b77   : > { %8514 = vpow2.f32 %v4576_v6  ;;  %v4745_v8 = vsub.f32 %v4739_v55, %v4744_v7 }
0x1b79   : > { %v4746_v9 = vmul.f32 1.442695, %v4745_v8  ;;  %v4938_v8 = vld [vmem:[%s10199_s17] sm:$0xff] }
0x1b7b   : > { %8516 = vpow2.f32 %v4746_v9 }
0x1b7d   : > { %v8513_v11 = vpop.eup %8512 }
0x1b7e   : > { %v4408_v12 = vsel %vm1033_vm2, %v8513_v11, 0.0 }
0x1b7f   : > { %4409 = vadd.xlane.f32.xlu0 %v4408_v12  ;;  %v4941_v12 = vld [vmem:[%s10199_s17 + $0x18] sm:$0xff] }
0x1b81   : > { %v8515_v15 = vpop.eup %8514 }
0x1b82   : > { %v4578_v16 = vsel %vm1033_vm2, %v8515_v15, 0.0 }
0x1b83   : > { %4579 = vadd.xlane.f32.xlu1 %v4578_v16  ;;  %v4943_v16 = vld [vmem:[%s10200_s6] sm:$0xff] }
0x1b85   : > { %v8517_v17 = vpop.eup %8516 }
0x1b86   : > { %v4748_v18 = vsel %vm1033_vm2, %v8517_v17, 0.0 }
0x1b87   : > { %4749 = vadd.xlane.f32.xlu0 %v4748_v18  ;;  %v4945_v18 = vld [vmem:[%s10200_s6 + $0x10] sm:$0xff] }
0x1b94   : > { %4583 = vrot.lane.b32.xlu1 %v9476_v30, %s10177_s5 }
0x1b98   : > { %4753 = vrot.lane.b32.xlu1 %v9476_v30, %s10179_s30 }
0x1b9d   : > { %4413 = vrot.lane.b32.xlu0 %v9476_v30, %s10174_s2 }
0x1ba3   : > { %v4244_v23 = vpop.xlane.xlu1 %4243 }
0x1ba4   : > { %8518 = vrcp.f32 %v4244_v23 }
0x1bae   : > { %v8519_v24 = vpop.eup %8518 }
0x1baf   : > { %v4246_v25 = vmul.f32 %v8519_v24, %v8511_v59  ;;  %v4946_v24 = vld [vmem:[%s10200_s6 + $0x18] sm:$0xff] }
0x1bb1   : > { %7978 = vmatmul.mubr.msk.f32.vlgmr.msra.gmra.mrb[44].mxu1 %vm1033_vm2, %v4246_v25  ;;  %v8316_v25 = vpack.c.bf16 %v4946_v24, %v4945_v18 }
0x1bb2   : > { %7987 = vmatprep.mubr.msk.f32.mxu1 %vm8633_vm1, %v8634_v13 }
0x1c0c   : > { %v4410_v28 = vpop.xlane.xlu0 %4409 }
0x1c0d   : > { %8520 = vrcp.f32 %v4410_v28  ;;  %v4947_v28 = vld [vmem:[%s10200_s6 + $0x20] sm:$0xff] }
0x1c10   : > { %v4580_v60 = vpop.xlane.xlu1 %4579 }
0x1c11   : > { %8522 = vrcp.f32 %v4580_v60  ;;  %v4948_v60 = vld [vmem:[%s10200_s6 + $0x28] sm:$0xff] }
0x1c14   : > { %v4750_v49 = vpop.xlane.xlu0 %4749  ;;  %v4584_v33 = vpop.permute.xlu1 %4583 }
0x1c15   : > { %8524 = vrcp.f32 %v4750_v49  ;;  %v8319_v49 = vpack.c.bf16 %v4948_v60, %v4947_v28 }
0x1c17   : > { %v8521_v31 = vpop.eup %8520 }
0x1c18   : > { %v4412_v32 = vmul.f32 %v8521_v31, %v8513_v11  ;;  %v4414_v62 = vpop.permute.xlu0 %4413  ;;  %v4754_v21 = vpop.permute.xlu1 %4753  ;;  %v4940_v11 = vld [vmem:[%s10199_s17 + $0x10] sm:$0xff] }
0x1c19   : > { %7986 = vmatpush3.msra.mxu1 %v4414_v62  ;;  %v4930_v62 = vsub.s32 4, %v8877_v19 }
0x1c1a   : > { %7988 = vmatmul.mubr.msk.f32.vlgmr.msra.gmra.mrb[46].mxu1 %vm1033_vm2, %v4412_v32  ;;  %7995 = vmatprep.subr.mxu1 %v8634_v13 }
0x1c1b   : > { %v8523_v30 = vpop.eup %8522  ;;  %7996 = vmatpush3.msra.mxu1 %v4584_v33  ;;  %7997 = vmatprep.mubr.msk.f32.mxu1 %vm8633_vm1, %v8634_v13 }
0x1c1c   : > { %v4582_v34 = vmul.f32 %v8523_v30, %v8515_v15  ;;  %8005 = vmatprep.subr.mxu1 %v8634_v13  ;;  %v8310_v15 = vpack.c.bf16 %v4941_v12, %v4940_v11  ;;  %v4935_v30 = vsub.s32 5, %v8877_v19  ;;  %v7472_v19 = vld [vmem:[%s10201_s18 + $0x1] ss:$0 sm:$0xff] }
0x1c1e   : > { %7998 = vmatmul.mubr.msk.f32.vlgmr.msra.gmra.mrb[48].mxu1 %vm1033_vm2, %v4582_v34  ;;  %v4931_v34 = vrot.slane %v9278_v29, %v4930_v62 }
0x1c1f   : > { %v8525_v37 = vpop.eup %8524  ;;  %8006 = vmatpush3.msra.mxu1 %v4754_v21  ;;  %8007 = vmatprep.mubr.msk.f32.mxu1 %vm8633_vm1, %v8634_v13 }
0x1c20   : > { %v4752_v38 = vmul.f32 %v8525_v37, %v8517_v17  ;;  %8306 = vmatprep.subr.bf16.mxu1 %v8632_v10  ;;  %v4944_v17 = vld [vmem:[%s10200_s6 + $0x8] sm:$0xff] }
0x1c21   : > { %v8313_v23 = vpack.c.bf16 %v4944_v17, %v4943_v16  ;;  %v7415_v17 = vld [vmem:[%s10044_s15 + $0x1] ss:$0 sm:$0xff] }
0x1c22   : > { %8008 = vmatmul.mubr.msk.f32.vlgmr.msra.gmra.mrb[50].mxu1 %vm1033_vm2, %v4752_v38  ;;  %v4936_v38 = vrot.slane %v9278_v29, %v4935_v30  ;;  %v7400_v29 = vld [vmem:[%s10201_s18] ss:$0 sm:$0xff] }
0x1c23   : > { %8029 = vmatprep.mubr.msk.f32.mxu1 %vm8633_vm1, %v8634_v13 }
0x1c84   : > { %v4319_v41 = vpop.f32.mrb[44].mxu1 }
0x1c85   : > { %4323 = vst.msk [vmem:[#allocation2] sm:$0xff] %vm1033_vm2, %v4319_v41  ;;  %v7979_v35 = vpop.f32.mrb[45].mxu1 }
0x1ced   : > { %v4485_v40 = vpop.f32.mrb[46].mxu1 }
0x1cee   : > { %4490 = vrot.lane.b32.xlu0 %v4485_v40, %s10185_s21  ;;  %v7989_v50 = vpop.f32.mrb[47].mxu1 }
0x1cf1   : > { %v4655_v51 = vpop.f32.mrb[48].mxu1 }
0x1cf2   : > { %4660 = vrot.lane.b32.xlu1 %v4655_v51, %s10186_s20  ;;  %v7999_v53 = vpop.f32.mrb[49].mxu1 }
0x1cf5   : > { %v4825_v54 = vpop.f32.mrb[50].mxu1 }
0x1cf6   : > { %4830 = vrot.lane.b32.xlu0 %v4825_v54, %s10190_s25  ;;  %v8009_v55 = vpop.f32.mrb[51].mxu1 }
0x1d60   : > { %v4491_v56 = vpop.permute.xlu0 %4490 }
0x1d61   : > { %4493 = vst.msk [vmem:[#allocation2] sm:$0xff] %vm1365_vm3, %v4491_v56 }
0x1d64   : > { %v4661_v52 = vpop.permute.xlu1 %4660 }
0x1d65   : > { %4663 = vst.msk [vmem:[#allocation2] sm:$0xff] %vm1536_vm4, %v4661_v52 }
0x1d68   : > { %v4831_v46 = vpop.permute.xlu0 %4830 }
0x1d69   : > { %4833 = vst.msk [vmem:[#allocation2] sm:$0xff] %vm1707_vm5, %v4831_v46 }
0x1d70   : > { %v4834_v57 = vld [vmem:[#allocation2] sm:$0xff] }
0x1d71   : > { %8019 = vmatmul.mubr.msk.f32.vlgmr.msra.gmra.mrb[36].mxu0 %vm916_vm0, %v4834_v57 }
0x1d72   : > { %8048 = vmatprep.mubr.msk.f32.mxu0 %vm8633_vm1, %v8634_v13  ;;  %8314 = vmatpush3.bf16.msra.mxu0 %v8313_v23 }
0x1d73   : > { %8315 = vmatprep.subr.bf16.mxu0 %v8632_v10 }
0x1d76   : > { %8317 = vmatpush3.bf16.msra.mxu0 %v8316_v25 }
0x1d77   : > { %8318 = vmatprep.subr.bf16.mxu0 %v8632_v10 }
0x1d7a   : > { %8320 = vmatpush3.bf16.msra.mxu0 %v8319_v49 }
0x1d7b   : > { %8321 = vmatprep.subr.bf16.mxu0 %v8632_v10 }
0x1d7e   : > { %8323 = vmatpush3.bf16.msra.mxu0 %v8322_v44 }
0x1d7f   : > { %8072 = vmatprep.subr.mxu0 %v8634_v13 }
0x1e44   : > { %v4910_v59 = vpop.f32.mrb[36].mxu0 }
0x1e45   : > { %v4911_v61 = vadd.f32 %v7398_v58, %v4910_v59  ;;  %v8020_v1 = vpop.f32.mrb[37].mxu0 }
0x1e46   : > { %v7406_v1 = vld [vmem:[%s10043_s14 + $0x28] sm:$0xff] }
0x1e47   : > { %v9578_v2 = vadd.f32 %v4911_v61, %v9429_v36  ;;  %v4939_v36 = vld [vmem:[%s10199_s17 + $0x8] sm:$0xff]  ;;  %s10202_s17 = sld [smem:[#allocation37_spill]]  ;;  %v7405_v61 = vld [vmem:[%s10043_s14 + $0x20] sm:$0xff] }
0x1e48   : > { %v8307_v9 = vpack.c.bf16 %v4939_v36, %v4938_v8  ;;  %v9670_v8 = vld [vmem:[%s10055_s26 + $0x8] sm:$0x3f] }
0x1e49   : > { %v4915_v3 = vsel %vm916_vm0, %v9578_v2, 0.0  ;;  %v5130_v36 = vrot.slane %v9670_v8, %v8880_v20  ;;  %v5135_v12 = vrot.slane %v9670_v8, %v8888_v22 }
0x1e4a   : > { %4916 = vadd.xlane.f32.xlu1 %v4915_v3  ;;  %8308 = vmatpush3.bf16.msra.mxu1 %v8307_v9  ;;  %v7407_v3 = vld [vmem:[%s10043_s14 + $0x30] sm:$0xff] }
0x1e4b   : > { %8309 = vmatprep.subr.bf16.mxu1 %v8632_v10 }
0x1e4d   : > { %v7402_v50 = vld [vmem:[%s10202_s17] ss:$0 sm:$0xff] }
0x1e4e   : > { %8311 = vmatpush3.bf16.msra.mxu1 %v8310_v15 }
0x1e4f   : > { %8324 = vmatprep.subr.bf16.mxu1 %v8632_v10 }
0x1ed7   : > { %v4917_v0 = vpop.xlane.xlu1 %4916 }
0x1ed8   : > { %v4918_v4 = vmul.f32 0.03125, %v4917_v0  ;;  %v7408_v0 = vld [vmem:[%s10043_s14 + $0x38] sm:$0xff] }
0x1eda   : > { %v4919_v5 = vsub.f32 %v9578_v2, %v4918_v4  ;;  %v8328_v4 = vpack.c.bf16 %v7408_v0, %v7407_v3 }
0x1edc   : > { %v4920_v6 = vmul.f32 %v4919_v5, %v4919_v5 }
0x1ede   : > { %v4921_v7 = vsel %vm916_vm0, %v4920_v6, 0.0 }
0x1edf   : > { %4922 = vadd.xlane.f32.xlu0 %v4921_v7 }
0x1f6c   : > { %v4923_v31 = vpop.xlane.xlu0 %4922 }
0x1f6d   : > { %v4924_v32 = vmul.f32 0.03125, %v4923_v31 }
0x1f6f   : > { %v4925_v33 = vadd.f32 1e-06, %v4924_v32 }
0x1f71   : > { %8526 = vrsqrt.f32 %v4925_v33 }
0x1f7b   : > { %v8527_v21 = vpop.eup %8526 }
0x1f7c   : > { %v4927_v37 = vmul.f32 %v8527_v21, %v4919_v5 }
0x1f7e   : > { %v4932_v41 = vmul.f32 %v4931_v34, %v4927_v37 }
0x1f80   : > { %v4937_v35 = vadd.f32 %v4936_v38, %v4932_v41 }
0x1f82   : > { %8030 = vmatmul.mubr.msk.f32.vlgmr.msra.gmra.mrb[52].mxu1 %vm916_vm0, %v4937_v35 }
0x1f83   : > { %8059 = vmatprep.mubr.msk.f32.mxu1 %vm8633_vm1, %v8634_v13 }
0x2055   : > { %v5027_v45 = vpop.f32.mrb[52].mxu1 }
0x2056   : > { %v5028_v47 = vadd.f32 %v7400_v29, %v5027_v45  ;;  %v8031_v48 = vpop.f32.mrb[53].mxu1 }
0x2058   : > { %v5031_v40 = vmax.f32 %v5028_v47, 0.0 }
0x205a   : > { %8049 = vmatmul.mubr.msk.f32.vlgmr.msra.gmra.mrb[38].mxu0 %vm1913_vm6, %v5031_v40 }
0x205b   : > { %8074 = vmatprep.mubr.msk.f32.mxu0 %vm8633_vm1, %v8634_v13 }
0x212d   : > { %v5107_v51 = vpop.f32.mrb[38].mxu0 }
0x212e   : > { %v5108_v53 = vadd.f32 %v7402_v50, %v5107_v51  ;;  %v8050_v54 = vpop.f32.mrb[39].mxu0 }
0x2130   : > { %v9647_v55 = vadd.f32 %v5108_v53, %v9578_v2  ;;  %v8325_v2 = vpack.c.bf16 %v7406_v1, %v7405_v61 }
0x2132   : > { %v5114_v56 = vsel %vm916_vm0, %v9647_v55, 0.0  ;;  %8326 = vmatpush3.bf16.msra.mxu1 %v8325_v2 }
0x2133   : > { %5115 = vadd.xlane.f32.xlu0 %v5114_v56  ;;  %8327 = vmatprep.subr.bf16.mxu1 %v8632_v10 }
0x2136   : > { %8329 = vmatpush3.bf16.msra.mxu1 %v8328_v4 }
0x2137   : > { %8062 = vmatprep.subr.mxu1 %v8634_v13 }
0x21c0   : > { %v5116_v52 = vpop.xlane.xlu0 %5115 }
0x21c1   : > { %v5117_v46 = vmul.f32 0.03125, %v5116_v52 }
0x21c3   : > { %v5118_v57 = vsub.f32 %v9647_v55, %v5117_v46 }
0x21c5   : > { %v5119_v58 = vmul.f32 %v5118_v57, %v5118_v57 }
0x21c7   : > { %v5120_v59 = vsel %vm916_vm0, %v5119_v58, 0.0 }
0x21c8   : > { %5121 = vadd.xlane.f32.xlu1 %v5120_v59 }
0x2255   : > { %v5122_v5 = vpop.xlane.xlu1 %5121 }
0x2256   : > { %v5123_v6 = vmul.f32 0.03125, %v5122_v5 }
0x2258   : > { %v5124_v7 = vadd.f32 1e-06, %v5123_v6 }
0x225a   : > { %8528 = vrsqrt.f32 %v5124_v7 }
0x2264   : > { %v8529_v9 = vpop.eup %8528 }
0x2265   : > { %v5126_v11 = vmul.f32 %v8529_v9, %v5118_v57 }
0x2267   : > { %v5131_v15 = vmul.f32 %v5130_v36, %v5126_v11 }
0x2269   : > { %v5136_v16 = vadd.f32 %v5135_v12, %v5131_v15 }
0x226b   : > { %8060 = vmatmul.mubr.msk.f32.vlgmr.msra.gmra.mrb[54].mxu1 %vm916_vm0, %v5136_v16 }
0x226c   : > { %8064 = vmatprep.mubr.msk.f32.mxu1 %vm8633_vm1, %v8634_v13 }
0x233e   : > { %v5226_v18 = vpop.f32.mrb[54].mxu1 }
0x233f   : > { %v9682_v23 = vadd.f32 %v7415_v17, %v5226_v18  ;;  %v8061_v24 = vpop.f32.mrb[55].mxu1 }
0x2341   : > { %5397 = vrot.lane.b32.xlu1 %v9682_v23, %s10174_s2  ;;  %5231 = vrot.lane.b32.xlu0 %v9682_v23, %s10175_s8 }
0x2345   : > { %5395 = vrot.lane.b32.xlu1 %v9682_v23, %s10176_s9  ;;  %5567 = vrot.lane.b32.xlu0 %v9682_v23, %s10177_s5 }
0x2349   : > { %5565 = vrot.lane.b32.xlu1 %v9682_v23, %s10178_s3  ;;  %5737 = vrot.lane.b32.xlu0 %v9682_v23, %s10179_s30 }
0x234d   : > { %5735 = vrot.lane.b32.xlu1 %v9682_v23, %s10180_s4 }
0x23b3   : > { %v5398_v25 = vpop.permute.xlu1 %5397  ;;  %v5232_v28 = vpop.permute.xlu0 %5231 }
0x23b4   : > { %8063 = vmatpush3.xpose.msk.msra.mxu1 %vm1033_vm2, %v5232_v28  ;;  %8073 = vmatpush3.xpose.msk.msra.mxu0 %vm1033_vm2, %v5398_v25 }
0x23b5   : > { %8082 = vmatprep.subr.mxu0 %v8634_v13  ;;  %8067 = vmatprep.subr.mxu1 %v8634_v13 }
0x23b7   : > { %v5396_v60 = vpop.permute.xlu1 %5395  ;;  %8065 = vmatmul.mubr.msk.f32.vlgmr.msra.gmra.mrb[56].mxu1 %vm1033_vm2, %v9682_v23  ;;  %v5568_v49 = vpop.permute.xlu0 %5567 }
0x23b8   : > { %8075 = vmatmul.mubr.msk.f32.vlgmr.msra.gmra.mrb[40].mxu0 %vm1033_vm2, %v5396_v60  ;;  %8069 = vmatprep.mubr.msk.f32.mxu1 %vm8633_vm1, %v8634_v13 }
0x23b9   : > { %8083 = vmatpush3.xpose.msk.msra.mxu0 %vm1033_vm2, %v5568_v49  ;;  %8084 = vmatprep.mubr.msk.f32.mxu0 %vm8633_vm1, %v8634_v13 }
0x23ba   : > { %8092 = vmatprep.subr.mxu0 %v8634_v13 }
0x23bb   : > { %v5566_v31 = vpop.permute.xlu1 %5565  ;;  %v5738_v32 = vpop.permute.xlu0 %5737 }
0x23bc   : > { %8085 = vmatmul.mubr.msk.f32.vlgmr.msra.gmra.mrb[42].mxu0 %vm1033_vm2, %v5566_v31 }
0x23bd   : > { %8093 = vmatpush3.xpose.msk.msra.mxu0 %vm1033_vm2, %v5738_v32  ;;  %8094 = vmatprep.mubr.msk.f32.mxu0 %vm8633_vm1, %v8634_v13 }
0x23be   : > { %8330 = vmatprep.subr.bf16.mxu0 %v8632_v10 }
0x23bf   : > { %v5736_v33 = vpop.permute.xlu1 %5735 }
0x23c0   : > { %8095 = vmatmul.mubr.msk.f32.vlgmr.msra.gmra.mrb[44].mxu0 %vm1033_vm2, %v5736_v33 }
0x23c1   : > { %8110 = vmatprep.mubr.msk.f32.mxu0 %vm8633_vm1, %v8634_v13 }
0x248a   : > { %v5303_v34 = vpop.f32.mrb[56].mxu1 }
0x248b   : > { %v5304_v21 = vadd.f32 %v5303_v34, %v9357_v63  ;;  %v8066_v37 = vpop.f32.mrb[57].mxu1  ;;  %v5469_v38 = vpop.f32.mrb[40].mxu0 }
0x248c   : > { %v5470_v41 = vadd.f32 %v5469_v38, %v9357_v63  ;;  %v8076_v35 = vpop.f32.mrb[41].mxu0  ;;  %v7411_v37 = vld [vmem:[%s10045_s16 + $0x28] sm:$0xff] }
0x248d   : > { %v5307_v42 = vsel %vm1033_vm2, %v5304_v21, -inf  ;;  %v7412_v35 = vld [vmem:[%s10045_s16 + $0x30] sm:$0xff] }
0x248e   : > { %5308 = vmax.xlane.f32.xlu0 %v5307_v42  ;;  %v5473_v43 = vsel %vm1033_vm2, %v5470_v41, -inf  ;;  %v7413_v42 = vld [vmem:[%s10045_s16 + $0x38] sm:$0xff] }
0x248f   : > { %5474 = vmax.xlane.f32.xlu1 %v5473_v43  ;;  %v5639_v44 = vpop.f32.mrb[42].mxu0 }
0x2490   : > { %v5640_v29 = vadd.f32 %v5639_v44, %v9357_v63  ;;  %v8086_v45 = vpop.f32.mrb[43].mxu0  ;;  %v8334_v44 = vpack.c.bf16 %v7413_v42, %v7412_v35 }
0x2492   : > { %v5643_v47 = vsel %vm1033_vm2, %v5640_v29, -inf }
0x2493   : > { %v5809_v48 = vpop.f32.mrb[44].mxu0  ;;  %5644 = vmax.xlane.f32.xlu0 %v5643_v47 }
0x2494   : > { %v5810_v40 = vadd.f32 %v5809_v48, %v9357_v63  ;;  %v8096_v50 = vpop.f32.mrb[45].mxu0 }
0x2496   : > { %v5813_v51 = vsel %vm1033_vm2, %v5810_v40, -inf }
0x2497   : > { %5814 = vmax.xlane.f32.xlu0 %v5813_v51 }
0x24a0   : > { %5318 = vrot.lane.b32.xlu1 %v9682_v23, %s10181_s28 }
0x251b   : > { %v5309_v53 = vpop.xlane.xlu0 %5308 }
0x251c   : > { %v5310_v54 = vsub.f32 %v5304_v21, %v5309_v53  ;;  %v5475_v56 = vpop.xlane.xlu1 %5474  ;;  %v7410_v21 = vld [vmem:[%s10045_s16 + $0x20] sm:$0xff] }
0x251d   : > { %v5476_v52 = vsub.f32 %v5470_v41, %v5475_v56  ;;  %v8331_v41 = vpack.c.bf16 %v7411_v37, %v7410_v21  ;;  %v6007_v21 = vrot.slane %v9670_v8, %v9052_v27 }
0x251e   : > { %v5311_v46 = vmul.f32 1.442695, %v5310_v54 }
0x251f   : > { %v5477_v57 = vmul.f32 1.442695, %v5476_v52  ;;  %8332 = vmatpush3.bf16.msra.mxu0 %v8331_v41  ;;  %v7429_v52 = vld [vmem:[%s10192_s11 + $0x1] ss:$0 sm:$0xff] }
0x2520   : > { %8530 = vpow2.f32 %v5311_v46  ;;  %v5319_v58 = vpop.permute.xlu1 %5318  ;;  %v5645_v59 = vpop.xlane.xlu0 %5644  ;;  %8333 = vmatprep.subr.bf16.mxu0 %v8632_v10 }
0x2521   : > { %8532 = vpow2.f32 %v5477_v57  ;;  %v5646_v61 = vsub.f32 %v5640_v29, %v5645_v59  ;;  %8068 = vmatpush3.msra.mxu1 %v5319_v58 }
0x2522   : > { %8077 = vmatprep.subr.mxu1 %v8634_v13 }
0x2523   : > { %v5647_v63 = vmul.f32 1.442695, %v5646_v61  ;;  %8335 = vmatpush3.bf16.msra.mxu0 %v8334_v44 }
0x2524   : > { %v5815_v1 = vpop.xlane.xlu0 %5814  ;;  %8342 = vmatprep.subr.bf16.mxu0 %v8632_v10 }
0x2525   : > { %8534 = vpow2.f32 %v5647_v63  ;;  %v5816_v2 = vsub.f32 %v5810_v40, %v5815_v1  ;;  %v7433_v63 = vld [vmem:[%s10193_s23 + $0x30] sm:$0xff]  ;;  %v7434_v1 = vld [vmem:[%s10193_s23 + $0x38] sm:$0xff] }
0x2527   : > { %v5817_v3 = vmul.f32 1.442695, %v5816_v2  ;;  %v8443_v2 = vpack.i.bf16 %v7434_v1, %v7433_v63 }
0x2529   : > { %8536 = vpow2.f32 %v5817_v3 }
0x252a   : > { %v8531_v0 = vpop.eup %8530 }
0x252b   : > { %v8533_v4 = vpop.eup %8532  ;;  %v5313_v5 = vsel %vm1033_vm2, %v8531_v0, 0.0 }
0x252c   : > { %5314 = vadd.xlane.f32.xlu1 %v5313_v5  ;;  %v5479_v6 = vsel %vm1033_vm2, %v8533_v4, 0.0 }
0x252d   : > { %5480 = vadd.xlane.f32.xlu0 %v5479_v6  ;;  %v7431_v6 = vld [vmem:[%s10193_s23 + $0x20] sm:$0xff] }
0x252f   : > { %v8535_v7 = vpop.eup %8534 }
0x2530   : > { %v5649_v36 = vsel %vm1033_vm2, %v8535_v7, 0.0 }
0x2531   : > { %5650 = vadd.xlane.f32.xlu1 %v5649_v36 }
0x2533   : > { %v8537_v9 = vpop.eup %8536 }
0x2534   : > { %v5819_v11 = vsel %vm1033_vm2, %v8537_v9, 0.0 }
0x2535   : > { %5820 = vadd.xlane.f32.xlu0 %v5819_v11  ;;  %v8340_v11 = vpack.c.bf16 %v7434_v1, %v7433_v63 }
0x2542   : > { %5654 = vrot.lane.b32.xlu1 %v9682_v23, %s10182_s10  ;;  %s10206_s10 = sld [smem:[#allocation34_spill]] }
0x2546   : > { %5824 = vrot.lane.b32.xlu1 %v9682_v23, %s10183_s12  ;;  %s10212_s12 = sld [smem:[#allocation39_spill]] }
0x254b   : > { %5484 = vrot.lane.b32.xlu0 %v9682_v23, %s10184_s13 }
0x25b9   : > { %v5315_v12 = vpop.xlane.xlu1 %5314 }
0x25ba   : > { %8538 = vrcp.f32 %v5315_v12  ;;  %v5481_v15 = vpop.xlane.xlu0 %5480  ;;  %v7441_v12 = vld [vmem:[%s10194_s22 + $0x1] ss:$0 sm:$0xff] }
0x25bb   : > { %8540 = vrcp.f32 %v5481_v15 }
0x25be   : > { %v5651_v16 = vpop.xlane.xlu1 %5650 }
0x25bf   : > { %8542 = vrcp.f32 %v5651_v16 }
0x25c2   : > { %v5821_v17 = vpop.xlane.xlu0 %5820  ;;  %v5655_v23 = vpop.permute.xlu1 %5654 }
0x25c3   : > { %8544 = vrcp.f32 %v5821_v17 }
0x25c4   : > { %v8539_v18 = vpop.eup %8538 }
0x25c5   : > { %v5317_v24 = vmul.f32 %v8539_v18, %v8531_v0  ;;  %v8541_v25 = vpop.eup %8540 }
0x25c6   : > { %v5485_v28 = vpop.permute.xlu0 %5484  ;;  %v5483_v60 = vmul.f32 %v8541_v25, %v8533_v4  ;;  %v5825_v33 = vpop.permute.xlu1 %5824 }
0x25c7   : > { %8070 = vmatmul.mubr.msk.f32.vlgmr.msra.gmra.mrb[58].mxu1 %vm1033_vm2, %v5317_v24 }
0x25c8   : > { %8078 = vmatpush3.msra.mxu1 %v5485_v28  ;;  %8079 = vmatprep.mubr.msk.f32.mxu1 %vm8633_vm1, %v8634_v13 }
0x25c9   : > { %8087 = vmatprep.subr.mxu1 %v8634_v13  ;;  %v8543_v49 = vpop.eup %8542 }
0x25ca   : > { %v5653_v31 = vmul.f32 %v8543_v49, %v8535_v7  ;;  %v7432_v7 = vld [vmem:[%s10193_s23 + $0x28] sm:$0xff] }
0x25cb   : > { %8080 = vmatmul.mubr.msk.f32.vlgmr.msra.gmra.mrb[60].mxu1 %vm1033_vm2, %v5483_v60  ;;  %v8438_v36 = vpack.i.bf16 %v7432_v7, %v7431_v6 }
0x25cc   : > { %8088 = vmatpush3.msra.mxu1 %v5655_v23  ;;  %8089 = vmatprep.mubr.msk.f32.mxu1 %vm8633_vm1, %v8634_v13 }
0x25cd   : > { %8097 = vmatprep.subr.mxu1 %v8634_v13  ;;  %v8545_v32 = vpop.eup %8544 }
0x25ce   : > { %v5823_v34 = vmul.f32 %v8545_v32, %v8537_v9  ;;  %v8337_v9 = vpack.c.bf16 %v7432_v7, %v7431_v6  ;;  %v6002_v32 = vrot.slane %v9670_v8, %v9049_v26 }
0x25cf   : > { %8090 = vmatmul.mubr.msk.f32.vlgmr.msra.gmra.mrb[62].mxu1 %vm1033_vm2, %v5653_v31 }
0x25d0   : > { %8098 = vmatpush3.msra.mxu1 %v5825_v33  ;;  %8099 = vmatprep.mubr.msk.f32.mxu1 %vm8633_vm1, %v8634_v13 }
0x25d1   : > { %8336 = vmatprep.subr.bf16.mxu1 %v8632_v10 }
0x25d3   : > { %8100 = vmatmul.mubr.msk.f32.vlgmr.msra.gmra.mrb[64].mxu1 %vm1033_vm2, %v5823_v34 }
0x25d4   : > { %8121 = vmatprep.mubr.msk.f32.mxu1 %vm8633_vm1, %v8634_v13  ;;  %8338 = vmatpush3.bf16.msra.mxu1 %v8337_v9 }
0x25d5   : > { %8339 = vmatprep.subr.bf16.mxu1 %v8632_v10 }
0x25d8   : > { %8341 = vmatpush3.bf16.msra.mxu1 %v8340_v11 }
0x25d9   : > { %8135 = vmatprep.subr.mxu1 %v8634_v13 }
0x269a   : > { %v5390_v38 = vpop.f32.mrb[58].mxu1 }
0x269b   : > { %5394 = vst.msk [vmem:[#allocation2] sm:$0xff] %vm1033_vm2, %v5390_v38  ;;  %v8071_v43 = vpop.f32.mrb[59].mxu1 }
0x269e   : > { %v5556_v29 = vpop.f32.mrb[60].mxu1 }
0x269f   : > { %5561 = vrot.lane.b32.xlu0 %v5556_v29, %s10185_s21  ;;  %v8081_v45 = vpop.f32.mrb[61].mxu1 }
0x26a2   : > { %v5726_v47 = vpop.f32.mrb[62].mxu1 }
0x26a3   : > { %5731 = vrot.lane.b32.xlu1 %v5726_v47, %s10186_s20  ;;  %v8091_v48 = vpop.f32.mrb[63].mxu1 }
0x26a6   : > { %v5896_v40 = vpop.f32.mrb[64].mxu1 }
0x26a7   : > { %5901 = vrot.lane.b32.xlu0 %v5896_v40, %s10190_s25  ;;  %v8101_v50 = vpop.f32.mrb[65].mxu1 }
0x2711   : > { %v5562_v51 = vpop.permute.xlu0 %5561 }
0x2712   : > { %5564 = vst.msk [vmem:[#allocation2] sm:$0xff] %vm1365_vm3, %v5562_v51 }
0x2715   : > { %v5732_v53 = vpop.permute.xlu1 %5731 }
0x2716   : > { %5734 = vst.msk [vmem:[#allocation2] sm:$0xff] %vm1536_vm4, %v5732_v53 }
0x2719   : > { %v5902_v54 = vpop.permute.xlu0 %5901 }
0x271a   : > { %5904 = vst.msk [vmem:[#allocation2] sm:$0xff] %vm1707_vm5, %v5902_v54 }
0x2721   : > { %v5905_v56 = vld [vmem:[#allocation2] sm:$0xff] }
0x2722   : > { %8111 = vmatmul.mubr.msk.f32.vlgmr.msra.gmra.mrb[46].mxu0 %vm916_vm0, %v5905_v56 }
0x2723   : > { %8132 = vmatprep.mubr.msk.f32.mxu0 %vm8633_vm1, %v8634_v13 }
0x27f5   : > { %v5981_v46 = vpop.f32.mrb[46].mxu0 }
0x27f6   : > { %v5982_v57 = vadd.f32 %v7429_v52, %v5981_v46  ;;  %v8112_v58 = vpop.f32.mrb[47].mxu0 }
0x27f8   : > { %v9783_v59 = vadd.f32 %v5982_v57, %v9647_v55 }
0x27fa   : > { %v5986_v61 = vsel %vm916_vm0, %v9783_v59, 0.0 }
0x27fb   : > { %5987 = vadd.xlane.f32.xlu1 %v5986_v61 }
0x280c   : > { %8444 = vrot.lane.b32.xlu1 %v8443_v2, %s10175_s8 }
0x2810   : > { %6118 = vrot.lane.b32.xlu1 %v7441_v12, %s10175_s8 }
0x2888   : > { %v5988_v3 = vpop.xlane.xlu1 %5987 }
0x2889   : > { %v5989_v0 = vmul.f32 0.03125, %v5988_v3 }
0x288b   : > { %v5990_v55 = vsub.f32 %v9783_v59, %v5989_v0 }
0x288c   : > { %v8445_v17 = vpop.permute.xlu1 %8444 }
0x288d   : > { %v5991_v4 = vmul.f32 %v5990_v55, %v5990_v55  ;;  %v8447_v25 = vunpack.i.h.bf16 %v8445_v17  ;;  %v8446_v23 = vunpack.i.l.bf16 %v8445_v17 }
0x288f   : > { %v5992_v5 = vsel %vm916_vm0, %v5991_v4, 0.0  ;;  %v8346_v31 = vpack.c.bf16 %v8447_v25, %v8446_v23 }
0x2890   : > { %5993 = vadd.xlane.f32.xlu0 %v5992_v5  ;;  %v6119_v26 = vpop.permute.xlu1 %6118 }
0x28a6   : > { %8439 = vrot.lane.b32.xlu0 %v8438_v36, %s10175_s8 }
0x291d   : > { %v5994_v15 = vpop.xlane.xlu0 %5993 }
0x291e   : > { %v5995_v16 = vmul.f32 0.03125, %v5994_v15 }
0x2920   : > { %v5996_v18 = vadd.f32 1e-06, %v5995_v16 }
0x2921   : > { %v8440_v24 = vpop.permute.xlu0 %8439 }
0x2922   : > { %8546 = vrsqrt.f32 %v5996_v18  ;;  %v8442_v28 = vunpack.i.h.bf16 %v8440_v24  ;;  %v8441_v60 = vunpack.i.l.bf16 %v8440_v24 }
0x2924   : > { %v8343_v49 = vpack.c.bf16 %v8442_v28, %v8441_v60 }
0x2926   : > { %8344 = vmatpush3.bf16.msra.mxu0 %v8343_v49 }
0x2927   : > { %8345 = vmatprep.subr.bf16.mxu0 %v8632_v10 }
0x292a   : > { %8347 = vmatpush3.bf16.msra.mxu0 %v8346_v31 }
0x292b   : > { %8145 = vmatprep.subr.mxu0 %v8634_v13 }
0x292c   : > { %v8547_v33 = vpop.eup %8546 }
0x292d   : > { %v5998_v34 = vmul.f32 %v8547_v33, %v5990_v55  ;;  %8133 = vmatmul.mubr.msk.f32.vlgmr.msra.gmra.mrb[48].mxu0 %vm916_vm0, %v9462_v14 }
0x292e   : > { %8147 = vmatprep.mubr.msk.f32.mxu0 %vm8633_vm1, %v8634_v13 }
0x292f   : > { %v6003_v37 = vmul.f32 %v6002_v32, %v5998_v34 }
0x2931   : > { %v6008_v38 = vadd.f32 %v6007_v21, %v6003_v37 }
0x2933   : > { %8122 = vmatmul.mubr.msk.f32.vlgmr.msra.gmra.mrb[66].mxu1 %vm916_vm0, %v6008_v38 }
0x2934   : > { %8137 = vmatprep.mubr.msk.f32.mxu1 %vm8633_vm1, %v8634_v13 }
0x2a00   : > { %v6187_v41 = vpop.f32.mrb[48].mxu0 }
0x2a01   : > { %v9822_v35 = vadd.f32 %v6187_v41, %v6119_v26  ;;  %v8134_v42 = vpop.f32.mrb[49].mxu0 }
0x2a03   : > { %6357 = vrot.lane.b32.xlu0 %v9822_v35, %s10176_s9  ;;  %8136 = vmatpush3.xpose.msk.msra.mxu1 %vm1033_vm2, %v9822_v35 }
0x2a04   : > { %8140 = vmatprep.subr.mxu1 %v8634_v13 }
0x2a06   : > { %v6098_v27 = vpop.f32.mrb[66].mxu1 }
0x2a07   : > { %v6099_v14 = vadd.f32 %v7441_v12, %v6098_v27  ;;  %6527 = vrot.lane.b32.xlu0 %v9822_v35, %s10178_s3  ;;  %v8123_v43 = vpop.f32.mrb[67].mxu1 }
0x2a09   : > { %6355 = vrot.lane.b32.xlu1 %v6099_v14, %s10176_s9  ;;  %8138 = vmatmul.mubr.msk.f32.vlgmr.msra.gmra.mrb[68].mxu1 %vm1033_vm2, %v6099_v14  ;;  %s10203_s9 = sld [smem:[#allocation32_spill]] }
0x2a0a   : > { %8142 = vmatprep.mubr.msk.f32.mxu1 %vm8633_vm1, %v8634_v13 }
0x2a0b   : > { %6697 = vrot.lane.b32.xlu0 %v9822_v35, %s10180_s4 }
0x2a0d   : > { %6525 = vrot.lane.b32.xlu1 %v6099_v14, %s10178_s3 }
0x2a0f   : > { %s10204_s3 = smov %s10203_s9 }
0x2a11   : > { %6695 = vrot.lane.b32.xlu1 %v6099_v14, %s10180_s4 }
0x2a75   : > { %v6358_v44 = vpop.permute.xlu0 %6357 }
0x2a76   : > { %8146 = vmatpush3.xpose.msk.msra.mxu0 %vm1033_vm2, %v6358_v44 }
0x2a77   : > { %8155 = vmatprep.subr.mxu0 %v8634_v13 }
0x2a79   : > { %v6528_v29 = vpop.permute.xlu0 %6527 }
0x2a7b   : > { %v6356_v45 = vpop.permute.xlu1 %6355 }
0x2a7c   : > { %8148 = vmatmul.mubr.msk.f32.vlgmr.msra.gmra.mrb[50].mxu0 %vm1033_vm2, %v6356_v45 }
0x2a7d   : > { %8156 = vmatpush3.xpose.msk.msra.mxu0 %vm1033_vm2, %v6528_v29  ;;  %8157 = vmatprep.mubr.msk.f32.mxu0 %vm8633_vm1, %v8634_v13  ;;  %v6698_v48 = vpop.permute.xlu0 %6697 }
0x2a7e   : > { %8165 = vmatprep.subr.mxu0 %v8634_v13 }
0x2a7f   : > { %v6526_v47 = vpop.permute.xlu1 %6525 }
0x2a80   : > { %8158 = vmatmul.mubr.msk.f32.vlgmr.msra.gmra.mrb[52].mxu0 %vm1033_vm2, %v6526_v47 }
0x2a81   : > { %8166 = vmatpush3.xpose.msk.msra.mxu0 %vm1033_vm2, %v6698_v48  ;;  %8167 = vmatprep.mubr.msk.f32.mxu0 %vm8633_vm1, %v8634_v13 }
0x2a82   : > { %8348 = vmatprep.subr.bf16.mxu0 %v8632_v10 }
0x2a83   : > { %v6696_v40 = vpop.permute.xlu1 %6695 }
0x2a84   : > { %8168 = vmatmul.mubr.msk.f32.vlgmr.msra.gmra.mrb[54].mxu0 %vm1033_vm2, %v6696_v40  ;;  %v7436_v40 = vld [vmem:[%s10203_s9 + $0x20] sm:$0xff]  ;;  %s10209_s9 = sld [smem:[#allocation10_spill]] }
0x2a85   : > { %8183 = vmatprep.mubr.msk.f32.mxu0 %vm8633_vm1, %v8634_v13 }
0x2adc   : > { %v6263_v50 = vpop.f32.mrb[68].mxu1 }
0x2add   : > { %v6264_v51 = vadd.f32 %v6263_v50, %v9512_v39  ;;  %v8139_v53 = vpop.f32.mrb[69].mxu1  ;;  %v7437_v50 = vld [vmem:[%s10204_s3 + $0x28] sm:$0xff] }
0x2ade   : > { %v7438_v53 = vld [vmem:[%s10204_s3 + $0x30] sm:$0xff] }
0x2adf   : > { %v6267_v54 = vsel %vm1033_vm2, %v6264_v51, -inf }
0x2ae0   : > { %6268 = vmax.xlane.f32.xlu0 %v6267_v54  ;;  %v7439_v54 = vld [vmem:[%s10204_s3 + $0x38] sm:$0xff] }
0x2b4f   : > { %v6429_v56 = vpop.f32.mrb[50].mxu0 }
0x2b50   : > { %v6430_v52 = vadd.f32 %v6429_v56, %v9512_v39  ;;  %v8149_v46 = vpop.f32.mrb[51].mxu0  ;;  %v8352_v56 = vpack.c.bf16 %v7439_v54, %v7438_v53 }
0x2b52   : > { %v6433_v57 = vsel %vm1033_vm2, %v6430_v52, -inf }
0x2b53   : > { %6434 = vmax.xlane.f32.xlu1 %v6433_v57  ;;  %v6599_v58 = vpop.f32.mrb[52].mxu0 }
0x2b54   : > { %v6600_v61 = vadd.f32 %v6599_v58, %v9512_v39  ;;  %v8159_v63 = vpop.f32.mrb[53].mxu0 }
0x2b56   : > { %v6603_v1 = vsel %vm1033_vm2, %v6600_v61, -inf }
0x2b57   : > { %v6769_v2 = vpop.f32.mrb[54].mxu0  ;;  %6604 = vmax.xlane.f32.xlu0 %v6603_v1 }
0x2b58   : > { %v6770_v3 = vadd.f32 %v6769_v2, %v9512_v39  ;;  %v8169_v0 = vpop.f32.mrb[55].mxu0 }
0x2b5a   : > { %v6773_v55 = vsel %vm1033_vm2, %v6770_v3, -inf }
0x2b5b   : > { %6774 = vmax.xlane.f32.xlu0 %v6773_v55  ;;  %v7456_v55 = vld [vmem:[%s10205_s29 + $0x1] ss:$0 sm:$0xff] }
0x2b64   : > { %6278 = vrot.lane.b32.xlu1 %v9822_v35, %s10175_s8  ;;  %s10208_s8 = sld [smem:[#allocation7_spill]] }
0x2b6d   : > { %v6269_v4 = vpop.xlane.xlu0 %6268 }
0x2b6e   : > { %v6270_v5 = vsub.f32 %v6264_v51, %v6269_v4  ;;  %v8349_v51 = vpack.c.bf16 %v7437_v50, %v7436_v40 }
0x2b70   : > { %v6271_v6 = vmul.f32 1.442695, %v6270_v5  ;;  %8350 = vmatpush3.bf16.msra.mxu0 %v8349_v51 }
0x2b71   : > { %8351 = vmatprep.subr.bf16.mxu0 %v8632_v10 }
0x2b72   : > { %8548 = vpow2.f32 %v6271_v6 }
0x2b74   : > { %8353 = vmatpush3.bf16.msra.mxu0 %v8352_v56 }
0x2b75   : > { %8360 = vmatprep.subr.bf16.mxu0 %v8632_v10 }
0x2b7c   : > { %v8549_v7 = vpop.eup %8548 }
0x2b7d   : > { %v6273_v36 = vsel %vm1033_vm2, %v8549_v7, 0.0 }
0x2b88   : > { %6274 = vadd.xlane.f32.xlu1 %v6273_v36 }
0x2be0   : > { %v6435_v9 = vpop.xlane.xlu1 %6434 }
0x2be1   : > { %v6436_v11 = vsub.f32 %v6430_v52, %v6435_v9 }
0x2be3   : > { %v6437_v12 = vmul.f32 1.442695, %v6436_v11 }
0x2be4   : > { %v6279_v15 = vpop.permute.xlu1 %6278  ;;  %v6605_v39 = vpop.xlane.xlu0 %6604 }
0x2be5   : > { %8550 = vpow2.f32 %v6437_v12  ;;  %v6606_v16 = vsub.f32 %v6600_v61, %v6605_v39  ;;  %8141 = vmatpush3.msra.mxu1 %v6279_v15 }
0x2be6   : > { %8150 = vmatprep.subr.mxu1 %v8634_v13 }
0x2be7   : > { %v6607_v17 = vmul.f32 1.442695, %v6606_v16  ;;  %v7459_v16 = vld [vmem:[%s10206_s10 + $0x28] sm:$0xff] }
0x2be8   : > { %v6775_v18 = vpop.xlane.xlu0 %6774 }
0x2be9   : > { %8552 = vpow2.f32 %v6607_v17  ;;  %v6776_v24 = vsub.f32 %v6770_v3, %v6775_v18  ;;  %v7461_v18 = vld [vmem:[%s10206_s10 + $0x38] sm:$0xff] }
0x2beb   : > { %v6777_v25 = vmul.f32 1.442695, %v6776_v24 }
0x2bed   : > { %8554 = vpow2.f32 %v6777_v25  ;;  %v7463_v25 = vld [vmem:[%s10200_s6 + $0x40] sm:$0xff] }
0x2bef   : > { %v8551_v28 = vpop.eup %8550 }
0x2bf0   : > { %v6439_v60 = vsel %vm1033_vm2, %v8551_v28, 0.0 }
0x2bf1   : > { %6440 = vadd.xlane.f32.xlu0 %v6439_v60  ;;  %v7465_v60 = vld [vmem:[%s10200_s6 + $0x50] sm:$0xff] }
0x2bf3   : > { %v8553_v23 = vpop.eup %8552 }
0x2bf4   : > { %v6609_v49 = vsel %vm1033_vm2, %v8553_v23, 0.0 }
0x2bf5   : > { %6610 = vadd.xlane.f32.xlu1 %v6609_v49  ;;  %v7466_v49 = vld [vmem:[%s10200_s6 + $0x58] sm:$0xff] }
0x2bf7   : > { %v8555_v31 = vpop.eup %8554 }
0x2bf8   : > { %v6779_v32 = vsel %vm1033_vm2, %v8555_v31, 0.0 }
0x2bf9   : > { %6780 = vadd.xlane.f32.xlu0 %v6779_v32  ;;  %v7467_v32 = vld [vmem:[%s10200_s6 + $0x60] sm:$0xff] }
0x2c06   : > { %6614 = vrot.lane.b32.xlu1 %v9822_v35, %s10177_s5  ;;  %s886_s5 = sand.u32 1, %s10208_s8  }
0x2c07   : > { %s7172_s27 = scalar_lea.sflag [#allocation4], %s886_s5 }
0x2c0a   : > { %6784 = vrot.lane.b32.xlu1 %v9822_v35, %s10179_s30  ;;  %s7296_s30 = sshll.u32 %s886_s5, 3 }
0x2c0f   : > { %6444 = vrot.lane.b32.xlu0 %v9822_v35, %s10174_s2  ;;  %s10207_s2 = sld [smem:[#allocation37_spill]] }
0x2c15   : > { %v6275_v33 = vpop.xlane.xlu1 %6274 }
0x2c16   : > { %8556 = vrcp.f32 %v6275_v33  ;;  %v7468_v33 = vld [vmem:[%s10200_s6 + $0x68] sm:$0xff] }
0x2c20   : > { %v8557_v34 = vpop.eup %8556 }
0x2c21   : > { %v6277_v21 = vmul.f32 %v8557_v34, %v8549_v7  ;;  %v8367_v34 = vpack.c.bf16 %v7468_v33, %v7467_v32 }
0x2c23   : > { %8143 = vmatmul.mubr.msk.f32.vlgmr.msra.gmra.mrb[70].mxu1 %vm1033_vm2, %v6277_v21 }
0x2c24   : > { %8152 = vmatprep.mubr.msk.f32.mxu1 %vm8633_vm1, %v8634_v13 }
0x2c7e   : > { %v6441_v37 = vpop.xlane.xlu0 %6440 }
0x2c7f   : > { %8558 = vrcp.f32 %v6441_v37 }
0x2c82   : > { %v6611_v38 = vpop.xlane.xlu1 %6610 }
0x2c83   : > { %8560 = vrcp.f32 %v6611_v38 }
0x2c86   : > { %v6781_v26 = vpop.xlane.xlu0 %6780  ;;  %v6615_v27 = vpop.permute.xlu1 %6614 }
0x2c87   : > { %8562 = vrcp.f32 %v6781_v26  ;;  %v6962_v26 = vrot.slane %v9670_v8, %v4930_v62 }
0x2c89   : > { %v8559_v41 = vpop.eup %8558 }
0x2c8a   : > { %v6443_v42 = vmul.f32 %v8559_v41, %v8551_v28  ;;  %v6445_v14 = vpop.permute.xlu0 %6444  ;;  %v6785_v44 = vpop.permute.xlu1 %6784  ;;  %v7464_v28 = vld [vmem:[%s10200_s6 + $0x48] sm:$0xff] }
0x2c8b   : > { %8151 = vmatpush3.msra.mxu1 %v6445_v14 }
0x2c8c   : > { %8153 = vmatmul.mubr.msk.f32.vlgmr.msra.gmra.mrb[72].mxu1 %vm1033_vm2, %v6443_v42  ;;  %8160 = vmatprep.subr.mxu1 %v8634_v13 }
0x2c8d   : > { %v8561_v35 = vpop.eup %8560  ;;  %8161 = vmatpush3.msra.mxu1 %v6615_v27  ;;  %8162 = vmatprep.mubr.msk.f32.mxu1 %vm8633_vm1, %v8634_v13  ;;  %v6967_v27 = vrot.slane %v9670_v8, %v4935_v30 }
0x2c8e   : > { %v6613_v43 = vmul.f32 %v8561_v35, %v8553_v23  ;;  %8170 = vmatprep.subr.mxu1 %v8634_v13  ;;  %v8361_v23 = vpack.c.bf16 %v7464_v28, %v7463_v25 }
0x2c90   : > { %8163 = vmatmul.mubr.msk.f32.vlgmr.msra.gmra.mrb[74].mxu1 %vm1033_vm2, %v6613_v43  ;;  %v7470_v43 = vld [vmem:[%s10200_s6 + $0x78] sm:$0xff] }
0x2c91   : > { %v8563_v29 = vpop.eup %8562  ;;  %8171 = vmatpush3.msra.mxu1 %v6785_v44  ;;  %8172 = vmatprep.mubr.msk.f32.mxu1 %vm8633_vm1, %v8634_v13 }
0x2c92   : > { %v6783_v45 = vmul.f32 %v8563_v29, %v8555_v31  ;;  %8354 = vmatprep.subr.bf16.mxu1 %v8632_v10  ;;  %v8364_v31 = vpack.c.bf16 %v7466_v49, %v7465_v60 }
0x2c94   : > { %8173 = vmatmul.mubr.msk.f32.vlgmr.msra.gmra.mrb[76].mxu1 %vm1033_vm2, %v6783_v45  ;;  %v7474_v45 = vld [vmem:[%s10207_s2 + $0x1] ss:$0 sm:$0xff]  ;;  %s8574_s2 = scalar_lea.vmem %s8573_s24, 256 }
0x2c95   : > { %8194 = vmatprep.mubr.msk.f32.mxu1 %vm8633_vm1, %v8634_v13 }
0x2cf6   : > { %v6350_v47 = vpop.f32.mrb[70].mxu1 }
0x2cf7   : > { %6354 = vst.msk [vmem:[#allocation2] sm:$0xff] %vm1033_vm2, %v6350_v47  ;;  %v8144_v48 = vpop.f32.mrb[71].mxu1 }
0x2d5f   : > { %v6516_v52 = vpop.f32.mrb[72].mxu1 }
0x2d60   : > { %6521 = vrot.lane.b32.xlu0 %v6516_v52, %s10185_s21  ;;  %v8154_v46 = vpop.f32.mrb[73].mxu1  ;;  %s7477_s21 = sshll.u32 %s10209_s9, 7 }
0x2d61   : > { %s9986_s28 = scalar_lea.hbm %s10212_s12, %s7477_s21 }
0x2d63   : > { %v6686_v57 = vpop.f32.mrb[74].mxu1 }
0x2d64   : > { %6691 = vrot.lane.b32.xlu1 %v6686_v57, %s10186_s20  ;;  %v8164_v58 = vpop.f32.mrb[75].mxu1  ;;  %s888_s20 = scalar_lea.vmem [#allocation3], %s7296_s30 }
0x2d65   : > { %s7185_s29 = sshll.u32 %s888_s20, 4  ;;  %s9988_s29 = int_to_ptr.vmem [resolvable:$true] %s7185_s29 }
0x2d66   : > { %s8568_s1 = scalar_lea.vmem %s9988_s29, 128  ;;  %p8575_p0 = scmp.lt.s32.totalorder %s9988_s29, %s8573_s24 }
0x2d67   : > { %v6856_v61 = vpop.f32.mrb[76].mxu1  ;;  %p8569_p11 = scmp.ne.s32.totalorder %s9988_s29, %s8568_s1  ;;  %p8576_p1 = scmp.lt.s32.totalorder %s8574_s2, %s8568_s1 }
0x2d68   : > { %6861 = vrot.lane.b32.xlu0 %v6856_v61, %s10190_s25  ;;  %v8174_v63 = vpop.f32.mrb[77].mxu1 }
0x2d69   : > { %v913_v63 = vld [vmem:[%s10210_s7 + $0x2] sm:$0x3]  ;;  %p8570_p12 = pnand %p8569_p11, %p8833_p5  ;;  %p8577_p2 = por %p8576_p1, %p8575_p0 }
0x2d6b   : > { %p8571_p13 = pneg %p8570_p12 }
0x2d6d   : > { %p8578_p3 = pnand %p8577_p2, %p8571_p13 }
0x2dd2   : > { %v6522_v1 = vpop.permute.xlu0 %6521 }
0x2dd3   : > { %6524 = vst.msk [vmem:[#allocation2] sm:$0xff] %vm1365_vm3, %v6522_v1  ;;  %v7163_v1 = vrot.slane %v913_v63, %v8880_v20 }
0x2dd6   : > { %v6692_v2 = vpop.permute.xlu1 %6691 }
0x2dd7   : > { %6694 = vst.msk [vmem:[#allocation2] sm:$0xff] %vm1536_vm4, %v6692_v2 }
0x2dda   : > { %v6862_v3 = vpop.permute.xlu0 %6861 }
0x2ddb   : > { %6864 = vst.msk [vmem:[#allocation2] sm:$0xff] %vm1707_vm5, %v6862_v3 }
0x2de2   : > { %v6865_v0 = vld [vmem:[#allocation2] sm:$0xff] }
0x2de3   : > { %8184 = vmatmul.mubr.msk.f32.vlgmr.msra.gmra.mrb[56].mxu0 %vm916_vm0, %v6865_v0  ;;  %v7168_v0 = vrot.slane %v913_v63, %v8888_v22 }
0x2de4   : > { %8213 = vmatprep.mubr.msk.f32.mxu0 %vm8633_vm1, %v8634_v13  ;;  %v7458_v13 = vld [vmem:[%s10206_s10 + $0x20] sm:$0xff]  ;;  %8362 = vmatpush3.bf16.msra.mxu0 %v8361_v23 }
0x2de5   : > { %v8355_v17 = vpack.c.bf16 %v7459_v16, %v7458_v13  ;;  %8363 = vmatprep.subr.bf16.mxu0 %v8632_v10 }
0x2de7   : > { %8356 = vmatpush3.bf16.msra.mxu1 %v8355_v17 }
0x2de8   : > { %8357 = vmatprep.subr.bf16.mxu1 %v8632_v10  ;;  %8365 = vmatpush3.bf16.msra.mxu0 %v8364_v31 }
0x2de9   : > { %8366 = vmatprep.subr.bf16.mxu0 %v8632_v10 }
0x2dec   : > { %8368 = vmatpush3.bf16.msra.mxu0 %v8367_v34 }
0x2ded   : > { %8369 = vmatprep.subr.bf16.mxu0 %v8632_v10  ;;  %v7469_v10 = vld [vmem:[%s10200_s6 + $0x70] sm:$0xff] }
0x2dee   : > { %v8370_v44 = vpack.c.bf16 %v7470_v43, %v7469_v10 }
0x2df0   : > { %8371 = vmatpush3.bf16.msra.mxu0 %v8370_v44 }
0x2eb6   : > { %v6941_v4 = vpop.f32.mrb[56].mxu0 }
0x2eb7   : > { %v6942_v5 = vadd.f32 %v7456_v55, %v6941_v4  ;;  %v8185_v6 = vpop.f32.mrb[57].mxu0 }
0x2eb9   : > { %v6945_v7 = vadd.f32 %v6942_v5, %v9783_v59  ;;  %v7460_v59 = vld [vmem:[%s10206_s10 + $0x30] sm:$0xff] }
0x2eba   : > { %v8358_v24 = vpack.c.bf16 %v7461_v18, %v7460_v59 }
0x2ebb   : > { %v6946_v36 = vsel %vm916_vm0, %v6945_v7, 0.0 }
0x2ebc   : > { %6947 = vadd.xlane.f32.xlu1 %v6946_v36  ;;  %8359 = vmatpush3.bf16.msra.mxu1 %v8358_v24 }
0x2f49   : > { %v6948_v9 = vpop.xlane.xlu1 %6947 }
0x2f4a   : > { %v6949_v11 = vmul.f32 0.03125, %v6948_v9 }
0x2f4c   : > { %v6950_v12 = vsub.f32 %v6945_v7, %v6949_v11 }
0x2f4e   : > { %v6951_v15 = vmul.f32 %v6950_v12, %v6950_v12 }
0x2f50   : > { %v6952_v39 = vsel %vm916_vm0, %v6951_v15, 0.0 }
0x2f51   : > { %6953 = vadd.xlane.f32.xlu0 %v6952_v39 }
0x2fde   : > { %v6954_v21 = vpop.xlane.xlu0 %6953 }
0x2fdf   : > { %v6955_v37 = vmul.f32 0.03125, %v6954_v21 }
0x2fe1   : > { %v6956_v38 = vadd.f32 1e-06, %v6955_v37 }
0x2fe3   : > { %8564 = vrsqrt.f32 %v6956_v38 }
0x2fed   : > { %v8565_v41 = vpop.eup %8564 }
0x2fee   : > { %v6958_v42 = vmul.f32 %v8565_v41, %v6950_v12 }
0x2ff0   : > { %v6963_v14 = vmul.f32 %v6962_v26, %v6958_v42 }
0x2ff2   : > { %v6968_v35 = vadd.f32 %v6967_v27, %v6963_v14 }
0x2ff4   : > { %8195 = vmatmul.mubr.msk.f32.vlgmr.msra.gmra.mrb[78].mxu1 %vm916_vm0, %v6968_v35 }
0x30c7   : > { %v7062_v62 = vpop.f32.mrb[78].mxu1 }
0x30c8   : > { %v7063_v30 = vadd.f32 %v7472_v19, %v7062_v62  ;;  %v8196_v8 = vpop.f32.mrb[79].mxu1 }
0x30ca   : > { %v7066_v29 = vmax.f32 %v7063_v30, 0.0 }
0x30cc   : > { %8214 = vmatmul.mubr.msk.f32.vlgmr.msra.gmra.mrb[58].mxu0 %vm1913_vm6, %v7066_v29 }
0x319f   : > { %v7142_v47 = vpop.f32.mrb[58].mxu0 }
0x31a0   : > { %v7143_v48 = vadd.f32 %v7474_v45, %v7142_v47  ;;  %v8215_v40 = vpop.f32.mrb[59].mxu0 }
0x31a2   : > { %v7146_v50 = vadd.f32 %v7143_v48, %v6945_v7 }
0x31a4   : > { %v7147_v51 = vsel %vm916_vm0, %v7146_v50, 0.0 }
0x31a5   : > { %7148 = vadd.xlane.f32.xlu0 %v7147_v51 }
0x3232   : > { %v7149_v53 = vpop.xlane.xlu0 %7148 }
0x3233   : > { %v7150_v54 = vmul.f32 0.03125, %v7149_v53 }
0x3235   : > { %v7151_v56 = vsub.f32 %v7146_v50, %v7150_v54 }
0x3237   : > { %v7152_v52 = vmul.f32 %v7151_v56, %v7151_v56 }
0x3239   : > { %v7153_v46 = vsel %vm916_vm0, %v7152_v52, 0.0 }
0x323a   : > { %7154 = vadd.xlane.f32.xlu1 %v7153_v46 }
0x32c7   : > { %v7155_v57 = vpop.xlane.xlu1 %7154 }
0x32c8   : > { %v7156_v58 = vmul.f32 0.03125, %v7155_v57 }
0x32ca   : > { %v7157_v61 = vadd.f32 1e-06, %v7156_v58 }
0x32cc   : > { %8566 = vrsqrt.f32 %v7157_v61 }
0x32d6   : > { %v8567_v2 = vpop.eup %8566 }
0x32d7   : > { %v7159_v3 = vmul.f32 %v8567_v2, %v7151_v56 }
0x32d9   : > { %v7164_v55 = vmul.f32 %v7163_v1, %v7159_v3 }
0x32db   : > { %v7169_v4 = vadd.f32 %v7168_v0, %v7164_v55 }
0x32dd   : > { %7170 = vst.msk [vmem:[%s888_s20] sm:$0xff] %vm916_vm0, %v7169_v4 }
0x32de   : > { %8581 = shalt.err (!%p8578_p3)
}
0x32df   : > { %s8582_s8 = scalar_lea.hbm %s9986_s28, 128  ;;  %s8586_s30 = scalar_lea.hbm %s10212_s12, 256 }
0x32e0   : > { %p8583_p4 = scmp.ne.s32.totalorder %s9986_s28, %s8582_s8  ;;  %p8587_p9 = scmp.lt.u32.totalorder %s9986_s28, %s10212_s12 }
0x32e1   : > { %p8588_p10 = scmp.lt.u32.totalorder %s8586_s30, %s8582_s8  ;;  %p8590_p12 = scmp.lt.u32.totalorder %s8582_s8, %s9986_s28 }
0x32e2   : > { %p8584_p7 = pnand %p8583_p4, %p8833_p5 }
0x32e3   : > { %p8589_p11 = por %p8588_p10, %p8587_p9 }
0x32e4   : > { %p8585_p8 = pneg %p8584_p7 }
0x32e5   : > { %p8591_p13 = por %p8590_p12, %p8589_p11 }
0x32e7   : > { %p8592_p0 = pnand %p8591_p13, %p8585_p8 }
0x32e9   : > { %8595 = shalt.err (!%p8592_p0)
}
0x32ea   : > { %8372 = dma.vmem_to_hbm [thread:$0]  (%p8833_p5), %s9988_s29, 128, %s9986_s28, %s7172_s27  }
0x32eb PF: > { %s10213_s7 = sld [smem:[#allocation9_spill]]  ;;  %s10214_s21 = sld [smem:[#allocation6_spill]] }
0x32f1   : > { %p8378_p1 = scmp.ge.s32.totalorder %s10213_s7, 2  ;;  %s7197_s25 = sand.u32 1, %s10214_s21  }
0x32f2   : > { %s7198_s13 = scalar_lea.sflag [#allocation4], %s7197_s25 }
0x32f3   : > { %p8375_p2 = pnand %p8378_p1, %p8837_p6 }
0x32f5   : > { %8613 = dma.done.wait (!%p8375_p2), %s7198_s13, 128  }
0x32f6   : > { %8615 = vsyncadd (!%p8375_p2), %s7198_s13, 4294967168  ;;  %s10216_s30 = sld [smem:[#allocation11_spill]]  ;;  %s10217_s8 = sld [smem:[#allocation7_spill]] }
0x32f7   : > { %s10218_s5 = sld [smem:[#allocation8_spill]]  ;;  %s10219_s9 = sld [smem:[#allocation12_spill]] }
0x32fc   : > { %p38_p3 = scmp.ge.s32.totalorder %s10216_s30, 4  }
0x32fe   :  { %40 = sbr.rel (!%p38_p3) target bundleno = 29 (0x1d), region = 201 }
0x3305   :  { %7203 = vsyncpa [#allocation4], 1 }
0x3306   :  { %7205 = vsyncpa [#allocation4 + $0x1], 1 }

</bundles_post_ra>
